<compile_context>
chip_gen: v7x
topology: tpu7x:2x2x1
jax: 0.10.0
libtpu: 0.0.40
codegen_flags: <defaults>
</compile_context>

<pallas_src>
import functools

import jax
import jax.numpy as jnp
import numpy as np
from jax.experimental import pallas as pl
from jax.experimental.pallas import tpu as pltpu


def _cvam_kernel(x_l_cc_ref, x_r_cc_ref, x_l_mlo_ref, x_r_mlo_ref,
                 c1w_ref, c2w_ref, f1w_ref, f2w_ref,
                 o_l_cc_ref, o_r_cc_ref, o_l_mlo_ref, o_r_mlo_ref,
                 *, H, W):
    C = x_l_cc_ref.shape[1]
    HW = H * W

    # per-batch views, lane-dense (C, HW)
    x_l_cc = x_l_cc_ref[0]
    x_r_cc = x_r_cc_ref[0]
    x_l_mlo = x_l_mlo_ref[0]
    x_r_mlo = x_r_mlo_ref[0]

    ones_row = jnp.ones((1, HW), jnp.float32)
    one11 = jnp.ones((1, 1), jnp.float32)
    # column index (w) of every flattened spatial position, for conv boundary masks
    wcol = jax.lax.broadcasted_iota(jnp.int32, (1, HW), 1) % W
    mask_dx_m1 = wcol >= 1          # valid positions for a dx = -1 tap
    mask_dx_p1 = wcol < (W - 1)     # valid positions for a dx = +1 tap

    def shift_flat(s4, dy, dx):
        """shifted[p] = s4[p + dy*W + dx] with zero fill / boundary masking."""
        rows = s4.shape[0]
        s = dy * W + dx
        if s > 0:
            sh = jnp.concatenate(
                [s4[:, s:], jnp.zeros((rows, s), jnp.float32)], axis=1)
        elif s < 0:
            sh = jnp.concatenate(
                [jnp.zeros((rows, -s), jnp.float32), s4[:, :s]], axis=1)
        else:
            sh = s4
        if dx == -1:
            sh = jnp.where(mask_dx_m1, sh, 0.0)
        elif dx == 1:
            sh = jnp.where(mask_dx_p1, sh, 0.0)
        return sh

    def tapped(s4):
        """(4, HW) -> (37, HW): 9 taps x 4 input maps (tap-major) + ones row (bias)."""
        taps = [shift_flat(s4, ky - 1, kx - 1)
                for ky in range(3) for kx in range(3)]
        taps.append(ones_row)
        return jnp.concatenate(taps, axis=0)

    w1 = c1w_ref[...]   # (37, 4)   rows: (ky,kx,ci) + bias, cols: out channel
    w2 = c2w_ref[...]   # (37, 1)

    def spatial_gate(maps):
        """maps: 4 x (1, HW) in torch.cat order -> sigmoid gate (1, HW)."""
        stk = tapped(jnp.concatenate(maps, axis=0))                      # (37, HW)
        h_rows = [jnp.maximum(
            jnp.sum(w1[:, o:o + 1] * stk, axis=0, keepdims=True), 0.0)   # (1, HW)
            for o in range(4)]
        stk2 = tapped(jnp.concatenate(h_rows, axis=0))                    # (37, HW)
        pre = jnp.sum(w2 * stk2, axis=0, keepdims=True)                   # (1, HW)
        return jax.nn.sigmoid(pre)

    # ---------- bi-lateral (spatial) gates ----------
    def ch_stats(x):   # (C, HW) -> ((1, HW), (1, HW))
        return (jnp.mean(x, axis=0, keepdims=True),
                jnp.max(x, axis=0, keepdims=True))

    l_cc_avg, l_cc_max = ch_stats(x_l_cc)
    r_cc_avg, r_cc_max = ch_stats(x_r_cc)
    l_ml_avg, l_ml_max = ch_stats(x_l_mlo)
    r_ml_avg, r_ml_max = ch_stats(x_r_mlo)

    # torch.cat order: [right_avg, right_max, left_avg, left_max]
    sig_cc = spatial_gate([r_cc_avg, r_cc_max, l_cc_avg, l_cc_max])
    sig_mlo = spatial_gate([r_ml_avg, r_ml_max, l_ml_avg, l_ml_max])

    # ---------- bi-projection (channel) gates ----------
    def sp_stats(x):   # (C, HW) -> ((C, 1), (C, 1))
        return (jnp.mean(x, axis=1, keepdims=True),
                jnp.max(x, axis=1, keepdims=True))

    l_cc_ga, l_cc_gm = sp_stats(x_l_cc)
    r_cc_ga, r_cc_gm = sp_stats(x_r_cc)
    l_ml_ga, l_ml_gm = sp_stats(x_l_mlo)
    r_ml_ga, r_ml_gm = sp_stats(x_r_mlo)

    f1 = f1w_ref[...]   # (4C+1, C)  (weight^T with bias row appended)
    f2 = f2w_ref[...]   # (C, C+1)   (weight with bias column appended)

    def channel_gate(ga_cc, gm_cc, ga_ml, gm_ml):
        # torch.cat order: (cc_avg, cc_max, mlo_avg, mlo_max), + 1 for the folded bias
        flat = jnp.concatenate([ga_cc, gm_cc, ga_ml, gm_ml, one11], axis=0)  # (4C+1, 1)
        h = jnp.maximum(jnp.sum(flat * f1, axis=0, keepdims=True), 0.0)      # (1, C)
        h_aug = jnp.concatenate([h, one11], axis=1)                          # (1, C+1)
        z = jnp.sum(h_aug * f2, axis=1, keepdims=True)                       # (C, 1)
        return jax.nn.sigmoid(z)

    sig_l = channel_gate(l_cc_ga, l_cc_gm, l_ml_ga, l_ml_gm)
    sig_r = channel_gate(r_cc_ga, r_cc_gm, r_ml_ga, r_ml_gm)

    # ---------- apply both gates (fused, lane-dense) ----------
    o_l_cc_ref[0] = x_l_cc * sig_cc * sig_l
    o_r_cc_ref[0] = x_r_cc * sig_cc * sig_r
    o_l_mlo_ref[0] = x_l_mlo * sig_mlo * sig_l
    o_r_mlo_ref[0] = x_r_mlo * sig_mlo * sig_r


def cvam_forward(xs, params):
    x_l_cc, x_r_cc, x_l_mlo, x_r_mlo = xs
    B, C, H, W = x_l_cc.shape
    HW = H * W

    # lane-dense views (free reshape in XLA land)
    views = [x.reshape(B, C, HW) for x in xs]

    # conv weights -> (taps x in_ch) rows (tap-major), out channels on lanes, bias folded
    c1 = jnp.concatenate(
        [params['c1w'].transpose(2, 3, 1, 0).reshape(36, 4),
         params['c1b'][None, :]], axis=0)                      # (37, 4)
    c2 = jnp.concatenate(
        [params['c2w'].transpose(2, 3, 1, 0).reshape(36, 1),
         params['c2b'][None, :]], axis=0)                      # (37, 1)
    # fc weights, bias folded
    f1 = jnp.concatenate([params['f1w'].T, params['f1b'][None, :]], axis=0)  # (4C+1, C)
    f2 = jnp.concatenate([params['f2w'], params['f2b'][:, None]], axis=1)    # (C, C+1)

    view_spec = pl.BlockSpec((1, C, HW), lambda b: (b, 0, 0))

    def full_spec(shape):
        return pl.BlockSpec(shape, lambda b, _n=len(shape): (0,) * _n)

    kernel = functools.partial(_cvam_kernel, H=H, W=W)

    outs = pl.pallas_call(
        kernel,
        grid=(B,),
        out_shape=[jax.ShapeDtypeStruct((B, C, HW), jnp.float32)] * 4,
        in_specs=[view_spec] * 4 + [full_spec(c1.shape), full_spec(c2.shape),
                                    full_spec(f1.shape), full_spec(f2.shape)],
        out_specs=[view_spec] * 4,
        compiler_params=pltpu.CompilerParams(
            dimension_semantics=("parallel",),
            vmem_limit_bytes=64 * 1024 * 1024),
    )(*views, c1, c2, f1, f2)

    return [o.reshape(B, C, H, W) for o in outs]


def cvam_reference(xs, params):
    x_l_cc, x_r_cc, x_l_mlo, x_r_mlo = xs
    hi = jax.lax.Precision.HIGHEST

    def conv2d(x, w, b):
        y = jax.lax.conv_general_dilated(
            x, w, window_strides=(1, 1), padding='SAME',
            dimension_numbers=('NCHW', 'OIHW', 'NCHW'), precision=hi)
        return y + b[None, :, None, None]

    def ch_stats(x):
        return jnp.mean(x, axis=1, keepdims=True), jnp.max(x, axis=1, keepdims=True)

    def conv_block(cat):
        h = jax.nn.relu(conv2d(cat, params['c1w'], params['c1b']))
        return jax.nn.sigmoid(conv2d(h, params['c2w'], params['c2b']))

    l_cc_a, l_cc_m = ch_stats(x_l_cc); r_cc_a, r_cc_m = ch_stats(x_r_cc)
    l_ml_a, l_ml_m = ch_stats(x_l_mlo); r_ml_a, r_ml_m = ch_stats(x_r_mlo)
    sig_cc = conv_block(jnp.concatenate([r_cc_a, r_cc_m, l_cc_a, l_cc_m], axis=1))
    sig_mlo = conv_block(jnp.concatenate([r_ml_a, r_ml_m, l_ml_a, l_ml_m], axis=1))

    def sp_stats(x):
        return jnp.mean(x, axis=(2, 3)), jnp.max(x, axis=(2, 3))

    def fc_block(flat):
        h = jax.nn.relu(jnp.dot(flat, params['f1w'].T, precision=hi) + params['f1b'])
        return jax.nn.sigmoid(jnp.dot(h, params['f2w'].T, precision=hi) + params['f2b'])

    l_cc_ga, l_cc_gm = sp_stats(x_l_cc); r_cc_ga, r_cc_gm = sp_stats(x_r_cc)
    l_ml_ga, l_ml_gm = sp_stats(x_l_mlo); r_ml_ga, r_ml_gm = sp_stats(x_r_mlo)
    sig_l = fc_block(jnp.concatenate([l_cc_ga, l_cc_gm, l_ml_ga, l_ml_gm], axis=1))
    sig_r = fc_block(jnp.concatenate([r_cc_ga, r_cc_gm, r_ml_ga, r_ml_gm], axis=1))
    sig_l = sig_l[:, :, None, None]
    sig_r = sig_r[:, :, None, None]
    return [x_l_cc * sig_cc * sig_l, x_r_cc * sig_cc * sig_r,
            x_l_mlo * sig_mlo * sig_l, x_r_mlo * sig_mlo * sig_r]


if __name__ == "__main__":
    B, C, H, W = 2, 4, 16, 16          # bi_proj_channel_size == C == 4
    key = jax.random.PRNGKey(0)
    kx = jax.random.split(key, 4)
    xs = [jax.random.normal(k, (B, C, H, W), jnp.float32) for k in kx]

    pkey = jax.random.PRNGKey(42)
    ks = jax.random.split(pkey, 8)
    params = {
        'c1w': 0.2 * jax.random.normal(ks[0], (4, 4, 3, 3), jnp.float32),
        'c1b': 0.1 * jax.random.normal(ks[1], (4,), jnp.float32),
        'c2w': 0.2 * jax.random.normal(ks[2], (1, 4, 3, 3), jnp.float32),
        'c2b': 0.1 * jax.random.normal(ks[3], (1,), jnp.float32),
        'f1w': 0.2 * jax.random.normal(ks[4], (C, 4 * C), jnp.float32),
        'f1b': 0.1 * jax.random.normal(ks[5], (C,), jnp.float32),
        'f2w': 0.2 * jax.random.normal(ks[6], (C, C), jnp.float32),
        'f2b': 0.1 * jax.random.normal(ks[7], (C,), jnp.float32),
    }

    outs = jax.block_until_ready(cvam_forward(xs, params))
    refs = cvam_reference(xs, params)
    for o, r in zip(outs, refs):
        np.testing.assert_allclose(np.asarray(o), np.asarray(r), rtol=1e-4, atol=1e-5)
    print("KERNEL_OK")
</pallas_src>

<mosaic_0001>
module attributes {stable_mosaic.version = 11 : i64} {
  func.func @_cvam_kernel(%arg0: i32, %arg1: memref<1x4x256xf32, #tpu.memory_space<vmem>>, %arg2: memref<1x4x256xf32, #tpu.memory_space<vmem>>, %arg3: memref<1x4x256xf32, #tpu.memory_space<vmem>>, %arg4: memref<1x4x256xf32, #tpu.memory_space<vmem>>, %arg5: memref<37x4xf32, #tpu.memory_space<vmem>>, %arg6: memref<37x1xf32, #tpu.memory_space<vmem>>, %arg7: memref<17x4xf32, #tpu.memory_space<vmem>>, %arg8: memref<4x5xf32, #tpu.memory_space<vmem>>, %arg9: memref<1x4x256xf32, #tpu.memory_space<vmem>>, %arg10: memref<1x4x256xf32, #tpu.memory_space<vmem>>, %arg11: memref<1x4x256xf32, #tpu.memory_space<vmem>>, %arg12: memref<1x4x256xf32, #tpu.memory_space<vmem>>) attributes {dimension_semantics = [#tpu.dimension_semantics<parallel>], iteration_bounds = array<i64: 2>, scalar_prefetch = 0 : i64, scratch_operands = 0 : i64, tpu.core_type = #tpu.core_type<tc>, window_params = [{transform_indices = @transform_0, window_bounds = array<i64: 1, 4, 256>}, {transform_indices = @transform_1, window_bounds = array<i64: 1, 4, 256>}, {transform_indices = @transform_2, window_bounds = array<i64: 1, 4, 256>}, {transform_indices = @transform_3, window_bounds = array<i64: 1, 4, 256>}, {pipeline_mode = #tpu.pipeline_mode<synchronous>, transform_indices = @transform_4, window_bounds = array<i64: 37, 4>}, {pipeline_mode = #tpu.pipeline_mode<synchronous>, transform_indices = @transform_5, window_bounds = array<i64: 37, 1>}, {pipeline_mode = #tpu.pipeline_mode<synchronous>, transform_indices = @transform_6, window_bounds = array<i64: 17, 4>}, {pipeline_mode = #tpu.pipeline_mode<synchronous>, transform_indices = @transform_7, window_bounds = array<i64: 4, 5>}, {transform_indices = @transform_8, window_bounds = array<i64: 1, 4, 256>}, {transform_indices = @transform_9, window_bounds = array<i64: 1, 4, 256>}, {transform_indices = @transform_10, window_bounds = array<i64: 1, 4, 256>}, {transform_indices = @transform_11, window_bounds = array<i64: 1, 4, 256>}]} {
    %c0 = arith.constant 0 : index
    %c0_0 = arith.constant 0 : index
    %c0_1 = arith.constant 0 : index
    %0 = vector.load %arg1[%c0, %c0_0, %c0_1] : memref<1x4x256xf32, #tpu.memory_space<vmem>>, vector<1x4x256xf32>
    %1 = vector.shape_cast %0 : vector<1x4x256xf32> to vector<4x256xf32>
    %c0_2 = arith.constant 0 : index
    %c0_3 = arith.constant 0 : index
    %c0_4 = arith.constant 0 : index
    %2 = vector.load %arg2[%c0_2, %c0_3, %c0_4] : memref<1x4x256xf32, #tpu.memory_space<vmem>>, vector<1x4x256xf32>
    %3 = vector.shape_cast %2 : vector<1x4x256xf32> to vector<4x256xf32>
    %c0_5 = arith.constant 0 : index
    %c0_6 = arith.constant 0 : index
    %c0_7 = arith.constant 0 : index
    %4 = vector.load %arg3[%c0_5, %c0_6, %c0_7] : memref<1x4x256xf32, #tpu.memory_space<vmem>>, vector<1x4x256xf32>
    %5 = vector.shape_cast %4 : vector<1x4x256xf32> to vector<4x256xf32>
    %c0_8 = arith.constant 0 : index
    %c0_9 = arith.constant 0 : index
    %c0_10 = arith.constant 0 : index
    %6 = vector.load %arg4[%c0_8, %c0_9, %c0_10] : memref<1x4x256xf32, #tpu.memory_space<vmem>>, vector<1x4x256xf32>
    %7 = vector.shape_cast %6 : vector<1x4x256xf32> to vector<4x256xf32>
    %cst = arith.constant 1.000000e+00 : f32
    %8 = vector.broadcast %cst : f32 to vector<1x256xf32>
    %cst_11 = arith.constant 1.000000e+00 : f32
    %9 = vector.broadcast %cst_11 : f32 to vector<1x1xf32>
    %10 = tpu.iota {dimensions = array<i32: 1>} : vector<1x256xi32>
    %c16_i32 = arith.constant 16 : i32
    %c0_i32 = arith.constant 0 : i32
    %11 = arith.cmpi eq, %c16_i32, %c0_i32 : i32
    %c1_i32 = arith.constant 1 : i32
    %12 = arith.select %11, %c1_i32, %c16_i32 : i32
    %13 = vector.broadcast %12 : i32 to vector<1x256xi32>
    %14 = arith.remsi %10, %13 : vector<1x256xi32>
    %c0_i32_12 = arith.constant 0 : i32
    %15 = vector.broadcast %c0_i32_12 : i32 to vector<1x256xi32>
    %16 = arith.cmpi ne, %14, %15 : vector<1x256xi32>
    %c0_i32_13 = arith.constant 0 : i32
    %17 = vector.broadcast %c0_i32_13 : i32 to vector<1x256xi32>
    %18 = arith.cmpi slt, %14, %17 : vector<1x256xi32>
    %c0_i32_14 = arith.constant 0 : i32
    %19 = arith.cmpi slt, %12, %c0_i32_14 : i32
    %20 = vector.broadcast %19 : i1 to vector<1x256xi1>
    %21 = vector.broadcast %20 : vector<1x256xi1> to vector<1x256xi1>
    %22 = arith.xori %18, %21 : vector<1x256xi1>
    %23 = arith.andi %22, %16 : vector<1x256xi1>
    %24 = vector.broadcast %12 : i32 to vector<1x256xi32>
    %25 = arith.addi %14, %24 : vector<1x256xi32>
    %26 = arith.select %23, %25, %14 : vector<1x256xi1>, vector<1x256xi32>
    %c1_i32_15 = arith.constant 1 : i32
    %27 = vector.broadcast %c1_i32_15 : i32 to vector<1x256xi32>
    %28 = arith.cmpi sge, %26, %27 : vector<1x256xi32>
    %c15_i32 = arith.constant 15 : i32
    %29 = vector.broadcast %c15_i32 : i32 to vector<1x256xi32>
    %30 = arith.cmpi slt, %26, %29 : vector<1x256xi32>
    %c0_16 = arith.constant 0 : index
    %c0_17 = arith.constant 0 : index
    %31 = vector.load %arg5[%c0_16, %c0_17] : memref<37x4xf32, #tpu.memory_space<vmem>>, vector<37x4xf32>
    %c0_18 = arith.constant 0 : index
    %c0_19 = arith.constant 0 : index
    %32 = vector.load %arg6[%c0_18, %c0_19] : memref<37x1xf32, #tpu.memory_space<vmem>>, vector<37x1xf32>
    %cst_20 = arith.constant dense<0.000000e+00> : vector<256xf32>
    %33 = vector.multi_reduction <add>, %1, %cst_20 [0] : vector<4x256xf32> to vector<256xf32>
    %34 = vector.shape_cast %33 : vector<256xf32> to vector<1x256xf32>
    %cst_21 = arith.constant 4.000000e+00 : f32
    %35 = vector.broadcast %cst_21 : f32 to vector<1x256xf32>
    %36 = arith.divf %34, %35 : vector<1x256xf32>
    %cst_22 = arith.constant dense<0xFF800000> : vector<256xf32>
    %37 = vector.multi_reduction <maximumf>, %1, %cst_22 [0] : vector<4x256xf32> to vector<256xf32>
    %38 = vector.shape_cast %37 : vector<256xf32> to vector<1x256xf32>
    %cst_23 = arith.constant dense<0.000000e+00> : vector<256xf32>
    %39 = vector.multi_reduction <add>, %3, %cst_23 [0] : vector<4x256xf32> to vector<256xf32>
    %40 = vector.shape_cast %39 : vector<256xf32> to vector<1x256xf32>
    %cst_24 = arith.constant 4.000000e+00 : f32
    %41 = vector.broadcast %cst_24 : f32 to vector<1x256xf32>
    %42 = arith.divf %40, %41 : vector<1x256xf32>
    %cst_25 = arith.constant dense<0xFF800000> : vector<256xf32>
    %43 = vector.multi_reduction <maximumf>, %3, %cst_25 [0] : vector<4x256xf32> to vector<256xf32>
    %44 = vector.shape_cast %43 : vector<256xf32> to vector<1x256xf32>
    %cst_26 = arith.constant dense<0.000000e+00> : vector<256xf32>
    %45 = vector.multi_reduction <add>, %5, %cst_26 [0] : vector<4x256xf32> to vector<256xf32>
    %46 = vector.shape_cast %45 : vector<256xf32> to vector<1x256xf32>
    %cst_27 = arith.constant 4.000000e+00 : f32
    %47 = vector.broadcast %cst_27 : f32 to vector<1x256xf32>
    %48 = arith.divf %46, %47 : vector<1x256xf32>
    %cst_28 = arith.constant dense<0xFF800000> : vector<256xf32>
    %49 = vector.multi_reduction <maximumf>, %5, %cst_28 [0] : vector<4x256xf32> to vector<256xf32>
    %50 = vector.shape_cast %49 : vector<256xf32> to vector<1x256xf32>
    %cst_29 = arith.constant dense<0.000000e+00> : vector<256xf32>
    %51 = vector.multi_reduction <add>, %7, %cst_29 [0] : vector<4x256xf32> to vector<256xf32>
    %52 = vector.shape_cast %51 : vector<256xf32> to vector<1x256xf32>
    %cst_30 = arith.constant 4.000000e+00 : f32
    %53 = vector.broadcast %cst_30 : f32 to vector<1x256xf32>
    %54 = arith.divf %52, %53 : vector<1x256xf32>
    %cst_31 = arith.constant dense<0xFF800000> : vector<256xf32>
    %55 = vector.multi_reduction <maximumf>, %7, %cst_31 [0] : vector<4x256xf32> to vector<256xf32>
    %56 = vector.shape_cast %55 : vector<256xf32> to vector<1x256xf32>
    %57 = tpu.concatenate %42, %44, %36, %38 in 0 : vector<1x256xf32>, vector<1x256xf32>, vector<1x256xf32>, vector<1x256xf32> -> vector<4x256xf32>
    %cst_32 = arith.constant 0.000000e+00 : f32
    %58 = vector.broadcast %cst_32 : f32 to vector<4x17xf32>
    %59 = vector.extract_strided_slice %57 {offsets = [0, 0], sizes = [4, 239], strides = [1, 1]} : vector<4x256xf32> to vector<4x239xf32>
    %60 = tpu.concatenate %58, %59 in 1 : vector<4x17xf32>, vector<4x239xf32> -> vector<4x256xf32>
    %cst_33 = arith.constant 0.000000e+00 : f32
    %61 = vector.shape_cast %28 : vector<1x256xi1> to vector<1x256xi1>
    %62 = vector.broadcast %61 : vector<1x256xi1> to vector<4x256xi1>
    %63 = vector.broadcast %cst_33 : f32 to vector<4x256xf32>
    %64 = arith.select %62, %60, %63 : vector<4x256xi1>, vector<4x256xf32>
    %cst_34 = arith.constant 0.000000e+00 : f32
    %65 = vector.broadcast %cst_34 : f32 to vector<4x16xf32>
    %66 = vector.extract_strided_slice %57 {offsets = [0, 0], sizes = [4, 240], strides = [1, 1]} : vector<4x256xf32> to vector<4x240xf32>
    %67 = tpu.concatenate %65, %66 in 1 : vector<4x16xf32>, vector<4x240xf32> -> vector<4x256xf32>
    %cst_35 = arith.constant 0.000000e+00 : f32
    %68 = vector.broadcast %cst_35 : f32 to vector<4x15xf32>
    %69 = vector.extract_strided_slice %57 {offsets = [0, 0], sizes = [4, 241], strides = [1, 1]} : vector<4x256xf32> to vector<4x241xf32>
    %70 = tpu.concatenate %68, %69 in 1 : vector<4x15xf32>, vector<4x241xf32> -> vector<4x256xf32>
    %cst_36 = arith.constant 0.000000e+00 : f32
    %71 = vector.shape_cast %30 : vector<1x256xi1> to vector<1x256xi1>
    %72 = vector.broadcast %71 : vector<1x256xi1> to vector<4x256xi1>
    %73 = vector.broadcast %cst_36 : f32 to vector<4x256xf32>
    %74 = arith.select %72, %70, %73 : vector<4x256xi1>, vector<4x256xf32>
    %cst_37 = arith.constant 0.000000e+00 : f32
    %75 = vector.broadcast %cst_37 : f32 to vector<4x1xf32>
    %76 = vector.extract_strided_slice %57 {offsets = [0, 0], sizes = [4, 255], strides = [1, 1]} : vector<4x256xf32> to vector<4x255xf32>
    %77 = tpu.concatenate %75, %76 in 1 : vector<4x1xf32>, vector<4x255xf32> -> vector<4x256xf32>
    %cst_38 = arith.constant 0.000000e+00 : f32
    %78 = vector.shape_cast %28 : vector<1x256xi1> to vector<1x256xi1>
    %79 = vector.broadcast %78 : vector<1x256xi1> to vector<4x256xi1>
    %80 = vector.broadcast %cst_38 : f32 to vector<4x256xf32>
    %81 = arith.select %79, %77, %80 : vector<4x256xi1>, vector<4x256xf32>
    %82 = vector.extract_strided_slice %57 {offsets = [0, 1], sizes = [4, 255], strides = [1, 1]} : vector<4x256xf32> to vector<4x255xf32>
    %cst_39 = arith.constant 0.000000e+00 : f32
    %83 = vector.broadcast %cst_39 : f32 to vector<4x1xf32>
    %84 = tpu.concatenate %82, %83 in 1 : vector<4x255xf32>, vector<4x1xf32> -> vector<4x256xf32>
    %cst_40 = arith.constant 0.000000e+00 : f32
    %85 = vector.shape_cast %30 : vector<1x256xi1> to vector<1x256xi1>
    %86 = vector.broadcast %85 : vector<1x256xi1> to vector<4x256xi1>
    %87 = vector.broadcast %cst_40 : f32 to vector<4x256xf32>
    %88 = arith.select %86, %84, %87 : vector<4x256xi1>, vector<4x256xf32>
    %89 = vector.extract_strided_slice %57 {offsets = [0, 15], sizes = [4, 241], strides = [1, 1]} : vector<4x256xf32> to vector<4x241xf32>
    %cst_41 = arith.constant 0.000000e+00 : f32
    %90 = vector.broadcast %cst_41 : f32 to vector<4x15xf32>
    %91 = tpu.concatenate %89, %90 in 1 : vector<4x241xf32>, vector<4x15xf32> -> vector<4x256xf32>
    %cst_42 = arith.constant 0.000000e+00 : f32
    %92 = vector.shape_cast %28 : vector<1x256xi1> to vector<1x256xi1>
    %93 = vector.broadcast %92 : vector<1x256xi1> to vector<4x256xi1>
    %94 = vector.broadcast %cst_42 : f32 to vector<4x256xf32>
    %95 = arith.select %93, %91, %94 : vector<4x256xi1>, vector<4x256xf32>
    %96 = vector.extract_strided_slice %57 {offsets = [0, 16], sizes = [4, 240], strides = [1, 1]} : vector<4x256xf32> to vector<4x240xf32>
    %cst_43 = arith.constant 0.000000e+00 : f32
    %97 = vector.broadcast %cst_43 : f32 to vector<4x16xf32>
    %98 = tpu.concatenate %96, %97 in 1 : vector<4x240xf32>, vector<4x16xf32> -> vector<4x256xf32>
    %99 = vector.extract_strided_slice %57 {offsets = [0, 17], sizes = [4, 239], strides = [1, 1]} : vector<4x256xf32> to vector<4x239xf32>
    %cst_44 = arith.constant 0.000000e+00 : f32
    %100 = vector.broadcast %cst_44 : f32 to vector<4x17xf32>
    %101 = tpu.concatenate %99, %100 in 1 : vector<4x239xf32>, vector<4x17xf32> -> vector<4x256xf32>
    %cst_45 = arith.constant 0.000000e+00 : f32
    %102 = vector.shape_cast %30 : vector<1x256xi1> to vector<1x256xi1>
    %103 = vector.broadcast %102 : vector<1x256xi1> to vector<4x256xi1>
    %104 = vector.broadcast %cst_45 : f32 to vector<4x256xf32>
    %105 = arith.select %103, %101, %104 : vector<4x256xi1>, vector<4x256xf32>
    %106 = tpu.concatenate %64, %67, %74, %81, %57, %88, %95, %98, %105, %8 in 0 : vector<4x256xf32>, vector<4x256xf32>, vector<4x256xf32>, vector<4x256xf32>, vector<4x256xf32>, vector<4x256xf32>, vector<4x256xf32>, vector<4x256xf32>, vector<4x256xf32>, vector<1x256xf32> -> vector<37x256xf32>
    %107 = vector.extract_strided_slice %31 {offsets = [0, 0], sizes = [37, 1], strides = [1, 1]} : vector<37x4xf32> to vector<37x1xf32>
    %108 = vector.broadcast %107 : vector<37x1xf32> to vector<37x256xf32>
    %109 = arith.mulf %108, %106 : vector<37x256xf32>
    %cst_46 = arith.constant dense<0.000000e+00> : vector<256xf32>
    %110 = vector.multi_reduction <add>, %109, %cst_46 [0] : vector<37x256xf32> to vector<256xf32>
    %111 = vector.shape_cast %110 : vector<256xf32> to vector<1x256xf32>
    %cst_47 = arith.constant 0.000000e+00 : f32
    %112 = vector.broadcast %cst_47 : f32 to vector<1x256xf32>
    %113 = arith.maximumf %111, %112 : vector<1x256xf32>
    %114 = vector.extract_strided_slice %31 {offsets = [0, 1], sizes = [37, 1], strides = [1, 1]} : vector<37x4xf32> to vector<37x1xf32>
    %115 = vector.broadcast %114 : vector<37x1xf32> to vector<37x256xf32>
    %116 = arith.mulf %115, %106 : vector<37x256xf32>
    %cst_48 = arith.constant dense<0.000000e+00> : vector<256xf32>
    %117 = vector.multi_reduction <add>, %116, %cst_48 [0] : vector<37x256xf32> to vector<256xf32>
    %118 = vector.shape_cast %117 : vector<256xf32> to vector<1x256xf32>
    %cst_49 = arith.constant 0.000000e+00 : f32
    %119 = vector.broadcast %cst_49 : f32 to vector<1x256xf32>
    %120 = arith.maximumf %118, %119 : vector<1x256xf32>
    %121 = vector.extract_strided_slice %31 {offsets = [0, 2], sizes = [37, 1], strides = [1, 1]} : vector<37x4xf32> to vector<37x1xf32>
    %122 = vector.broadcast %121 : vector<37x1xf32> to vector<37x256xf32>
    %123 = arith.mulf %122, %106 : vector<37x256xf32>
    %cst_50 = arith.constant dense<0.000000e+00> : vector<256xf32>
    %124 = vector.multi_reduction <add>, %123, %cst_50 [0] : vector<37x256xf32> to vector<256xf32>
    %125 = vector.shape_cast %124 : vector<256xf32> to vector<1x256xf32>
    %cst_51 = arith.constant 0.000000e+00 : f32
    %126 = vector.broadcast %cst_51 : f32 to vector<1x256xf32>
    %127 = arith.maximumf %125, %126 : vector<1x256xf32>
    %128 = vector.extract_strided_slice %31 {offsets = [0, 3], sizes = [37, 1], strides = [1, 1]} : vector<37x4xf32> to vector<37x1xf32>
    %129 = vector.broadcast %128 : vector<37x1xf32> to vector<37x256xf32>
    %130 = arith.mulf %129, %106 : vector<37x256xf32>
    %cst_52 = arith.constant dense<0.000000e+00> : vector<256xf32>
    %131 = vector.multi_reduction <add>, %130, %cst_52 [0] : vector<37x256xf32> to vector<256xf32>
    %132 = vector.shape_cast %131 : vector<256xf32> to vector<1x256xf32>
    %cst_53 = arith.constant 0.000000e+00 : f32
    %133 = vector.broadcast %cst_53 : f32 to vector<1x256xf32>
    %134 = arith.maximumf %132, %133 : vector<1x256xf32>
    %135 = tpu.concatenate %113, %120, %127, %134 in 0 : vector<1x256xf32>, vector<1x256xf32>, vector<1x256xf32>, vector<1x256xf32> -> vector<4x256xf32>
    %cst_54 = arith.constant 0.000000e+00 : f32
    %136 = vector.broadcast %cst_54 : f32 to vector<4x17xf32>
    %137 = vector.extract_strided_slice %135 {offsets = [0, 0], sizes = [4, 239], strides = [1, 1]} : vector<4x256xf32> to vector<4x239xf32>
    %138 = tpu.concatenate %136, %137 in 1 : vector<4x17xf32>, vector<4x239xf32> -> vector<4x256xf32>
    %cst_55 = arith.constant 0.000000e+00 : f32
    %139 = vector.shape_cast %28 : vector<1x256xi1> to vector<1x256xi1>
    %140 = vector.broadcast %139 : vector<1x256xi1> to vector<4x256xi1>
    %141 = vector.broadcast %cst_55 : f32 to vector<4x256xf32>
    %142 = arith.select %140, %138, %141 : vector<4x256xi1>, vector<4x256xf32>
    %cst_56 = arith.constant 0.000000e+00 : f32
    %143 = vector.broadcast %cst_56 : f32 to vector<4x16xf32>
    %144 = vector.extract_strided_slice %135 {offsets = [0, 0], sizes = [4, 240], strides = [1, 1]} : vector<4x256xf32> to vector<4x240xf32>
    %145 = tpu.concatenate %143, %144 in 1 : vector<4x16xf32>, vector<4x240xf32> -> vector<4x256xf32>
    %cst_57 = arith.constant 0.000000e+00 : f32
    %146 = vector.broadcast %cst_57 : f32 to vector<4x15xf32>
    %147 = vector.extract_strided_slice %135 {offsets = [0, 0], sizes = [4, 241], strides = [1, 1]} : vector<4x256xf32> to vector<4x241xf32>
    %148 = tpu.concatenate %146, %147 in 1 : vector<4x15xf32>, vector<4x241xf32> -> vector<4x256xf32>
    %cst_58 = arith.constant 0.000000e+00 : f32
    %149 = vector.shape_cast %30 : vector<1x256xi1> to vector<1x256xi1>
    %150 = vector.broadcast %149 : vector<1x256xi1> to vector<4x256xi1>
    %151 = vector.broadcast %cst_58 : f32 to vector<4x256xf32>
    %152 = arith.select %150, %148, %151 : vector<4x256xi1>, vector<4x256xf32>
    %cst_59 = arith.constant 0.000000e+00 : f32
    %153 = vector.broadcast %cst_59 : f32 to vector<4x1xf32>
    %154 = vector.extract_strided_slice %135 {offsets = [0, 0], sizes = [4, 255], strides = [1, 1]} : vector<4x256xf32> to vector<4x255xf32>
    %155 = tpu.concatenate %153, %154 in 1 : vector<4x1xf32>, vector<4x255xf32> -> vector<4x256xf32>
    %cst_60 = arith.constant 0.000000e+00 : f32
    %156 = vector.shape_cast %28 : vector<1x256xi1> to vector<1x256xi1>
    %157 = vector.broadcast %156 : vector<1x256xi1> to vector<4x256xi1>
    %158 = vector.broadcast %cst_60 : f32 to vector<4x256xf32>
    %159 = arith.select %157, %155, %158 : vector<4x256xi1>, vector<4x256xf32>
    %160 = vector.extract_strided_slice %135 {offsets = [0, 1], sizes = [4, 255], strides = [1, 1]} : vector<4x256xf32> to vector<4x255xf32>
    %cst_61 = arith.constant 0.000000e+00 : f32
    %161 = vector.broadcast %cst_61 : f32 to vector<4x1xf32>
    %162 = tpu.concatenate %160, %161 in 1 : vector<4x255xf32>, vector<4x1xf32> -> vector<4x256xf32>
    %cst_62 = arith.constant 0.000000e+00 : f32
    %163 = vector.shape_cast %30 : vector<1x256xi1> to vector<1x256xi1>
    %164 = vector.broadcast %163 : vector<1x256xi1> to vector<4x256xi1>
    %165 = vector.broadcast %cst_62 : f32 to vector<4x256xf32>
    %166 = arith.select %164, %162, %165 : vector<4x256xi1>, vector<4x256xf32>
    %167 = vector.extract_strided_slice %135 {offsets = [0, 15], sizes = [4, 241], strides = [1, 1]} : vector<4x256xf32> to vector<4x241xf32>
    %cst_63 = arith.constant 0.000000e+00 : f32
    %168 = vector.broadcast %cst_63 : f32 to vector<4x15xf32>
    %169 = tpu.concatenate %167, %168 in 1 : vector<4x241xf32>, vector<4x15xf32> -> vector<4x256xf32>
    %cst_64 = arith.constant 0.000000e+00 : f32
    %170 = vector.shape_cast %28 : vector<1x256xi1> to vector<1x256xi1>
    %171 = vector.broadcast %170 : vector<1x256xi1> to vector<4x256xi1>
    %172 = vector.broadcast %cst_64 : f32 to vector<4x256xf32>
    %173 = arith.select %171, %169, %172 : vector<4x256xi1>, vector<4x256xf32>
    %174 = vector.extract_strided_slice %135 {offsets = [0, 16], sizes = [4, 240], strides = [1, 1]} : vector<4x256xf32> to vector<4x240xf32>
    %cst_65 = arith.constant 0.000000e+00 : f32
    %175 = vector.broadcast %cst_65 : f32 to vector<4x16xf32>
    %176 = tpu.concatenate %174, %175 in 1 : vector<4x240xf32>, vector<4x16xf32> -> vector<4x256xf32>
    %177 = vector.extract_strided_slice %135 {offsets = [0, 17], sizes = [4, 239], strides = [1, 1]} : vector<4x256xf32> to vector<4x239xf32>
    %cst_66 = arith.constant 0.000000e+00 : f32
    %178 = vector.broadcast %cst_66 : f32 to vector<4x17xf32>
    %179 = tpu.concatenate %177, %178 in 1 : vector<4x239xf32>, vector<4x17xf32> -> vector<4x256xf32>
    %cst_67 = arith.constant 0.000000e+00 : f32
    %180 = vector.shape_cast %30 : vector<1x256xi1> to vector<1x256xi1>
    %181 = vector.broadcast %180 : vector<1x256xi1> to vector<4x256xi1>
    %182 = vector.broadcast %cst_67 : f32 to vector<4x256xf32>
    %183 = arith.select %181, %179, %182 : vector<4x256xi1>, vector<4x256xf32>
    %184 = tpu.concatenate %142, %145, %152, %159, %135, %166, %173, %176, %183, %8 in 0 : vector<4x256xf32>, vector<4x256xf32>, vector<4x256xf32>, vector<4x256xf32>, vector<4x256xf32>, vector<4x256xf32>, vector<4x256xf32>, vector<4x256xf32>, vector<4x256xf32>, vector<1x256xf32> -> vector<37x256xf32>
    %185 = vector.broadcast %32 : vector<37x1xf32> to vector<37x256xf32>
    %186 = arith.mulf %185, %184 : vector<37x256xf32>
    %cst_68 = arith.constant dense<0.000000e+00> : vector<256xf32>
    %187 = vector.multi_reduction <add>, %186, %cst_68 [0] : vector<37x256xf32> to vector<256xf32>
    %188 = vector.shape_cast %187 : vector<256xf32> to vector<1x256xf32>
    %189 = arith.negf %188 : vector<1x256xf32>
    %190 = math.exp %189 : vector<1x256xf32>
    %cst_69 = arith.constant 1.000000e+00 : f32
    %191 = vector.broadcast %cst_69 : f32 to vector<1x256xf32>
    %192 = arith.addf %191, %190 : vector<1x256xf32>
    %193 = arith.divf %191, %192 : vector<1x256xf32>
    %194 = tpu.concatenate %54, %56, %48, %50 in 0 : vector<1x256xf32>, vector<1x256xf32>, vector<1x256xf32>, vector<1x256xf32> -> vector<4x256xf32>
    %cst_70 = arith.constant 0.000000e+00 : f32
    %195 = vector.broadcast %cst_70 : f32 to vector<4x17xf32>
    %196 = vector.extract_strided_slice %194 {offsets = [0, 0], sizes = [4, 239], strides = [1, 1]} : vector<4x256xf32> to vector<4x239xf32>
    %197 = tpu.concatenate %195, %196 in 1 : vector<4x17xf32>, vector<4x239xf32> -> vector<4x256xf32>
    %cst_71 = arith.constant 0.000000e+00 : f32
    %198 = vector.shape_cast %28 : vector<1x256xi1> to vector<1x256xi1>
    %199 = vector.broadcast %198 : vector<1x256xi1> to vector<4x256xi1>
    %200 = vector.broadcast %cst_71 : f32 to vector<4x256xf32>
    %201 = arith.select %199, %197, %200 : vector<4x256xi1>, vector<4x256xf32>
    %cst_72 = arith.constant 0.000000e+00 : f32
    %202 = vector.broadcast %cst_72 : f32 to vector<4x16xf32>
    %203 = vector.extract_strided_slice %194 {offsets = [0, 0], sizes = [4, 240], strides = [1, 1]} : vector<4x256xf32> to vector<4x240xf32>
    %204 = tpu.concatenate %202, %203 in 1 : vector<4x16xf32>, vector<4x240xf32> -> vector<4x256xf32>
    %cst_73 = arith.constant 0.000000e+00 : f32
    %205 = vector.broadcast %cst_73 : f32 to vector<4x15xf32>
    %206 = vector.extract_strided_slice %194 {offsets = [0, 0], sizes = [4, 241], strides = [1, 1]} : vector<4x256xf32> to vector<4x241xf32>
    %207 = tpu.concatenate %205, %206 in 1 : vector<4x15xf32>, vector<4x241xf32> -> vector<4x256xf32>
    %cst_74 = arith.constant 0.000000e+00 : f32
    %208 = vector.shape_cast %30 : vector<1x256xi1> to vector<1x256xi1>
    %209 = vector.broadcast %208 : vector<1x256xi1> to vector<4x256xi1>
    %210 = vector.broadcast %cst_74 : f32 to vector<4x256xf32>
    %211 = arith.select %209, %207, %210 : vector<4x256xi1>, vector<4x256xf32>
    %cst_75 = arith.constant 0.000000e+00 : f32
    %212 = vector.broadcast %cst_75 : f32 to vector<4x1xf32>
    %213 = vector.extract_strided_slice %194 {offsets = [0, 0], sizes = [4, 255], strides = [1, 1]} : vector<4x256xf32> to vector<4x255xf32>
    %214 = tpu.concatenate %212, %213 in 1 : vector<4x1xf32>, vector<4x255xf32> -> vector<4x256xf32>
    %cst_76 = arith.constant 0.000000e+00 : f32
    %215 = vector.shape_cast %28 : vector<1x256xi1> to vector<1x256xi1>
    %216 = vector.broadcast %215 : vector<1x256xi1> to vector<4x256xi1>
    %217 = vector.broadcast %cst_76 : f32 to vector<4x256xf32>
    %218 = arith.select %216, %214, %217 : vector<4x256xi1>, vector<4x256xf32>
    %219 = vector.extract_strided_slice %194 {offsets = [0, 1], sizes = [4, 255], strides = [1, 1]} : vector<4x256xf32> to vector<4x255xf32>
    %cst_77 = arith.constant 0.000000e+00 : f32
    %220 = vector.broadcast %cst_77 : f32 to vector<4x1xf32>
    %221 = tpu.concatenate %219, %220 in 1 : vector<4x255xf32>, vector<4x1xf32> -> vector<4x256xf32>
    %cst_78 = arith.constant 0.000000e+00 : f32
    %222 = vector.shape_cast %30 : vector<1x256xi1> to vector<1x256xi1>
    %223 = vector.broadcast %222 : vector<1x256xi1> to vector<4x256xi1>
    %224 = vector.broadcast %cst_78 : f32 to vector<4x256xf32>
    %225 = arith.select %223, %221, %224 : vector<4x256xi1>, vector<4x256xf32>
    %226 = vector.extract_strided_slice %194 {offsets = [0, 15], sizes = [4, 241], strides = [1, 1]} : vector<4x256xf32> to vector<4x241xf32>
    %cst_79 = arith.constant 0.000000e+00 : f32
    %227 = vector.broadcast %cst_79 : f32 to vector<4x15xf32>
    %228 = tpu.concatenate %226, %227 in 1 : vector<4x241xf32>, vector<4x15xf32> -> vector<4x256xf32>
    %cst_80 = arith.constant 0.000000e+00 : f32
    %229 = vector.shape_cast %28 : vector<1x256xi1> to vector<1x256xi1>
    %230 = vector.broadcast %229 : vector<1x256xi1> to vector<4x256xi1>
    %231 = vector.broadcast %cst_80 : f32 to vector<4x256xf32>
    %232 = arith.select %230, %228, %231 : vector<4x256xi1>, vector<4x256xf32>
    %233 = vector.extract_strided_slice %194 {offsets = [0, 16], sizes = [4, 240], strides = [1, 1]} : vector<4x256xf32> to vector<4x240xf32>
    %cst_81 = arith.constant 0.000000e+00 : f32
    %234 = vector.broadcast %cst_81 : f32 to vector<4x16xf32>
    %235 = tpu.concatenate %233, %234 in 1 : vector<4x240xf32>, vector<4x16xf32> -> vector<4x256xf32>
    %236 = vector.extract_strided_slice %194 {offsets = [0, 17], sizes = [4, 239], strides = [1, 1]} : vector<4x256xf32> to vector<4x239xf32>
    %cst_82 = arith.constant 0.000000e+00 : f32
    %237 = vector.broadcast %cst_82 : f32 to vector<4x17xf32>
    %238 = tpu.concatenate %236, %237 in 1 : vector<4x239xf32>, vector<4x17xf32> -> vector<4x256xf32>
    %cst_83 = arith.constant 0.000000e+00 : f32
    %239 = vector.shape_cast %30 : vector<1x256xi1> to vector<1x256xi1>
    %240 = vector.broadcast %239 : vector<1x256xi1> to vector<4x256xi1>
    %241 = vector.broadcast %cst_83 : f32 to vector<4x256xf32>
    %242 = arith.select %240, %238, %241 : vector<4x256xi1>, vector<4x256xf32>
    %243 = tpu.concatenate %201, %204, %211, %218, %194, %225, %232, %235, %242, %8 in 0 : vector<4x256xf32>, vector<4x256xf32>, vector<4x256xf32>, vector<4x256xf32>, vector<4x256xf32>, vector<4x256xf32>, vector<4x256xf32>, vector<4x256xf32>, vector<4x256xf32>, vector<1x256xf32> -> vector<37x256xf32>
    %244 = vector.extract_strided_slice %31 {offsets = [0, 0], sizes = [37, 1], strides = [1, 1]} : vector<37x4xf32> to vector<37x1xf32>
    %245 = vector.broadcast %244 : vector<37x1xf32> to vector<37x256xf32>
    %246 = arith.mulf %245, %243 : vector<37x256xf32>
    %cst_84 = arith.constant dense<0.000000e+00> : vector<256xf32>
    %247 = vector.multi_reduction <add>, %246, %cst_84 [0] : vector<37x256xf32> to vector<256xf32>
    %248 = vector.shape_cast %247 : vector<256xf32> to vector<1x256xf32>
    %cst_85 = arith.constant 0.000000e+00 : f32
    %249 = vector.broadcast %cst_85 : f32 to vector<1x256xf32>
    %250 = arith.maximumf %248, %249 : vector<1x256xf32>
    %251 = vector.extract_strided_slice %31 {offsets = [0, 1], sizes = [37, 1], strides = [1, 1]} : vector<37x4xf32> to vector<37x1xf32>
    %252 = vector.broadcast %251 : vector<37x1xf32> to vector<37x256xf32>
    %253 = arith.mulf %252, %243 : vector<37x256xf32>
    %cst_86 = arith.constant dense<0.000000e+00> : vector<256xf32>
    %254 = vector.multi_reduction <add>, %253, %cst_86 [0] : vector<37x256xf32> to vector<256xf32>
    %255 = vector.shape_cast %254 : vector<256xf32> to vector<1x256xf32>
    %cst_87 = arith.constant 0.000000e+00 : f32
    %256 = vector.broadcast %cst_87 : f32 to vector<1x256xf32>
    %257 = arith.maximumf %255, %256 : vector<1x256xf32>
    %258 = vector.extract_strided_slice %31 {offsets = [0, 2], sizes = [37, 1], strides = [1, 1]} : vector<37x4xf32> to vector<37x1xf32>
    %259 = vector.broadcast %258 : vector<37x1xf32> to vector<37x256xf32>
    %260 = arith.mulf %259, %243 : vector<37x256xf32>
    %cst_88 = arith.constant dense<0.000000e+00> : vector<256xf32>
    %261 = vector.multi_reduction <add>, %260, %cst_88 [0] : vector<37x256xf32> to vector<256xf32>
    %262 = vector.shape_cast %261 : vector<256xf32> to vector<1x256xf32>
    %cst_89 = arith.constant 0.000000e+00 : f32
    %263 = vector.broadcast %cst_89 : f32 to vector<1x256xf32>
    %264 = arith.maximumf %262, %263 : vector<1x256xf32>
    %265 = vector.extract_strided_slice %31 {offsets = [0, 3], sizes = [37, 1], strides = [1, 1]} : vector<37x4xf32> to vector<37x1xf32>
    %266 = vector.broadcast %265 : vector<37x1xf32> to vector<37x256xf32>
    %267 = arith.mulf %266, %243 : vector<37x256xf32>
    %cst_90 = arith.constant dense<0.000000e+00> : vector<256xf32>
    %268 = vector.multi_reduction <add>, %267, %cst_90 [0] : vector<37x256xf32> to vector<256xf32>
    %269 = vector.shape_cast %268 : vector<256xf32> to vector<1x256xf32>
    %cst_91 = arith.constant 0.000000e+00 : f32
    %270 = vector.broadcast %cst_91 : f32 to vector<1x256xf32>
    %271 = arith.maximumf %269, %270 : vector<1x256xf32>
    %272 = tpu.concatenate %250, %257, %264, %271 in 0 : vector<1x256xf32>, vector<1x256xf32>, vector<1x256xf32>, vector<1x256xf32> -> vector<4x256xf32>
    %cst_92 = arith.constant 0.000000e+00 : f32
    %273 = vector.broadcast %cst_92 : f32 to vector<4x17xf32>
    %274 = vector.extract_strided_slice %272 {offsets = [0, 0], sizes = [4, 239], strides = [1, 1]} : vector<4x256xf32> to vector<4x239xf32>
    %275 = tpu.concatenate %273, %274 in 1 : vector<4x17xf32>, vector<4x239xf32> -> vector<4x256xf32>
    %cst_93 = arith.constant 0.000000e+00 : f32
    %276 = vector.shape_cast %28 : vector<1x256xi1> to vector<1x256xi1>
    %277 = vector.broadcast %276 : vector<1x256xi1> to vector<4x256xi1>
    %278 = vector.broadcast %cst_93 : f32 to vector<4x256xf32>
    %279 = arith.select %277, %275, %278 : vector<4x256xi1>, vector<4x256xf32>
    %cst_94 = arith.constant 0.000000e+00 : f32
    %280 = vector.broadcast %cst_94 : f32 to vector<4x16xf32>
    %281 = vector.extract_strided_slice %272 {offsets = [0, 0], sizes = [4, 240], strides = [1, 1]} : vector<4x256xf32> to vector<4x240xf32>
    %282 = tpu.concatenate %280, %281 in 1 : vector<4x16xf32>, vector<4x240xf32> -> vector<4x256xf32>
    %cst_95 = arith.constant 0.000000e+00 : f32
    %283 = vector.broadcast %cst_95 : f32 to vector<4x15xf32>
    %284 = vector.extract_strided_slice %272 {offsets = [0, 0], sizes = [4, 241], strides = [1, 1]} : vector<4x256xf32> to vector<4x241xf32>
    %285 = tpu.concatenate %283, %284 in 1 : vector<4x15xf32>, vector<4x241xf32> -> vector<4x256xf32>
    %cst_96 = arith.constant 0.000000e+00 : f32
    %286 = vector.shape_cast %30 : vector<1x256xi1> to vector<1x256xi1>
    %287 = vector.broadcast %286 : vector<1x256xi1> to vector<4x256xi1>
    %288 = vector.broadcast %cst_96 : f32 to vector<4x256xf32>
    %289 = arith.select %287, %285, %288 : vector<4x256xi1>, vector<4x256xf32>
    %cst_97 = arith.constant 0.000000e+00 : f32
    %290 = vector.broadcast %cst_97 : f32 to vector<4x1xf32>
    %291 = vector.extract_strided_slice %272 {offsets = [0, 0], sizes = [4, 255], strides = [1, 1]} : vector<4x256xf32> to vector<4x255xf32>
    %292 = tpu.concatenate %290, %291 in 1 : vector<4x1xf32>, vector<4x255xf32> -> vector<4x256xf32>
    %cst_98 = arith.constant 0.000000e+00 : f32
    %293 = vector.shape_cast %28 : vector<1x256xi1> to vector<1x256xi1>
    %294 = vector.broadcast %293 : vector<1x256xi1> to vector<4x256xi1>
    %295 = vector.broadcast %cst_98 : f32 to vector<4x256xf32>
    %296 = arith.select %294, %292, %295 : vector<4x256xi1>, vector<4x256xf32>
    %297 = vector.extract_strided_slice %272 {offsets = [0, 1], sizes = [4, 255], strides = [1, 1]} : vector<4x256xf32> to vector<4x255xf32>
    %cst_99 = arith.constant 0.000000e+00 : f32
    %298 = vector.broadcast %cst_99 : f32 to vector<4x1xf32>
    %299 = tpu.concatenate %297, %298 in 1 : vector<4x255xf32>, vector<4x1xf32> -> vector<4x256xf32>
    %cst_100 = arith.constant 0.000000e+00 : f32
    %300 = vector.shape_cast %30 : vector<1x256xi1> to vector<1x256xi1>
    %301 = vector.broadcast %300 : vector<1x256xi1> to vector<4x256xi1>
    %302 = vector.broadcast %cst_100 : f32 to vector<4x256xf32>
    %303 = arith.select %301, %299, %302 : vector<4x256xi1>, vector<4x256xf32>
    %304 = vector.extract_strided_slice %272 {offsets = [0, 15], sizes = [4, 241], strides = [1, 1]} : vector<4x256xf32> to vector<4x241xf32>
    %cst_101 = arith.constant 0.000000e+00 : f32
    %305 = vector.broadcast %cst_101 : f32 to vector<4x15xf32>
    %306 = tpu.concatenate %304, %305 in 1 : vector<4x241xf32>, vector<4x15xf32> -> vector<4x256xf32>
    %cst_102 = arith.constant 0.000000e+00 : f32
    %307 = vector.shape_cast %28 : vector<1x256xi1> to vector<1x256xi1>
    %308 = vector.broadcast %307 : vector<1x256xi1> to vector<4x256xi1>
    %309 = vector.broadcast %cst_102 : f32 to vector<4x256xf32>
    %310 = arith.select %308, %306, %309 : vector<4x256xi1>, vector<4x256xf32>
    %311 = vector.extract_strided_slice %272 {offsets = [0, 16], sizes = [4, 240], strides = [1, 1]} : vector<4x256xf32> to vector<4x240xf32>
    %cst_103 = arith.constant 0.000000e+00 : f32
    %312 = vector.broadcast %cst_103 : f32 to vector<4x16xf32>
    %313 = tpu.concatenate %311, %312 in 1 : vector<4x240xf32>, vector<4x16xf32> -> vector<4x256xf32>
    %314 = vector.extract_strided_slice %272 {offsets = [0, 17], sizes = [4, 239], strides = [1, 1]} : vector<4x256xf32> to vector<4x239xf32>
    %cst_104 = arith.constant 0.000000e+00 : f32
    %315 = vector.broadcast %cst_104 : f32 to vector<4x17xf32>
    %316 = tpu.concatenate %314, %315 in 1 : vector<4x239xf32>, vector<4x17xf32> -> vector<4x256xf32>
    %cst_105 = arith.constant 0.000000e+00 : f32
    %317 = vector.shape_cast %30 : vector<1x256xi1> to vector<1x256xi1>
    %318 = vector.broadcast %317 : vector<1x256xi1> to vector<4x256xi1>
    %319 = vector.broadcast %cst_105 : f32 to vector<4x256xf32>
    %320 = arith.select %318, %316, %319 : vector<4x256xi1>, vector<4x256xf32>
    %321 = tpu.concatenate %279, %282, %289, %296, %272, %303, %310, %313, %320, %8 in 0 : vector<4x256xf32>, vector<4x256xf32>, vector<4x256xf32>, vector<4x256xf32>, vector<4x256xf32>, vector<4x256xf32>, vector<4x256xf32>, vector<4x256xf32>, vector<4x256xf32>, vector<1x256xf32> -> vector<37x256xf32>
    %322 = vector.broadcast %32 : vector<37x1xf32> to vector<37x256xf32>
    %323 = arith.mulf %322, %321 : vector<37x256xf32>
    %cst_106 = arith.constant dense<0.000000e+00> : vector<256xf32>
    %324 = vector.multi_reduction <add>, %323, %cst_106 [0] : vector<37x256xf32> to vector<256xf32>
    %325 = vector.shape_cast %324 : vector<256xf32> to vector<1x256xf32>
    %326 = arith.negf %325 : vector<1x256xf32>
    %327 = math.exp %326 : vector<1x256xf32>
    %cst_107 = arith.constant 1.000000e+00 : f32
    %328 = vector.broadcast %cst_107 : f32 to vector<1x256xf32>
    %329 = arith.addf %328, %327 : vector<1x256xf32>
    %330 = arith.divf %328, %329 : vector<1x256xf32>
    %cst_108 = arith.constant dense<0.000000e+00> : vector<4xf32>
    %331 = vector.multi_reduction <add>, %1, %cst_108 [1] : vector<4x256xf32> to vector<4xf32>
    %332 = vector.shape_cast %331 : vector<4xf32> to vector<4x1xf32>
    %cst_109 = arith.constant 2.560000e+02 : f32
    %333 = vector.broadcast %cst_109 : f32 to vector<4x1xf32>
    %334 = arith.divf %332, %333 : vector<4x1xf32>
    %cst_110 = arith.constant dense<0xFF800000> : vector<4xf32>
    %335 = vector.multi_reduction <maximumf>, %1, %cst_110 [1] : vector<4x256xf32> to vector<4xf32>
    %336 = vector.shape_cast %335 : vector<4xf32> to vector<4x1xf32>
    %cst_111 = arith.constant dense<0.000000e+00> : vector<4xf32>
    %337 = vector.multi_reduction <add>, %3, %cst_111 [1] : vector<4x256xf32> to vector<4xf32>
    %338 = vector.shape_cast %337 : vector<4xf32> to vector<4x1xf32>
    %cst_112 = arith.constant 2.560000e+02 : f32
    %339 = vector.broadcast %cst_112 : f32 to vector<4x1xf32>
    %340 = arith.divf %338, %339 : vector<4x1xf32>
    %cst_113 = arith.constant dense<0xFF800000> : vector<4xf32>
    %341 = vector.multi_reduction <maximumf>, %3, %cst_113 [1] : vector<4x256xf32> to vector<4xf32>
    %342 = vector.shape_cast %341 : vector<4xf32> to vector<4x1xf32>
    %cst_114 = arith.constant dense<0.000000e+00> : vector<4xf32>
    %343 = vector.multi_reduction <add>, %5, %cst_114 [1] : vector<4x256xf32> to vector<4xf32>
    %344 = vector.shape_cast %343 : vector<4xf32> to vector<4x1xf32>
    %cst_115 = arith.constant 2.560000e+02 : f32
    %345 = vector.broadcast %cst_115 : f32 to vector<4x1xf32>
    %346 = arith.divf %344, %345 : vector<4x1xf32>
    %cst_116 = arith.constant dense<0xFF800000> : vector<4xf32>
    %347 = vector.multi_reduction <maximumf>, %5, %cst_116 [1] : vector<4x256xf32> to vector<4xf32>
    %348 = vector.shape_cast %347 : vector<4xf32> to vector<4x1xf32>
    %cst_117 = arith.constant dense<0.000000e+00> : vector<4xf32>
    %349 = vector.multi_reduction <add>, %7, %cst_117 [1] : vector<4x256xf32> to vector<4xf32>
    %350 = vector.shape_cast %349 : vector<4xf32> to vector<4x1xf32>
    %cst_118 = arith.constant 2.560000e+02 : f32
    %351 = vector.broadcast %cst_118 : f32 to vector<4x1xf32>
    %352 = arith.divf %350, %351 : vector<4x1xf32>
    %cst_119 = arith.constant dense<0xFF800000> : vector<4xf32>
    %353 = vector.multi_reduction <maximumf>, %7, %cst_119 [1] : vector<4x256xf32> to vector<4xf32>
    %354 = vector.shape_cast %353 : vector<4xf32> to vector<4x1xf32>
    %c0_120 = arith.constant 0 : index
    %c0_121 = arith.constant 0 : index
    %355 = vector.load %arg7[%c0_120, %c0_121] : memref<17x4xf32, #tpu.memory_space<vmem>>, vector<17x4xf32>
    %c0_122 = arith.constant 0 : index
    %c0_123 = arith.constant 0 : index
    %356 = vector.load %arg8[%c0_122, %c0_123] : memref<4x5xf32, #tpu.memory_space<vmem>>, vector<4x5xf32>
    %357 = tpu.concatenate %334, %336, %346, %348, %9 in 0 : vector<4x1xf32>, vector<4x1xf32>, vector<4x1xf32>, vector<4x1xf32>, vector<1x1xf32> -> vector<17x1xf32>
    %358 = vector.broadcast %357 : vector<17x1xf32> to vector<17x4xf32>
    %359 = arith.mulf %358, %355 : vector<17x4xf32>
    %cst_124 = arith.constant dense<0.000000e+00> : vector<4xf32>
    %360 = vector.multi_reduction <add>, %359, %cst_124 [0] : vector<17x4xf32> to vector<4xf32>
    %361 = vector.shape_cast %360 : vector<4xf32> to vector<1x4xf32>
    %cst_125 = arith.constant 0.000000e+00 : f32
    %362 = vector.broadcast %cst_125 : f32 to vector<1x4xf32>
    %363 = arith.maximumf %361, %362 : vector<1x4xf32>
    %364 = tpu.concatenate %363, %9 in 1 : vector<1x4xf32>, vector<1x1xf32> -> vector<1x5xf32>
    %365 = vector.broadcast %364 : vector<1x5xf32> to vector<4x5xf32>
    %366 = arith.mulf %365, %356 : vector<4x5xf32>
    %cst_126 = arith.constant dense<0.000000e+00> : vector<4xf32>
    %367 = vector.multi_reduction <add>, %366, %cst_126 [1] : vector<4x5xf32> to vector<4xf32>
    %368 = vector.shape_cast %367 : vector<4xf32> to vector<4x1xf32>
    %369 = arith.negf %368 : vector<4x1xf32>
    %370 = math.exp %369 : vector<4x1xf32>
    %cst_127 = arith.constant 1.000000e+00 : f32
    %371 = vector.broadcast %cst_127 : f32 to vector<4x1xf32>
    %372 = arith.addf %371, %370 : vector<4x1xf32>
    %373 = arith.divf %371, %372 : vector<4x1xf32>
    %374 = tpu.concatenate %340, %342, %352, %354, %9 in 0 : vector<4x1xf32>, vector<4x1xf32>, vector<4x1xf32>, vector<4x1xf32>, vector<1x1xf32> -> vector<17x1xf32>
    %375 = vector.broadcast %374 : vector<17x1xf32> to vector<17x4xf32>
    %376 = arith.mulf %375, %355 : vector<17x4xf32>
    %cst_128 = arith.constant dense<0.000000e+00> : vector<4xf32>
    %377 = vector.multi_reduction <add>, %376, %cst_128 [0] : vector<17x4xf32> to vector<4xf32>
    %378 = vector.shape_cast %377 : vector<4xf32> to vector<1x4xf32>
    %cst_129 = arith.constant 0.000000e+00 : f32
    %379 = vector.broadcast %cst_129 : f32 to vector<1x4xf32>
    %380 = arith.maximumf %378, %379 : vector<1x4xf32>
    %381 = tpu.concatenate %380, %9 in 1 : vector<1x4xf32>, vector<1x1xf32> -> vector<1x5xf32>
    %382 = vector.broadcast %381 : vector<1x5xf32> to vector<4x5xf32>
    %383 = arith.mulf %382, %356 : vector<4x5xf32>
    %cst_130 = arith.constant dense<0.000000e+00> : vector<4xf32>
    %384 = vector.multi_reduction <add>, %383, %cst_130 [1] : vector<4x5xf32> to vector<4xf32>
    %385 = vector.shape_cast %384 : vector<4xf32> to vector<4x1xf32>
    %386 = arith.negf %385 : vector<4x1xf32>
    %387 = math.exp %386 : vector<4x1xf32>
    %cst_131 = arith.constant 1.000000e+00 : f32
    %388 = vector.broadcast %cst_131 : f32 to vector<4x1xf32>
    %389 = arith.addf %388, %387 : vector<4x1xf32>
    %390 = arith.divf %388, %389 : vector<4x1xf32>
    %391 = vector.broadcast %193 : vector<1x256xf32> to vector<4x256xf32>
    %392 = arith.mulf %1, %391 : vector<4x256xf32>
    %393 = vector.broadcast %373 : vector<4x1xf32> to vector<4x256xf32>
    %394 = arith.mulf %392, %393 : vector<4x256xf32>
    %c0_132 = arith.constant 0 : index
    %c0_133 = arith.constant 0 : index
    %c0_134 = arith.constant 0 : index
    %395 = vector.load %arg9[%c0_132, %c0_133, %c0_134] : memref<1x4x256xf32, #tpu.memory_space<vmem>>, vector<1x4x256xf32>
    %396 = vector.shape_cast %395 : vector<1x4x256xf32> to vector<4x256xf32>
    %397 = vector.shape_cast %394 : vector<4x256xf32> to vector<1x4x256xf32>
    tpu.vector_store %arg9[%c0_132, %c0_133, %c0_134], %397 {strides = array<i32>} : memref<1x4x256xf32, #tpu.memory_space<vmem>>, vector<1x4x256xf32>,
    %398 = vector.broadcast %193 : vector<1x256xf32> to vector<4x256xf32>
    %399 = arith.mulf %3, %398 : vector<4x256xf32>
    %400 = vector.broadcast %390 : vector<4x1xf32> to vector<4x256xf32>
    %401 = arith.mulf %399, %400 : vector<4x256xf32>
    %c0_135 = arith.constant 0 : index
    %c0_136 = arith.constant 0 : index
    %c0_137 = arith.constant 0 : index
    %402 = vector.load %arg10[%c0_135, %c0_136, %c0_137] : memref<1x4x256xf32, #tpu.memory_space<vmem>>, vector<1x4x256xf32>
    %403 = vector.shape_cast %402 : vector<1x4x256xf32> to vector<4x256xf32>
    %404 = vector.shape_cast %401 : vector<4x256xf32> to vector<1x4x256xf32>
    tpu.vector_store %arg10[%c0_135, %c0_136, %c0_137], %404 {strides = array<i32>} : memref<1x4x256xf32, #tpu.memory_space<vmem>>, vector<1x4x256xf32>,
    %405 = vector.broadcast %330 : vector<1x256xf32> to vector<4x256xf32>
    %406 = arith.mulf %5, %405 : vector<4x256xf32>
    %407 = vector.broadcast %373 : vector<4x1xf32> to vector<4x256xf32>
    %408 = arith.mulf %406, %407 : vector<4x256xf32>
    %c0_138 = arith.constant 0 : index
    %c0_139 = arith.constant 0 : index
    %c0_140 = arith.constant 0 : index
    %409 = vector.load %arg11[%c0_138, %c0_139, %c0_140] : memref<1x4x256xf32, #tpu.memory_space<vmem>>, vector<1x4x256xf32>
    %410 = vector.shape_cast %409 : vector<1x4x256xf32> to vector<4x256xf32>
    %411 = vector.shape_cast %408 : vector<4x256xf32> to vector<1x4x256xf32>
    tpu.vector_store %arg11[%c0_138, %c0_139, %c0_140], %411 {strides = array<i32>} : memref<1x4x256xf32, #tpu.memory_space<vmem>>, vector<1x4x256xf32>,
    %412 = vector.broadcast %330 : vector<1x256xf32> to vector<4x256xf32>
    %413 = arith.mulf %7, %412 : vector<4x256xf32>
    %414 = vector.broadcast %390 : vector<4x1xf32> to vector<4x256xf32>
    %415 = arith.mulf %413, %414 : vector<4x256xf32>
    %c0_141 = arith.constant 0 : index
    %c0_142 = arith.constant 0 : index
    %c0_143 = arith.constant 0 : index
    %416 = vector.load %arg12[%c0_141, %c0_142, %c0_143] : memref<1x4x256xf32, #tpu.memory_space<vmem>>, vector<1x4x256xf32>
    %417 = vector.shape_cast %416 : vector<1x4x256xf32> to vector<4x256xf32>
    %418 = vector.shape_cast %415 : vector<4x256xf32> to vector<1x4x256xf32>
    tpu.vector_store %arg12[%c0_141, %c0_142, %c0_143], %418 {strides = array<i32>} : memref<1x4x256xf32, #tpu.memory_space<vmem>>, vector<1x4x256xf32>,
    return
  }
  func.func @transform_0(%arg0: i32) -> (i32, i32, i32) {
    %c0_i32 = arith.constant 0 : i32
    %c0_i32_0 = arith.constant 0 : i32
    %c0_i32_1 = arith.constant 0 : i32
    return %arg0, %c0_i32, %c0_i32_0 : i32, i32, i32
  }
  func.func @transform_1(%arg0: i32) -> (i32, i32, i32) {
    %c0_i32 = arith.constant 0 : i32
    %c0_i32_0 = arith.constant 0 : i32
    %c0_i32_1 = arith.constant 0 : i32
    return %arg0, %c0_i32, %c0_i32_0 : i32, i32, i32
  }
  func.func @transform_2(%arg0: i32) -> (i32, i32, i32) {
    %c0_i32 = arith.constant 0 : i32
    %c0_i32_0 = arith.constant 0 : i32
    %c0_i32_1 = arith.constant 0 : i32
    return %arg0, %c0_i32, %c0_i32_0 : i32, i32, i32
  }
  func.func @transform_3(%arg0: i32) -> (i32, i32, i32) {
    %c0_i32 = arith.constant 0 : i32
    %c0_i32_0 = arith.constant 0 : i32
    %c0_i32_1 = arith.constant 0 : i32
    return %arg0, %c0_i32, %c0_i32_0 : i32, i32, i32
  }
  func.func @transform_4(%arg0: i32) -> (i32, i32) {
    %c0_i32 = arith.constant 0 : i32
    %c0_i32_0 = arith.constant 0 : i32
    %c0_i32_1 = arith.constant 0 : i32
    return %c0_i32, %c0_i32_0 : i32, i32
  }
  func.func @transform_5(%arg0: i32) -> (i32, i32) {
    %c0_i32 = arith.constant 0 : i32
    %c0_i32_0 = arith.constant 0 : i32
    %c0_i32_1 = arith.constant 0 : i32
    return %c0_i32, %c0_i32_0 : i32, i32
  }
  func.func @transform_6(%arg0: i32) -> (i32, i32) {
    %c0_i32 = arith.constant 0 : i32
    %c0_i32_0 = arith.constant 0 : i32
    %c0_i32_1 = arith.constant 0 : i32
    return %c0_i32, %c0_i32_0 : i32, i32
  }
  func.func @transform_7(%arg0: i32) -> (i32, i32) {
    %c0_i32 = arith.constant 0 : i32
    %c0_i32_0 = arith.constant 0 : i32
    %c0_i32_1 = arith.constant 0 : i32
    return %c0_i32, %c0_i32_0 : i32, i32
  }
  func.func @transform_8(%arg0: i32) -> (i32, i32, i32) {
    %c0_i32 = arith.constant 0 : i32
    %c0_i32_0 = arith.constant 0 : i32
    %c0_i32_1 = arith.constant 0 : i32
    return %arg0, %c0_i32, %c0_i32_0 : i32, i32, i32
  }
  func.func @transform_9(%arg0: i32) -> (i32, i32, i32) {
    %c0_i32 = arith.constant 0 : i32
    %c0_i32_0 = arith.constant 0 : i32
    %c0_i32_1 = arith.constant 0 : i32
    return %arg0, %c0_i32, %c0_i32_0 : i32, i32, i32
  }
  func.func @transform_10(%arg0: i32) -> (i32, i32, i32) {
    %c0_i32 = arith.constant 0 : i32
    %c0_i32_0 = arith.constant 0 : i32
    %c0_i32_1 = arith.constant 0 : i32
    return %arg0, %c0_i32, %c0_i32_0 : i32, i32, i32
  }
  func.func @transform_11(%arg0: i32) -> (i32, i32, i32) {
    %c0_i32 = arith.constant 0 : i32
    %c0_i32_0 = arith.constant 0 : i32
    %c0_i32_1 = arith.constant 0 : i32
    return %arg0, %c0_i32, %c0_i32_0 : i32, i32, i32
  }
}

</mosaic_0001>

<bundles_post_ra>
// kernel: tpu_custom_call.1
= control target key start
LH: loop header
LB: loop body
LE: loop exit
PB: predicated region body
PF: predicated region fallthrough
CT: control target
= control target key end

     0   :  { %s4315_s0 = inlined_call_operand.hbm [shape: f32[2,4,256], index: 0, kind: input, shape index: {}]   ;;  %s4316_s1 = inlined_call_operand.hbm [shape: f32[2,4,256], index: 1, kind: input, shape index: {}]   ;;  %s4317_s2 = inlined_call_operand.hbm [shape: f32[2,4,256], index: 2, kind: input, shape index: {}]   ;;  %s4318_s3 = inlined_call_operand.hbm [shape: f32[2,4,256], index: 3, kind: input, shape index: {}]   ;;  %s4319_s4 = inlined_call_operand.hbm [shape: f32[37,4], index: 4, kind: input, shape index: {}]   ;;  %s4320_s5 = inlined_call_operand.hbm [shape: f32[37,1], index: 5, kind: input, shape index: {}]   ;;  %s4321_s6 = inlined_call_operand.hbm [shape: f32[17,4], index: 6, kind: input, shape index: {}]   ;;  %s4322_s7 = inlined_call_operand.hbm [shape: f32[4,5], index: 7, kind: input, shape index: {}]   ;;  %s4323_s8 = inlined_call_operand.hbm [shape: f32[2,4,256], index: 8, kind: output, shape index: {0}]   ;;  %s4324_s9 = inlined_call_operand.hbm [shape: f32[2,4,256], index: 9, kind: output, shape index: {1}]   ;;  %s4325_s10 = inlined_call_operand.hbm [shape: f32[2,4,256], index: 10, kind: output, shape index: {2}]   ;;  %s4326_s11 = inlined_call_operand.hbm [shape: f32[2,4,256], index: 11, kind: output, shape index: {3}]  }
   0x1   :  { %4367 = sst [smem:[#allocation42_spill]] %s4315_s0 }
   0x2   :  { %4368 = sst [smem:[#allocation43_spill]] %s4316_s1 }
   0x3   :  { %4369 = sst [smem:[#allocation44_spill]] %s4319_s4 }
   0x4   :  { %4370 = sst [smem:[#allocation45_spill]] %s4320_s5 }
   0x5   :  { %4371 = sst [smem:[#allocation46_spill]] %s4323_s8 }
   0x6   :  { %4372 = sst [smem:[#allocation47_spill]] %s4324_s9 }
   0x7   :  { %4373 = sst [smem:[#allocation48_spill]] %s4325_s10 }
   0x8   :  { %4374 = sst [smem:[#allocation49_spill]] %s4326_s11 }
   0x9   :  { %17 = vsyncpa [#allocation3], 0 }
   0xa   :  { %19 = vsyncpa [#allocation3 + $0x1], 0 }
   0xb   :  { %20 = vsyncpa [#allocation6], 0 }
   0xc   :  { %22 = vsyncpa [#allocation6 + $0x1], 0 }
   0xd   :  { %23 = vsyncpa [#allocation9], 0 }
   0xe   :  { %25 = vsyncpa [#allocation9 + $0x1], 0 }
   0xf   :  { %26 = vsyncpa [#allocation12], 0 }
  0x10   :  { %27 = vsyncpa [#allocation15], 0 }
  0x11   :  { %28 = vsyncpa [#allocation4], 0 }
  0x12   :  { %30 = vsyncpa [#allocation4 + $0x1], 0 }
  0x13   :  { %31 = vsyncpa [#allocation18], 0 }
  0x14   :  { %33 = vsyncpa [#allocation18 + $0x1], 0 }
  0x15   :  { %34 = vsyncpa [#allocation21], 0 }
  0x16   :  { %36 = vsyncpa [#allocation21 + $0x1], 0  ;;  %s2969_s17 = smov 0   ;;  %s2971_s18 = smov 0  }
  0x17   :  { %s2973_s19 = smov 0   ;;  %s2975_s20 = smov 0  }
  0x18 LB: > { %4375 = sst [smem:[#allocation31_spill]] %s2868_s17  ;;  %s2990_s21 = sadd.s32 4294967295, %s2880_s20   ;;  %s2880_s20 = sphi %s2975_s20, %s4455_s20   ;;  %s2876_s19 = sphi %s2973_s19, %s4459_s19   ;;  %s2872_s18 = sphi %s2971_s18, %s4458_s18   ;;  %s2868_s17 = sphi %s2969_s17, %s4457_s17  }
  0x19   : > { %s4327_s22 = sadd.s32 4294967294, %s2880_s20   ;;  %p62_p0 = scmp.ne.s32.totalorder %s2872_s18, %s2868_s17 }
  0x1a   : > { %p4328_p1 = scmp.eq.s32.totalorder %s2990_s21, 0  ;;  %p254_p3 = scmp.eq.s32.totalorder %s4327_s22, 1 }
  0x1b   : > { %p2236_p5 = scmp.ge.s32.totalorder %s2880_s20, 1  ;;  %p339_p7 = scmp.lt.s32.totalorder %s2880_s20, 3 }
  0x1c   : > { %p3001_p4 = por %p4328_p1, %p62_p0  ;;  %p3006_p6 = por %p254_p3, %p62_p0 }
  0x1d   : > { %p3011_p8 = pnand %p2236_p5, %p339_p7  ;;  %s2882_s26 = smov [#allocation10]  }
  0x1e   : > { %s4376_s23 = scalar_select %p3001_p4, 1, 0 }
  0x1f   : > { %s4377_s24 = scalar_select %p3006_p6, 1, 0 }
  0x20   : > { %s4379_s25 = scalar_select %p3011_p8, 1, 0 }
  0x21   : > { %4378 = sst [smem:[#allocation32_spill]] %s4377_s24  ;;  %s351_s27 = sshll.u32 %s2882_s26, 4  ;;  %s3015_s27 = int_to_ptr.vmem [resolvable:$true] %s351_s27 }
  0x22   : > { %p2327_p9 = pneg %p3011_p8  ;;  %s2883_s29 = smov [#allocation11]  }
  0x23   : > { %s364_s30 = sshll.u32 %s2883_s29, 4  ;;  %s4381_s4 = sld [smem:[#allocation44_spill]]  ;;  %s3026_s30 = int_to_ptr.vmem [resolvable:$true] %s364_s30 }
  0x24   : > { %p3022_p11 = pnand %p2327_p9, %p4328_p1 }
  0x26   : > { %s4380_s28 = scalar_select %p3022_p11, 1, 0 }
  0x27   : > { %p3036_p13 = pneg %p3022_p11 }
  0x29   : > { %s2470_s14 = scalar_lea.hbm %s4381_s4, 640 }
  0x2a   : > { %p2471_p12 = scmp.ne.s32.totalorder %s4381_s4, %s2470_s14  ;;  %p2477_p5 = scmp.lt.u32.totalorder %s2470_s14, %s4381_s4 }
  0x2b   : > { %s4382_s26 = scalar_select %p3036_p13, 1, 0 }
  0x2c   : > { %p2473_p0 = pnand %p3036_p13, %p2471_p12 }
  0x2e   : > { %p2474_p3 = pneg %p2473_p0 }
  0x30   : > { %p2479_p7 = pnand %p2477_p5, %p2474_p3 }
  0x32   : > { %2482 = shalt.err (!%p2479_p7)
}
  0x33   : > { %s2483_s12 = scalar_lea.vmem %s3015_s27, 640  ;;  %p2491_p2 = scmp.lt.s32.totalorder %s3015_s27, %s3015_s27 }
  0x34   : > { %p2484_p9 = scmp.ne.s32.totalorder %s3015_s27, %s2483_s12  ;;  %p2492_p6 = scmp.lt.s32.totalorder %s2483_s12, %s2483_s12 }
  0x36   : > { %p2486_p10 = pnand %p2484_p9, %p3036_p13  ;;  %p2493_p12 = por %p2492_p6, %p2491_p2 }
  0x38   : > { %p2487_p1 = pneg %p2486_p10 }
  0x3a   : > { %p2494_p0 = pnand %p2493_p12, %p2487_p1 }
  0x3c   : > { %2497 = shalt.err (!%p2494_p0)
}
  0x3d   : > { %s4334_s13 = smov 128   ;;  %s4335_s22 = smov 8  }
  0x3e   : > { %2330 = dma.hbm_to_vmem [thread:$0]  (!%p3022_p11), %s4381_s4, 640, %s3015_s27, [#allocation9], %s4334_s13, %s4334_s13, %s4335_s22  }
  0x3f   : > { %s4383_s5 = sld [smem:[#allocation45_spill]] }
  0x45   : > { %s2498_s12 = scalar_lea.hbm %s4383_s5, 640 }
  0x46   : > { %p2499_p1 = scmp.ne.s32.totalorder %s4383_s5, %s2498_s12  ;;  %p2505_p10 = scmp.lt.u32.totalorder %s2498_s12, %s4383_s5 }
  0x48   : > { %p2501_p2 = pnand %p2499_p1, %p3036_p13 }
  0x4a   : > { %p2502_p6 = pneg %p2501_p2 }
  0x4c   : > { %p2507_p3 = pnand %p2505_p10, %p2502_p6 }
  0x4e   : > { %2510 = shalt.err (!%p2507_p3)
}
  0x4f   : > { %s2511_s27 = scalar_lea.vmem %s3026_s30, 640  ;;  %p2519_p12 = scmp.lt.s32.totalorder %s3026_s30, %s3026_s30 }
  0x50   : > { %p2512_p5 = scmp.ne.s32.totalorder %s3026_s30, %s2511_s27  ;;  %p2520_p0 = scmp.lt.s32.totalorder %s2511_s27, %s2511_s27 }
  0x52   : > { %p2514_p7 = pnand %p2512_p5, %p3036_p13  ;;  %p2521_p1 = por %p2520_p0, %p2519_p12 }
  0x54   : > { %p2515_p9 = pneg %p2514_p7 }
  0x56   : > { %p2522_p2 = pnand %p2521_p1, %p2515_p9 }
  0x58   : > { %2525 = shalt.err (!%p2522_p2)
}
  0x59   : > { %2333 = dma.hbm_to_vmem [thread:$0]  (!%p3022_p11), %s4383_s5, 640, %s3026_s30, [#allocation12], %s4334_s13, %s4334_s13, %s4335_s22  }
  0x5a   : > { %s3087_s17 = sadd.s32 1, %s2880_s20   ;;  %s49_s24 = sadd.s32 1, %s2876_s19 }
  0x5b   : > { %4384 = sst [smem:[#allocation33_spill]] %s3087_s17  ;;  %s46_s14 = ssub.s32 %s2880_s20, %s3087_s17 }
  0x5c   : > { %p56_p6 = scmp.ne.s32.totalorder %s2876_s19, %s2872_s18  ;;  %p47_p10 = scmp.eq.s32.totalorder %s46_s14, 0 }
  0x5d   : > { %p57_p3 = scmp.eq.s32.totalorder %s2880_s20, 0  ;;  %p4385_p5 = scmp.eq.s32.totalorder %s2990_s21, 1 }
  0x5e   : > { %p2370_p9 = scmp.lt.s32.totalorder %s2880_s20, 2  ;;  %s4333_s29 = sand.u32 1, %s2876_s19  }
  0x5f   : > { %p3097_p7 = por %p4385_p5, %p56_p6  ;;  %p58_p12 = por %p57_p3, %p56_p6 }
  0x60   : > { %s3103_s16 = scalar_select %p47_p10, %s2876_s19, %s49_s24  }
  0x61   : > { %s4386_s15 = scalar_select %p3097_p7, 1, 0 }
  0x62   : > { %4388 = sst [smem:[#allocation35_spill]] %s3103_s16  ;;  %s3108_s30 = sshll.u32 %s4333_s29, 3 }
  0x63   : > { %4387 = sst [smem:[#allocation34_spill]] %s4386_s15  ;;  %s3111_s12 = sshll.u32 %s2880_s20, 7 }
  0x64   : > { %p3113_p0 = pnand %p2370_p9, %p58_p12  ;;  %s4340_s10 = sand.u32 1, %s2880_s20  }
  0x65   : > { %s4390_s1 = sld [smem:[#allocation43_spill]]  ;;  %s425_s29 = scalar_lea.vmem [#allocation5], %s3108_s30 }
  0x66   : > { %s4389_s27 = scalar_select %p3113_p0, 1, 0 }
  0x67   : > { %s433_s13 = sshll.u32 %s425_s29, 4  ;;  %s3129_s22 = scalar_lea.sflag [#allocation6], %s4340_s10  ;;  %s3125_s13 = int_to_ptr.vmem [resolvable:$true] %s433_s13 }
  0x68   : > { %p3135_p2 = pneg %p3113_p0 }
  0x6a   : > { %s4391_s5 = scalar_select %p3135_p2, 1, 0 }
  0x6b   : > { %s3122_s24 = scalar_lea.hbm %s4390_s1, %s3111_s12  ;;  %s2531_s29 = scalar_lea.hbm %s4390_s1, 256 }
  0x6c   : > { %s2526_s4 = scalar_lea.hbm %s3122_s24, 128  ;;  %p2532_p3 = scmp.lt.u32.totalorder %s3122_s24, %s4390_s1 }
  0x6d   : > { %p2527_p1 = scmp.ne.s32.totalorder %s3122_s24, %s2526_s4  ;;  %p2533_p5 = scmp.lt.u32.totalorder %s2531_s29, %s2526_s4 }
  0x6e   : > { %p2535_p12 = scmp.lt.u32.totalorder %s2526_s4, %s3122_s24 }
  0x6f   : > { %p2529_p6 = pnand %p3135_p2, %p2527_p1  ;;  %p2534_p9 = por %p2533_p5, %p2532_p3 }
  0x71   : > { %p2530_p10 = pneg %p2529_p6  ;;  %p2536_p7 = por %p2535_p12, %p2534_p9 }
  0x73   : > { %p2537_p4 = pnand %p2536_p7, %p2530_p10 }
  0x75   : > { %2540 = shalt.err (!%p2537_p4)
}
  0x76   : > { %s2541_s10 = scalar_lea.vmem %s3125_s13, 128  ;;  %s2886_s11 = smov [#allocation5]  }
  0x77   : > { %p2542_p1 = scmp.ne.s32.totalorder %s3125_s13, %s2541_s10  ;;  %s2546_s14 = sshll.u32 %s2886_s11, 4  ;;  %s2547_s14 = int_to_ptr.vmem [resolvable:$false] %s2546_s14 }
  0x78   : > { %s2548_s17 = scalar_lea.vmem %s2547_s14, 256  ;;  %p2549_p11 = scmp.lt.s32.totalorder %s3125_s13, %s2547_s14 }
  0x79   : > { %p2544_p6 = pnand %p2542_p1, %p3135_p2  ;;  %p2550_p13 = scmp.lt.s32.totalorder %s2548_s17, %s2541_s10 }
  0x7b   : > { %p2545_p8 = pneg %p2544_p6  ;;  %p2551_p3 = por %p2550_p13, %p2549_p11 }
  0x7d   : > { %p2552_p5 = pnand %p2551_p3, %p2545_p8 }
  0x7f   : > { %2555 = shalt.err (!%p2552_p5)
}
  0x80   : > { %2346 = dma.hbm_to_vmem [thread:$0]  (!%p3113_p0), %s3122_s24, 128, %s3125_s13, %s3129_s22  }
  0x81   : > { %s2887_s4 = smov [#allocation13]   ;;  %s2888_s29 = smov [#allocation14]  }
  0x82   : > { %s377_s16 = sshll.u32 %s2887_s4, 4  ;;  %s391_s1 = sshll.u32 %s2888_s29, 4  ;;  %s378_s16 = int_to_ptr.vmem [resolvable:$true] %s377_s16  ;;  %s392_s1 = int_to_ptr.vmem [resolvable:$true] %s391_s1 }
  0x83   : > { %s2556_s14 = scalar_lea.hbm %s4321_s6, 384  ;;  %p4392_p8 = scmp.ne.s32.totalorder %s4382_s26, 0 }
  0x84   : > { %p2557_p4 = scmp.ne.s32.totalorder %s4321_s6, %s2556_s14  ;;  %p2563_p7 = scmp.lt.u32.totalorder %s2556_s14, %s4321_s6 }
  0x86   : > { %p2559_p11 = pnand %p2557_p4, %p4392_p8 }
  0x88   : > { %p2560_p13 = pneg %p2559_p11 }
  0x8a   : > { %p2565_p10 = pnand %p2563_p7, %p2560_p13 }
  0x8c   : > { %2568 = shalt.err (!%p2565_p10)
}
  0x8d   : > { %s2569_s13 = scalar_lea.vmem %s378_s16, 384  ;;  %p2577_p6 = scmp.lt.s32.totalorder %s378_s16, %s378_s16 }
  0x8e   : > { %p2570_p9 = scmp.ne.s32.totalorder %s378_s16, %s2569_s13  ;;  %p2578_p3 = scmp.lt.s32.totalorder %s2569_s13, %s2569_s13 }
  0x90   : > { %p2572_p12 = pnand %p2570_p9, %p4392_p8  ;;  %p2579_p5 = por %p2578_p3, %p2577_p6 }
  0x92   : > { %p2573_p1 = pneg %p2572_p12 }
  0x94   : > { %p2580_p0 = pnand %p2579_p5, %p2573_p1 }
  0x96   : > { %2583 = shalt.err (!%p2580_p0)
}
  0x97   : > { %p4393_p4 = scmp.ne.s32.totalorder %s4380_s28, 0  ;;  %s4394_s15 = smov 8  }
  0x98   : > { %s4395_s24 = smov 128   ;;  %s2584_s11 = scalar_lea.hbm %s4322_s7, 64 }
  0x99   : > { %2336 = dma.hbm_to_vmem [thread:$0]  (!%p4393_p4), %s4321_s6, 384, %s378_s16, [#allocation12], %s4395_s24, %s4395_s24, %s4394_s15  }
  0x9a   : > { %p2585_p11 = scmp.ne.s32.totalorder %s4322_s7, %s2584_s11  ;;  %p2591_p7 = scmp.lt.u32.totalorder %s2584_s11, %s4322_s7 }
  0x9c   : > { %p2587_p0 = pnand %p2585_p11, %p4392_p8 }
  0x9e   : > { %p2588_p13 = pneg %p2587_p0 }
  0xa0   : > { %p2593_p10 = pnand %p2591_p7, %p2588_p13 }
  0xa2   : > { %2596 = shalt.err (!%p2593_p10)
}
  0xa3   : > { %s2597_s8 = scalar_lea.vmem %s392_s1, 64  ;;  %p2605_p6 = scmp.lt.s32.totalorder %s392_s1, %s392_s1 }
  0xa4   : > { %p2598_p9 = scmp.ne.s32.totalorder %s392_s1, %s2597_s8  ;;  %p2606_p3 = scmp.lt.s32.totalorder %s2597_s8, %s2597_s8 }
  0xa6   : > { %p2600_p12 = pnand %p2598_p9, %p4392_p8  ;;  %p2607_p5 = por %p2606_p3, %p2605_p6 }
  0xa8   : > { %p2601_p1 = pneg %p2600_p12 }
  0xaa   : > { %p2608_p2 = pnand %p2607_p5, %p2601_p1 }
  0xac   : > { %2611 = shalt.err (!%p2608_p2)
}
  0xad   : > { %2339 = dma.hbm_to_vmem [thread:$0]  (!%p4393_p4), %s4322_s7, 64, %s392_s1, [#allocation15]  }
  0xae   : > { %s4396_s0 = sld [smem:[#allocation42_spill]]  ;;  %s406_s4 = scalar_lea.vmem [#allocation2], %s3108_s30 }
  0xaf   : > { %s414_s28 = sshll.u32 %s406_s4, 4  ;;  %s3211_s14 = scalar_lea.hbm %s4317_s2, %s3111_s12  ;;  %s3205_s28 = int_to_ptr.vmem [resolvable:$true] %s414_s28 }
  0xb0   : > { %s4397_s10 = sand.u32 1, %s2876_s19   ;;  %p4398_p8 = scmp.ne.s32.totalorder %s4391_s5, 0 }
  0xb1   : > { %s403_s1 = scalar_lea.sflag [#allocation3], %s4397_s10 }
  0xb4   : > { %s3202_s9 = scalar_lea.hbm %s4396_s0, %s3111_s12  ;;  %s2617_s16 = scalar_lea.hbm %s4396_s0, 256 }
  0xb5   : > { %s2612_s17 = scalar_lea.hbm %s3202_s9, 128  ;;  %p2618_p0 = scmp.lt.u32.totalorder %s3202_s9, %s4396_s0 }
  0xb6   : > { %p2613_p2 = scmp.ne.s32.totalorder %s3202_s9, %s2612_s17  ;;  %p2619_p13 = scmp.lt.u32.totalorder %s2617_s16, %s2612_s17 }
  0xb7   : > { %p2621_p10 = scmp.lt.u32.totalorder %s2612_s17, %s3202_s9 }
  0xb8   : > { %p2615_p4 = pnand %p2613_p2, %p4398_p8  ;;  %p2620_p7 = por %p2619_p13, %p2618_p0 }
  0xba   : > { %p2616_p11 = pneg %p2615_p4  ;;  %p2622_p9 = por %p2621_p10, %p2620_p7 }
  0xbc   : > { %p2623_p12 = pnand %p2622_p9, %p2616_p11 }
  0xbe   : > { %2626 = shalt.err (!%p2623_p12)
}
  0xbf   : > { %s2627_s26 = scalar_lea.vmem %s3205_s28, 128  ;;  %s2889_s4 = smov [#allocation2]  }
  0xc0   : > { %p2628_p1 = scmp.ne.s32.totalorder %s3205_s28, %s2627_s26  ;;  %s2632_s29 = sshll.u32 %s2889_s4, 4  ;;  %s2633_s29 = int_to_ptr.vmem [resolvable:$false] %s2632_s29 }
  0xc1   : > { %s2634_s11 = scalar_lea.vmem %s2633_s29, 256  ;;  %p2635_p5 = scmp.lt.s32.totalorder %s3205_s28, %s2633_s29 }
  0xc2   : > { %p2630_p6 = pnand %p2628_p1, %p4398_p8  ;;  %p2636_p2 = scmp.lt.s32.totalorder %s2634_s11, %s2627_s26 }
  0xc4   : > { %p2631_p3 = pneg %p2630_p6  ;;  %p2637_p4 = por %p2636_p2, %p2635_p5 }
  0xc6   : > { %p2638_p0 = pnand %p2637_p4, %p2631_p3 }
  0xc8   : > { %2641 = shalt.err (!%p2638_p0)
}
  0xc9   : > { %p4399_p11 = scmp.ne.s32.totalorder %s4389_s27, 0  ;;  %s444_s10 = scalar_lea.vmem [#allocation7], %s3108_s30 }
  0xca   : > { %s452_s17 = sshll.u32 %s444_s10, 4  ;;  %s3241_s16 = scalar_lea.hbm %s4318_s3, %s3111_s12  ;;  %s453_s17 = int_to_ptr.vmem [resolvable:$true] %s452_s17 }
  0xcb   : > { %2343 = dma.hbm_to_vmem [thread:$0]  (!%p4399_p11), %s3202_s9, 128, %s3205_s28, %s403_s1  }
  0xcc   : > { %s2642_s15 = scalar_lea.hbm %s3211_s14, 128  ;;  %s2647_s4 = scalar_lea.hbm %s4317_s2, 256 }
  0xcd   : > { %p2643_p13 = scmp.ne.s32.totalorder %s3211_s14, %s2642_s15  ;;  %p2648_p9 = scmp.lt.u32.totalorder %s3211_s14, %s4317_s2 }
  0xce   : > { %p2649_p12 = scmp.lt.u32.totalorder %s2647_s4, %s2642_s15  ;;  %p2651_p6 = scmp.lt.u32.totalorder %s2642_s15, %s3211_s14 }
  0xcf   : > { %p2645_p7 = pnand %p2643_p13, %p4398_p8 }
  0xd0   : > { %p2650_p1 = por %p2649_p12, %p2648_p9 }
  0xd1   : > { %p2646_p10 = pneg %p2645_p7 }
  0xd2   : > { %p2652_p3 = por %p2651_p6, %p2650_p1 }
  0xd4   : > { %p2653_p5 = pnand %p2652_p3, %p2646_p10 }
  0xd6   : > { %2656 = shalt.err (!%p2653_p5)
}
  0xd7   : > { %s2657_s12 = scalar_lea.vmem %s453_s17, 128  ;;  %s2890_s9 = smov [#allocation7]  }
  0xd8   : > { %p2658_p2 = scmp.ne.s32.totalorder %s453_s17, %s2657_s12  ;;  %s2662_s28 = sshll.u32 %s2890_s9, 4  ;;  %s2663_s28 = int_to_ptr.vmem [resolvable:$false] %s2662_s28 }
  0xd9   : > { %s2664_s1 = scalar_lea.vmem %s2663_s28, 256  ;;  %p2665_p13 = scmp.lt.s32.totalorder %s453_s17, %s2663_s28 }
  0xda   : > { %p2660_p4 = pnand %p2658_p2, %p4398_p8  ;;  %p2666_p7 = scmp.lt.s32.totalorder %s2664_s1, %s2657_s12 }
  0xdc   : > { %p2661_p0 = pneg %p2660_p4  ;;  %p2667_p11 = por %p2666_p7, %p2665_p13 }
  0xde   : > { %p2668_p9 = pnand %p2667_p11, %p2661_p0 }
  0xe0   : > { %2671 = shalt.err (!%p2668_p9)
}
  0xe1   : > { %p4400_p12 = scmp.ne.s32.totalorder %s4389_s27, 0  ;;  %s463_s10 = scalar_lea.vmem [#allocation8], %s3108_s30 }
  0xe2   : > { %s471_s13 = sshll.u32 %s463_s10, 4  ;;  %s4401_s8 = sand.u32 1, %s2880_s20   ;;  %s472_s13 = int_to_ptr.vmem [resolvable:$true] %s471_s13 }
  0xe3   : > { %2349 = dma.hbm_to_vmem [thread:$0]  (!%p4400_p12), %s3211_s14, 128, %s453_s17, %s3129_s22  }
  0xe4   : > { %s460_s15 = scalar_lea.sflag [#allocation9], %s4401_s8  ;;  %s2672_s24 = scalar_lea.hbm %s3241_s16, 128 }
  0xe5   : > { %p2673_p11 = scmp.ne.s32.totalorder %s3241_s16, %s2672_s24  ;;  %s2677_s29 = scalar_lea.hbm %s4318_s3, 256 }
  0xe6   : > { %p2678_p6 = scmp.lt.u32.totalorder %s3241_s16, %s4318_s3  ;;  %p2679_p3 = scmp.lt.u32.totalorder %s2677_s29, %s2672_s24 }
  0xe7   : > { %p2675_p10 = pnand %p2673_p11, %p4398_p8  ;;  %p2681_p2 = scmp.lt.u32.totalorder %s2672_s24, %s3241_s16 }
  0xe8   : > { %p2680_p5 = por %p2679_p3, %p2678_p6 }
  0xe9   : > { %p2676_p1 = pneg %p2675_p10 }
  0xea   : > { %p2682_p4 = por %p2681_p2, %p2680_p5 }
  0xec   : > { %p2683_p0 = pnand %p2682_p4, %p2676_p1 }
  0xee   : > { %2686 = shalt.err (!%p2683_p0)
}
  0xef   : > { %s2687_s22 = scalar_lea.vmem %s472_s13, 128  ;;  %s2891_s30 = smov [#allocation8]  }
  0xf0   : > { %p2688_p13 = scmp.ne.s32.totalorder %s472_s13, %s2687_s22  ;;  %s2692_s14 = sshll.u32 %s2891_s30, 4  ;;  %s2693_s14 = int_to_ptr.vmem [resolvable:$false] %s2692_s14 }
  0xf1   : > { %s2694_s17 = scalar_lea.vmem %s2693_s14, 256  ;;  %p2695_p11 = scmp.lt.s32.totalorder %s472_s13, %s2693_s14 }
  0xf2   : > { %p2690_p7 = pnand %p2688_p13, %p4398_p8  ;;  %p2696_p10 = scmp.lt.s32.totalorder %s2694_s17, %s2687_s22 }
  0xf4   : > { %p2691_p9 = pneg %p2690_p7  ;;  %p2697_p12 = por %p2696_p10, %p2695_p11 }
  0xf6   : > { %p2698_p3 = pnand %p2697_p12, %p2691_p9 }
  0xf8   : > { %2701 = shalt.err (!%p2698_p3)
}
  0xf9   : > { %p4402_p6 = scmp.ne.s32.totalorder %s4389_s27, 0  ;;  %p4403_p1 = scmp.ne.s32.totalorder %s4379_s25, 0 }
  0xfb   : > { %2352 = dma.hbm_to_vmem [thread:$0]  (!%p4402_p6), %s3241_s16, 128, %s472_s13, %s460_s15  }
  0xfc   : > { %480 = sbr.rel (%p4403_p1) target bundleno = 984 (0x3d8), region = 52 }
 0x103   : > { %s3284_s5 = sand.u32 1, %s2872_s18   ;;  %p4404_p8 = scmp.ne.s32.totalorder %s4376_s23, 0 }
 0x104   : > { %s3287_s9 = sshll.u32 %s3284_s5, 3  ;;  %s483_s28 = scalar_lea.sflag [#allocation3], %s3284_s5 }
 0x105   : > { %s486_s1 = scalar_lea.vmem [#allocation2], %s3287_s9 }
 0x106   : > { %2831 = dma.done.wait (%p4404_p8), %s483_s28, 128  }
 0x107   : > { %2833 = vsyncadd (%p4404_p8), %s483_s28, 4294967168  ;;  %s3296_s25 = sand.u32 1, %s2990_s21   ;;  %s495_s16 = scalar_lea.vmem [#allocation5], %s3287_s9 }
 0x108   : > { %s492_s27 = scalar_lea.sflag [#allocation6], %s3296_s25 }
 0x109   : > { %2835 = dma.done.wait (%p4404_p8), %s492_s27, 256  }
 0x10a   : > { %2837 = vsyncadd (%p4404_p8), %s492_s27, 4294967040  ;;  %s504_s10 = scalar_lea.vmem [#allocation7], %s3287_s9  ;;  %s510_s13 = scalar_lea.sflag [#allocation9], %s3296_s25 }
 0x10b   : > { %s513_s8 = scalar_lea.vmem [#allocation8], %s3287_s9 }
 0x10c   : > { %2839 = dma.done.wait (%p4404_p8), %s510_s13, 128  }
 0x10d   : > { %2841 = vsyncadd (%p4404_p8), %s510_s13, 4294967168  ;;  %p4405_p12 = scmp.eq.s32.totalorder %s2990_s21, 0 }
 0x10f   : > { %2843 = dma.done.wait (%p4405_p12), [#allocation9], 640   ;;  %p4406_p5 = pmov %p4405_p12 }
 0x111   : > { %2845 = vsyncadd (%p4406_p5), [#allocation9], 4294966656  ;;  %p4407_p2 = pmov %p4406_p5 }
 0x113   : > { %2847 = dma.done.wait (%p4407_p2), [#allocation12], 1024   ;;  %p4408_p4 = pmov %p4407_p2 }
 0x114   : > { %p4409_p0 = pmov %p4407_p2 }
 0x115   : > { %2849 = vsyncadd (%p4408_p4), [#allocation12], 4294966272 }
 0x116   : > { %2851 = dma.done.wait (%p4409_p0), [#allocation15], 64   ;;  %p4410_p13 = pmov %p4409_p0 }
 0x117   : > { %v2892_v0 = vmov 1   ;;  %v2893_v1 = vmov 0   ;;  %vm646_vm0 = vcmask 1043456   ;;  %v598_v2 = vld [vmem:[%s486_s1] sm:$0xff]  ;;  %v599_v3 = vld [vmem:[%s495_s16] sm:$0xff]  ;;  %vm777_vm1 = vcmask 1040384  }
 0x118   : > { %2853 = vsyncadd (%p4410_p13), [#allocation15], 4294967232  ;;  %2428 = vset.pattern.permute.xlu0 %v2892_v0  ;;  %2427 = vset.pattern.permute.xlu1 %v2893_v1  ;;  %v3330_v4 = vsel %vm646_vm0, %v598_v2, 0.0  ;;  %v3333_v5 = vsel %vm646_vm0, %v598_v2, -inf  ;;  %v681_v6 = vsel %vm646_vm0, %v599_v3, 0.0  ;;  %v3337_v7 = vsel %vm646_vm0, %v599_v3, -inf }
 0x119   : > { %v648_v8 = vrot.slane %v3330_v4, 4  ;;  %v665_v9 = vrot.slane %v3333_v5, 4  ;;  %v682_v10 = vrot.slane %v681_v6, 4  ;;  %v698_v11 = vrot.slane %v3337_v7, 4  ;;  %s2894_s23 = smov 16   ;;  %s2895_s15 = smov 17  }
 0x11a   : > { %v644_v12 = vcombine.high %v598_v2, %v598_v2  ;;  %v679_v13 = vcombine.high %v599_v3, %v599_v3  ;;  %vm780_vm2 = vcmask 1041408   ;;  %vm4354_vm3 = vcmask 1042432   ;;  %s2896_s24 = smov 15   ;;  %s2897_s26 = smov 1  }
 0x11b   : > { %v649_v14 = vadd.f32 %v648_v8, %v3330_v4  ;;  %v666_v15 = vmax.f32 %v3333_v5, %v665_v9  ;;  %v683_v16 = vadd.f32 %v682_v10, %v681_v6  ;;  %v699_v17 = vmax.f32 %v3337_v7, %v698_v11  ;;  %s2898_s4 = smov 127   ;;  %s2899_s29 = smov 113  }
 0x11c   : > { %v3346_v18 = vsel %vm646_vm0, %v644_v12, 0.0  ;;  %v3349_v19 = vsel %vm646_vm0, %v644_v12, -inf  ;;  %v688_v20 = vsel %vm646_vm0, %v679_v13, 0.0  ;;  %v3353_v21 = vsel %vm646_vm0, %v679_v13, -inf  ;;  %s2900_s11 = smov 112   ;;  %s2901_s12 = smov 111  }
 0x11d   : > { %v650_v22 = vrot.slane %v649_v14, 2  ;;  %v667_v23 = vrot.slane %v666_v15, 2  ;;  %v684_v24 = vrot.slane %v683_v16, 2  ;;  %v700_v25 = vrot.slane %v699_v17, 2  ;;  %s4141_s22 = sshll.u32 %s2990_s21, 7  ;;  %s576_s30 = scalar_lea.vmem [#allocation16], %s3287_s9 }
 0x11e   : > { %v655_v26 = vrot.slane %v3346_v18, 4  ;;  %v672_v27 = vrot.slane %v3349_v19, 4  ;;  %v689_v28 = vrot.slane %v688_v20, 4  ;;  %v705_v29 = vrot.slane %v3353_v21, 4  ;;  %s1926_s14 = sshll.u32 %s576_s30, 4  ;;  %s4443_s27 = sld [smem:[#allocation46_spill]]  ;;  %s4154_s14 = int_to_ptr.vmem [resolvable:$true] %s1926_s14 }
 0x11f   : > { %v651_v30 = vadd.f32 %v650_v22, %v649_v14  ;;  %v668_v31 = vmax.f32 %v666_v15, %v667_v23  ;;  %v685_v32 = vadd.f32 %v684_v24, %v683_v16  ;;  %v701_v33 = vmax.f32 %v699_v17, %v700_v25  ;;  %v3415_v17 = vld [vmem:[#allocation10 + $0x8] sm:$0xff]  ;;  %v3425_v22 = vld [vmem:[#allocation10 + $0x20] sm:$0x1f]  ;;  %v601_v24 = vld [vmem:[%s513_s8] sm:$0xff]  ;;  %s1897_s17 = scalar_lea.sflag [#allocation4], %s3284_s5  ;;  %s2702_s28 = scalar_lea.vmem %s4154_s14, 128 }
 0x120   : > { %v656_v34 = vadd.f32 %v655_v26, %v3346_v18  ;;  %v673_v35 = vmax.f32 %v3349_v19, %v672_v27  ;;  %v690_v36 = vadd.f32 %v689_v28, %v688_v20  ;;  %v706_v37 = vmax.f32 %v3353_v21, %v705_v29  ;;  %p2703_p7 = scmp.ne.s32.totalorder %s4154_s14, %s2702_s28 }
 0x121   : > { %v652_v38 = vrot.slane %v651_v30, 1  ;;  %v669_v39 = vrot.slane %v668_v31, 1  ;;  %v686_v40 = vrot.slane %v685_v32, 1  ;;  %v702_v41 = vrot.slane %v701_v33, 1 }
 0x122   : > { %v657_v42 = vrot.slane %v656_v34, 2  ;;  %v674_v43 = vrot.slane %v673_v35, 2  ;;  %v691_v44 = vrot.slane %v690_v36, 2  ;;  %v707_v45 = vrot.slane %v706_v37, 2 }
 0x123   : > { %v653_v46 = vadd.f32 %v652_v38, %v651_v30  ;;  %v687_v47 = vadd.f32 %v686_v40, %v685_v32  ;;  %v703_v48 = vmax.f32 %v701_v33, %v702_v41  ;;  %v670_v54 = vmax.f32 %v668_v31, %v669_v39 }
 0x124   : > { %v658_v49 = vadd.f32 %v657_v42, %v656_v34  ;;  %v675_v50 = vmax.f32 %v673_v35, %v674_v43  ;;  %v692_v51 = vadd.f32 %v691_v44, %v690_v36  ;;  %v708_v52 = vmax.f32 %v706_v37, %v707_v45  ;;  %s4152_s21 = scalar_lea.hbm %s4443_s27, %s4141_s22 }
 0x125   : > { %v662_v53 = vmul.f32 0.25, %v653_v46  ;;  %v695_v55 = vmul.f32 0.25, %v687_v47  ;;  %v3361_v56 = vadd.f32 %v688_v20, %v681_v6  ;;  %v1728_v11 = vmax.f32 %v3333_v5, %v3349_v19  ;;  %v3421_v20 = vld [vmem:[#allocation10 + $0x10] sm:$0xff] }
 0x126   : > { %v659_v57 = vrot.slane %v658_v49, 1  ;;  %v676_v58 = vrot.slane %v675_v50, 1  ;;  %v693_v59 = vrot.slane %v692_v51, 1  ;;  %v709_v60 = vrot.slane %v708_v52, 1 }
 0x127   : > { %v778_v61 = vsel %vm777_vm1, %v695_v55, %v703_v48  ;;  %v1735_v15 = vmax.f32 %v3337_v7, %v3353_v21  ;;  %v3389_v16 = vadd.f32 %v3346_v18, %v3330_v4  ;;  %v3413_v4 = vld [vmem:[#allocation10] sm:$0xff]  ;;  %v3419_v18 = vld [vmem:[#allocation10 + $0x18] sm:$0xff]  ;;  %v2902_v23 = vmov 2  }
 0x128   : > { %v781_v62 = vsel %vm780_vm2, %v778_v61, %v662_v53  ;;  %v660_v63 = vadd.f32 %v659_v57, %v658_v49  ;;  %v694_v2 = vadd.f32 %v693_v59, %v692_v51  ;;  %v710_v8 = vmax.f32 %v708_v52, %v709_v60 }
 0x129   : > { %v3366_v3 = vsel %vm4354_vm3, %v781_v62, %v670_v54  ;;  %v677_v9 = vmax.f32 %v675_v50, %v676_v58  ;;  %v745_v25 = vcombine.high %v601_v24, %v601_v24  ;;  %v747_v26 = vsel %vm646_vm0, %v601_v24, 0.0 }
 0x12a   : > { %803 = vrot.lane.b32.xlu1 %v3366_v3, %s2894_s23  ;;  %788 = vrot.lane.b32.xlu0 %v3366_v3, %s2895_s15  ;;  %v663_v6 = vmul.f32 0.25, %v660_v63  ;;  %v696_v10 = vmul.f32 0.25, %v694_v2  ;;  %v763_v29 = vsel %vm646_vm0, %v601_v24, -inf  ;;  %v748_v60 = vrot.slane %v747_v26, 4 }
 0x12b   : > { %v754_v27 = vsel %vm646_vm0, %v745_v25, 0.0  ;;  %v770_v30 = vsel %vm646_vm0, %v745_v25, -inf  ;;  %v2903_v24 = vmov 3   ;;  %vm815_vm4 = vcmask 121856  }
 0x12c   : > { %v779_v12 = vsel %vm777_vm1, %v696_v10, %v710_v8  ;;  %v1745_v28 = vadd.f32 %v754_v27, %v747_v26  ;;  %v1749_v32 = vmax.f32 %v763_v29, %v770_v30  ;;  %v755_v33 = vrot.slane %v754_v27, 4 }
 0x12d   : > { %v782_v13 = vsel %vm780_vm2, %v779_v12, %v663_v6  ;;  %v771_v37 = vrot.slane %v770_v30, 4  ;;  %v749_v7 = vadd.f32 %v748_v60, %v747_v26  ;;  %v764_v8 = vrot.slane %v763_v29, 4 }
 0x12e   : > { %811 = vrot.lane.b32.xlu0 %v3366_v3, %s2896_s24  ;;  %v3379_v14 = vsel %vm4354_vm3, %v782_v13, %v677_v9  ;;  %v756_v36 = vadd.f32 %v755_v33, %v754_v27  ;;  %v4355_v26 = vlaneseq  ;;  %vm830_vm5 = vcmask 7168  }
 0x12f   : > { %805 = vrot.lane.b32.xlu1 %v3379_v14, %s2894_s23  ;;  %v772_v43 = vmax.f32 %v770_v30, %v771_v37  ;;  %v750_v9 = vrot.slane %v749_v7, 2  ;;  %v765_v12 = vmax.f32 %v763_v29, %v764_v8  ;;  %v4418_v60 = vmov 0 }
 0x130   : > { %v757_v42 = vrot.slane %v756_v36, 2  ;;  %vm852_vm10 = vcmask 924672   ;;  %vm4364_vm11 = vcmask 916480   ;;  %vm4365_vm12 = vcmask 908288  }
 0x131   : > { %v773_v47 = vrot.slane %v772_v43, 2  ;;  %v766_v25 = vrot.slane %v765_v12, 2  ;;  %vm792_vm13 = vcmask 138240   ;;  %vm807_vm14 = vcmask 130048  }
 0x132   : > { %826 = vrot.lane.b32.xlu0 %v3366_v3, %s2897_s26  ;;  %v758_v46 = vadd.f32 %v757_v42, %v756_v36  ;;  %vm841_vm15 = vcmask 1039360  }
 0x133   : > { %813 = vrot.lane.b32.xlu1 %v3379_v14, %s2896_s24  ;;  %v774_v51 = vmax.f32 %v772_v43, %v773_v47 }
 0x134   : > { %v759_v50 = vrot.slane %v758_v46, 1 }
 0x135   : > { %v775_v54 = vrot.slane %v774_v51, 1 }
 0x136   : > { %837 = vrot.lane.b32.xlu0 %v3366_v3, %s2898_s4  ;;  %v760_v53 = vadd.f32 %v759_v50, %v758_v46 }
 0x137   : > { %828 = vrot.lane.b32.xlu1 %v3379_v14, %s2897_s26  ;;  %v776_v59 = vmax.f32 %v774_v51, %v775_v54 }
 0x138   : > { %v762_v58 = vmul.f32 0.25, %v760_v53 }
 0x13a   : > { %848 = vrot.lane.b32.xlu0 %v3366_v3, %s2899_s29  ;;  %v1316_v63 = vsel %vm777_vm1, %v762_v58, %v776_v59 }
 0x13b   : > { %839 = vrot.lane.b32.xlu1 %v3379_v14, %s2898_s4 }
 0x13e   : > { %859 = vrot.lane.b32.xlu0 %v3366_v3, %s2900_s11 }
 0x13f   : > { %850 = vrot.lane.b32.xlu1 %v3379_v14, %s2899_s29 }
 0x142   : > { %867 = vrot.lane.b32.xlu0 %v3366_v3, %s2901_s12 }
 0x143   : > { %861 = vrot.lane.b32.xlu1 %v3379_v14, %s2900_s11 }
 0x146   : > { %790 = vrot.lane.b32.xlu0 %v3379_v14, %s2895_s15 }
 0x147   : > { %869 = vrot.lane.b32.xlu1 %v3379_v14, %s2901_s12 }
 0x14a   : > { %971 = vperm.xlu0 %2428, %v3413_v4  }
 0x14b   : > { %917 = vperm.xlu1 %2427, %v3415_v17  }
 0x14e   : > { %983 = vperm.xlu0 %2428, %v3419_v18  }
 0x14f   : > { %922 = vperm.xlu1 %2427, %v3421_v20  }
 0x152   : > { %2431 = vset.pattern.permute.xlu0 %v2902_v23 }
 0x153   : > { %932 = vperm.xlu1 %2427, %v3425_v22  }
 0x157   : > { %2429 = vset.pattern.permute.xlu1 %v2892_v0  ;;  %v600_v0 = vld [vmem:[%s504_s10] sm:$0xff] }
 0x158   : > { %975 = vperm.xlu1 %2429, %v3415_v17   ;;  %v712_v31 = vcombine.high %v600_v0, %v600_v0  ;;  %v730_v38 = vsel %vm646_vm0, %v600_v0, -inf  ;;  %v714_v5 = vsel %vm646_vm0, %v600_v0, 0.0 }
 0x159   : > { %v715_v2 = vrot.slane %v714_v5, 4  ;;  %v731_v13 = vrot.slane %v730_v38, 4 }
 0x15a   : > { %v721_v34 = vsel %vm646_vm0, %v712_v31, 0.0  ;;  %v737_v39 = vsel %vm646_vm0, %v712_v31, -inf  ;;  %v767_v31 = vmax.f32 %v765_v12, %v766_v25 }
 0x15b   : > { %v722_v35 = vrot.slane %v721_v34, 4  ;;  %v1742_v40 = vmax.f32 %v730_v38, %v737_v39  ;;  %v738_v44 = vrot.slane %v737_v39, 4  ;;  %v716_v10 = vadd.f32 %v715_v2, %v714_v5 }
 0x15c   : > { %979 = vperm.xlu1 %2429, %v3421_v20   ;;  %v732_v27 = vmax.f32 %v730_v38, %v731_v13  ;;  %v768_v37 = vrot.slane %v767_v31, 1 }
 0x15d   : > { %v723_v41 = vadd.f32 %v722_v35, %v721_v34  ;;  %v739_v48 = vmax.f32 %v737_v39, %v738_v44 }
 0x15e   : > { %v733_v33 = vrot.slane %v732_v27, 2  ;;  %v769_v46 = vmax.f32 %v767_v31, %v768_v37 }
 0x15f   : > { %v724_v45 = vrot.slane %v723_v41, 2  ;;  %v740_v52 = vrot.slane %v739_v48, 2 }
 0x160   : > { %987 = vperm.xlu1 %2429, %v3425_v22  }
 0x161   : > { %v725_v49 = vadd.f32 %v724_v45, %v723_v41  ;;  %v741_v55 = vmax.f32 %v739_v48, %v740_v52  ;;  %v734_v41 = vmax.f32 %v732_v27, %v733_v33 }
 0x163   : > { %v726_v19 = vrot.slane %v725_v49, 1  ;;  %v742_v61 = vrot.slane %v741_v55, 1 }
 0x164   : > { %2430 = vset.pattern.permute.xlu1 %v2902_v23 }
 0x165   : > { %v727_v57 = vadd.f32 %v726_v19, %v725_v49  ;;  %v743_v21 = vmax.f32 %v741_v55, %v742_v61  ;;  %v735_v19 = vrot.slane %v734_v41, 1 }
 0x167   : > { %v729_v62 = vmul.f32 0.25, %v727_v57 }
 0x169   : > { %v1318_v6 = vsel %vm780_vm2, %v1316_v63, %v729_v62  ;;  %v736_v63 = vmax.f32 %v734_v41, %v735_v19 }
 0x16d   : > { %1732 = vadd.xlane.f32.xlu0 %v3361_v56  ;;  %v1738_v56 = vadd.f32 %v721_v34, %v714_v5 }
 0x171   : > { %1746 = vadd.xlane.f32.xlu0 %v1745_v28 }
 0x175   : > { %1750 = vmax.xlane.f32.xlu0 %v1749_v32  ;;  %v603_v32 = vand.u32 127, %v4355_v26 }
 0x177   : > { %v609_v38 = vand.u32 15, %v603_v32 }
 0x179   : > { %1729 = vmax.xlane.f32.xlu0 %v1728_v11  ;;  %v3458_v11 = vsel %vm4354_vm3, %v1318_v6, %v743_v21  ;;  %vm3479_vm6 = vcmp.ge.s32.totalorder %v609_v38, 1  ;;  %vm3483_vm7 = vcmp.lt.s32.totalorder %v609_v38, 15 }
 0x17d   : > { %1743 = vmax.xlane.f32.xlu0 %v1742_v40  ;;  %v604_v40 = vadd.s32 128, %v603_v32 }
 0x17f   : > { %v616_v5 = vand.u32 15, %v604_v40 }
 0x181   : > { %vm3494_vm8 = vcmp.ge.s32.totalorder %v616_v5, 1  ;;  %vm3503_vm9 = vcmp.lt.s32.totalorder %v616_v5, 15 }
 0x182   : > { %v4419_v60 = vsel %vm3503_vm9, 4294967295, %v4418_v60 }
 0x183   : > { %4420 = vst [vmem:[#allocation37_spill] sm:$0xff] %v4419_v60 }
 0x184   : > { %1736 = vmax.xlane.f32.xlu1 %v1735_v15  ;;  %v751_v15 = vadd.f32 %v750_v9, %v749_v7 }
 0x186   : > { %v752_v28 = vrot.slane %v751_v15, 1 }
 0x188   : > { %1724 = vadd.xlane.f32.xlu1 %v3389_v16  ;;  %v717_v16 = vrot.slane %v716_v10, 2  ;;  %v753_v34 = vadd.f32 %v752_v28, %v751_v15 }
 0x18a   : > { %v718_v0 = vadd.f32 %v717_v16, %v716_v10  ;;  %v761_v43 = vmul.f32 0.25, %v753_v34 }
 0x18c   : > { %1739 = vadd.xlane.f32.xlu1 %v1738_v56  ;;  %v719_v35 = vrot.slane %v718_v0, 1  ;;  %v4415_v56 = vmov 0  ;;  %v1315_v57 = vsel %vm777_vm1, %v761_v43, %v769_v46 }
 0x18d   : > { %v4416_v56 = vsel %vm3494_vm8, 4294967295, %v4415_v56 }
 0x18e   : > { %v720_v44 = vadd.f32 %v719_v35, %v718_v0  ;;  %4417 = vst [vmem:[#allocation36_spill] sm:$0xff] %v4416_v56 }
 0x190   : > { %v728_v54 = vmul.f32 0.25, %v720_v44 }
 0x192   : > { %v1317_v21 = vsel %vm780_vm2, %v1315_v57, %v728_v54 }
 0x193   : > { %1029 = vperm.xlu0 %2431, %v3415_v17   ;;  %v3522_v12 = vsel %vm4354_vm3, %v1317_v21, %v736_v63  ;;  %vm948_vm3 = vcmask 1044480  }
 0x197   : > { %1335 = vrot.lane.b32.xlu0 %v3458_v11, %s2894_s23 }
 0x198   : > { %2434 = vset.pattern.permute.xlu0 %v2903_v24 }
 0x19b   : > { %1325 = vrot.lane.b32.xlu0 %v3458_v11, %s2895_s15 }
 0x19c   : > { %v3465_v30 = vpop.permute.xlu1 %803  ;;  %v3467_v29 = vpop.permute.xlu0 %788 }
 0x19d   : > { %1025 = vperm.xlu1 %2430, %v3413_v4   ;;  %v796_v35 = vsel %vm792_vm13, 0.0, %v3467_v29 }
 0x19f   : > { %1342 = vrot.lane.b32.xlu0 %v3458_v11, %s2896_s24 }
 0x1a0   : > { %v812_v36 = vpop.permute.xlu0 %811 }
 0x1a1   : > { %1033 = vperm.xlu1 %2430, %v3421_v20   ;;  %v3474_v39 = vpop.permute.xlu1 %805  ;;  %v819_v42 = vsel %vm815_vm4, 0.0, %v812_v36 }
 0x1a2   : > { %v824_v51 = vsel %vm3483_vm7, %v819_v42, 0.0  ;;  %v808_v40 = vsel %vm807_vm14, %v3465_v30, %v3474_v39  ;;  %v801_v42 = vsel %vm3479_vm6, %v796_v35, 0.0 }
 0x1a3   : > { %1362 = vrot.lane.b32.xlu0 %v3458_v11, %s2898_s4 }
 0x1a4   : > { %v827_v45 = vpop.permute.xlu0 %826 }
 0x1a5   : > { %v834_v49 = vsel %vm830_vm5, 0.0, %v827_v45  ;;  %1037 = vperm.xlu1 %2430, %v3419_v18   ;;  %v814_v50 = vpop.permute.xlu1 %813 }
 0x1a6   : > { %v835_v52 = vsel %vm3479_vm6, %v834_v49, 0.0  ;;  %v816_v61 = vsel %vm815_vm4, %v812_v36, %v814_v50 }
 0x1a7   : > { %v885_v53 = vrot.slane %v835_v52, 4  ;;  %1091 = vperm.xlu0 %2434, %v3419_v18   ;;  %v825_v6 = vsel %vm3503_vm9, %v816_v61, 0.0 }
 0x1a8   : > { %v838_v55 = vpop.permute.xlu0 %837 }
 0x1a9   : > { %v3500_v58 = vsel %vm646_vm0, %v824_v51, %v885_v53  ;;  %2432 = vset.pattern.permute.xlu1 %v2903_v24  ;;  %v829_v59 = vpop.permute.xlu1 %828 }
 0x1aa   : > { %v831_v62 = vsel %vm830_vm5, %v827_v45, %v829_v59  ;;  %1079 = vperm.xlu1 %2432, %v3413_v4   ;;  %v880_v45 = vrot.slane %v808_v40, 4 }
 0x1ab   : > { %v836_v7 = vsel %vm3494_vm8, %v831_v62, 0.0  ;;  %2435 = vset.pattern.permute.xlu0 %v2893_v1 }
 0x1ac   : > { %v886_v2 = vrot.slane %v836_v7, 4  ;;  %v849_v8 = vpop.permute.xlu0 %848  ;;  %912 = vperm.xlu0 %2435, %v3413_v4  }
 0x1ad   : > { %v840_v9 = vpop.permute.xlu1 %839 }
 0x1ae   : > { %v3518_v10 = vsel %vm646_vm0, %v825_v6, %v886_v2  ;;  %1083 = vperm.xlu1 %2432, %v3415_v17   ;;  %v842_v36 = vsel %vm841_vm15, %v838_v55, %v840_v9  ;;  %v845_v37 = vsel %vm841_vm15, %v840_v9, 0.0 }
 0x1af   : > { %v847_v43 = vsel %vm3503_vm9, %v845_v37, 0.0 }
 0x1b0   : > { %v860_v13 = vpop.permute.xlu0 %859  ;;  %927 = vperm.xlu0 %2435, %v3419_v18   ;;  %v892_v49 = vrot.slane %v847_v43, 4 }
 0x1b1   : > { %v851_v15 = vpop.permute.xlu1 %850 }
 0x1b2   : > { %1350 = vrot.lane.b32.xlu1 %v3522_v12, %s2897_s26  ;;  %v853_v16 = vsel %vm852_vm10, %v849_v8, %v851_v15  ;;  %v3611_v62 = vsel %vm646_vm0, %v3379_v14, %v892_v49 }
 0x1b3   : > { %v857_v18 = vsel %vm3479_vm6, %v853_v16, 0.0 }
 0x1b4   : > { %v868_v4 = vpop.permute.xlu0 %867  ;;  %1382 = vrot.lane.b32.xlu0 %v3458_v11, %s2900_s11 }
 0x1b5   : > { %v862_v25 = vpop.permute.xlu1 %861 }
 0x1b6   : > { %v864_v17 = vsel %vm4364_vm11, %v860_v13, %v862_v25  ;;  %1352 = vrot.lane.b32.xlu1 %v3458_v11, %s2897_s26  ;;  %v866_v39 = vsel %vm4364_vm11, %v862_v25, 0.0 }
 0x1b7   : > { %v896_v27 = vrot.slane %v864_v17, 4  ;;  %v897_v54 = vrot.slane %v866_v39, 4 }
 0x1b8   : > { %v791_v28 = vpop.permute.xlu0 %790  ;;  %1372 = vrot.lane.b32.xlu0 %v3458_v11, %s2899_s29 }
 0x1b9   : > { %v3538_v0 = vsel %vm646_vm0, %v857_v18, %v896_v27  ;;  %v870_v31 = vpop.permute.xlu1 %869  ;;  %v793_v32 = vsel %vm792_vm13, %v3467_v29, %v791_v28  ;;  %v846_v29 = vsel %vm3483_vm7, %v842_v36, 0.0 }
 0x1ba   : > { %v872_v33 = vsel %vm4365_vm12, %v868_v4, %v870_v31  ;;  %1087 = vperm.xlu1 %2432, %v3421_v20   ;;  %v802_v44 = vsel %vm3494_vm8, %v793_v32, 0.0  ;;  %v891_v46 = vrot.slane %v846_v29, 4  ;;  %v875_v55 = vsel %vm4365_vm12, %v870_v31, 0.0 }
 0x1bb   : > { %v3589_v50 = vsel %vm646_vm0, %v802_v44, %v880_v45 }
 0x1bc   : > { %1389 = vrot.lane.b32.xlu0 %v3458_v11, %s2901_s12  ;;  %v3607_v61 = vsel %vm646_vm0, %v3366_v3, %v891_v46  ;;  %v877_v3 = vsel %vm3503_vm9, %v875_v55, 0.0 }
 0x1bd   : > { %v3640_v16 = vsel %vm646_vm0, %v877_v3, 1.0 }
 0x1be   : > { %1333 = vrot.lane.b32.xlu1 %v3522_v12, %s2894_s23 }
 0x1bf   : > { %2433 = vset.pattern.permute.xlu1 %v2902_v23  ;;  %v810_v23 = vsel %vm807_vm14, 0.0, %v3465_v30 }
 0x1c0   : > { %v879_v38 = vrot.slane %v810_v23, 4 }
 0x1c2   : > { %1323 = vrot.lane.b32.xlu1 %v3522_v12, %s2895_s15 }
 0x1c6   : > { %1340 = vrot.lane.b32.xlu1 %v3522_v12, %s2896_s24 }
 0x1c9   : > { %v3581_v30 = vpop.permute.xlu0 %971 }
 0x1ca   : > { %1360 = vrot.lane.b32.xlu1 %v3522_v12, %s2898_s4  ;;  %v3555_v34 = vpop.permute.xlu1 %917  ;;  %v991_v5 = vmul.f32 %v3581_v30, %v3589_v50 }
 0x1cd   : > { %v3615_v7 = vpop.permute.xlu0 %983 }
 0x1ce   : > { %1041 = vperm.xlu1 %2433, %v3425_v22   ;;  %v3558_v20 = vpop.permute.xlu1 %922  ;;  %4422 = vst [vmem:[#allocation39_spill] sm:$0xff] %v3615_v7  ;;  %v996_v6 = vmul.f32 %v3615_v7, %v3538_v0 }
 0x1d2   : > { %2436 = vset.pattern.permute.xlu1 %v2903_v24  ;;  %v3570_v41 = vpop.permute.xlu1 %932  ;;  %v3584_v24 = vsel %vm646_vm0, %v801_v42, %v879_v38 }
 0x1d3   : > { %4421 = vst [vmem:[#allocation38_spill] sm:$0xff] %v3570_v41  ;;  %1095 = vperm.xlu1 %2436, %v3425_v22   ;;  %v856_v22 = vsel %vm852_vm10, %v851_v15, 0.0  ;;  %v990_v52 = vmul.f32 %v3581_v30, %v3584_v24 }
 0x1d4   : > { %v858_v63 = vsel %vm3494_vm8, %v856_v22, 0.0 }
 0x1d5   : > { %v3630_v8 = vsel %vm646_vm0, %v858_v63, %v897_v54 }
 0x1d6   : > { %v997_v9 = vmul.f32 %v3615_v7, %v3630_v8 }
 0x1d7   : > { %v3591_v51 = vpop.permute.xlu1 %975  ;;  %1380 = vrot.lane.b32.xlu1 %v3522_v12, %s2900_s11 }
 0x1d8   : > { %v992_v19 = vmul.f32 %v3591_v51, %v3500_v58  ;;  %v993_v53 = vmul.f32 %v3591_v51, %v3518_v10  ;;  %2437 = vset.pattern.permute.xlu1 %v2893_v1  ;;  %v876_v1 = vsel %vm3483_vm7, %v872_v33, 0.0 }
 0x1d9   : > { %v3637_v4 = vsel %vm646_vm0, %v876_v1, 1.0 }
 0x1da   : > { %v1000_v57 = vadd.f32 %v992_v19, %v990_v52  ;;  %v1011_v59 = vadd.f32 %v993_v53, %v991_v5 }
 0x1db   : > { %v3617_v21 = vpop.permute.xlu1 %979  ;;  %1370 = vrot.lane.b32.xlu1 %v3522_v12, %s2899_s29 }
 0x1dc   : > { %v994_v14 = vmul.f32 %v3617_v21, %v3607_v61  ;;  %v995_v2 = vmul.f32 %v3617_v21, %v3611_v62 }
 0x1de   : > { %v1001_v13 = vadd.f32 %v1000_v57, %v994_v14  ;;  %v1012_v15 = vadd.f32 %v1011_v59, %v995_v2 }
 0x1df   : > { %v3642_v25 = vpop.permute.xlu1 %987  ;;  %1387 = vrot.lane.b32.xlu1 %v3522_v12, %s2901_s12 }
 0x1e0   : > { %4423 = vst [vmem:[#allocation40_spill] sm:$0xff] %v3642_v25  ;;  %v1002_v17 = vadd.f32 %v1001_v13, %v996_v6  ;;  %v1013_v27 = vadd.f32 %v1012_v15, %v997_v9  ;;  %v998_v18 = vmul.f32 %v3642_v25, %v3637_v4  ;;  %v999_v28 = vmul.f32 %v3642_v25, %v3640_v16 }
 0x1e2   : > { %v1003_v31 = vsel %vm948_vm3, %v998_v18, 0.0  ;;  %v1014_v32 = vsel %vm948_vm3, %v999_v28, 0.0 }
 0x1e3   : > { %v1004_v33 = vadd.f32 %v1003_v31, %v1002_v17  ;;  %v1015_v23 = vadd.f32 %v1014_v32, %v1013_v27 }
 0x1e5   : > { %v1005_v31 = vrot.slane %v1004_v33, 4  ;;  %v1016_v32 = vrot.slane %v1015_v23, 4 }
 0x1fa   : > { %v1733_v35 = vpop.xlane.xlu0 %1732 }
 0x1fb   : > { %v1734_v44 = vmul.f32 0.00390625, %v1733_v35 }
 0x1fe   : > { %v1747_v36 = vpop.xlane.xlu0 %1746 }
 0x1ff   : > { %v1748_v37 = vmul.f32 0.00390625, %v1747_v36 }
 0x202   : > { %v1751_v38 = vpop.xlane.xlu0 %1750 }
 0x203   : > { %v1816_v40 = vrot.slane %v1751_v38, 4 }
 0x205   : > { %v1819_v42 = vsel %vm646_vm0, %v1748_v37, %v1816_v40  ;;  %v1006_v40 = vadd.f32 %v1005_v31, %v1004_v33 }
 0x206   : > { %1827 = vperm.xlu0 %2435, %v1819_v42   ;;  %v1730_v29 = vpop.xlane.xlu0 %1729  ;;  %v1017_v42 = vadd.f32 %v1016_v32, %v1015_v23 }
 0x207   : > { %v1757_v49 = vrot.slane %v1730_v29, 4 }
 0x20a   : > { %v1744_v43 = vpop.xlane.xlu0 %1743 }
 0x20b   : > { %v1760_v53 = vrot.slane %v1744_v43, 4  ;;  %v937_v43 = vmul.f32 %v3555_v34, %v3500_v58 }
 0x211   : > { %v1737_v45 = vpop.xlane.xlu1 %1736 }
 0x212   : > { %v1813_v39 = vrot.slane %v1737_v45, 4  ;;  %v3653_v46 = vpop.permute.xlu0 %1029 }
 0x213   : > { %v1046_v3 = vmul.f32 %v3653_v46, %v3500_v58  ;;  %v1047_v14 = vmul.f32 %v3653_v46, %v3518_v10 }
 0x214   : > { %v1818_v22 = vsel %vm646_vm0, %v1734_v44, %v1813_v39  ;;  %v938_v44 = vmul.f32 %v3555_v34, %v3518_v10  ;;  %v939_v39 = vmul.f32 %v3558_v20, %v3607_v61 }
 0x215   : > { %v1725_v52 = vpop.xlane.xlu1 %1724  ;;  %1822 = vperm.xlu1 %2437, %v1818_v22   ;;  %v1007_v22 = vrot.slane %v1006_v40, 2 }
 0x216   : > { %v1727_v5 = vmul.f32 0.00390625, %v1725_v52  ;;  %v3656_v19 = vpop.permute.xlu0 %1335  ;;  %v1018_v52 = vrot.slane %v1017_v42, 2 }
 0x217   : > { %v1008_v31 = vadd.f32 %v1007_v22, %v1006_v40 }
 0x218   : > { %v1762_v54 = vsel %vm646_vm0, %v1727_v5, %v1757_v49  ;;  %v940_v49 = vmul.f32 %v3558_v20, %v3611_v62  ;;  %v1019_v32 = vadd.f32 %v1018_v52, %v1017_v42 }
 0x219   : > { %v1740_v55 = vpop.xlane.xlu1 %1739  ;;  %1766 = vperm.xlu1 %2437, %v1762_v54  }
 0x21a   : > { %v1741_v57 = vmul.f32 0.00390625, %v1740_v55  ;;  %v3659_v59 = vpop.permute.xlu0 %1325 }
 0x21c   : > { %v1763_v63 = vsel %vm646_vm0, %v1741_v57, %v1760_v53 }
 0x21d   : > { %v3662_v1 = vpop.permute.xlu1 %1025  ;;  %1771 = vperm.xlu1 %2437, %v1763_v63  }
 0x21e   : > { %v1044_v2 = vmul.f32 %v3662_v1, %v3584_v24  ;;  %v1045_v6 = vmul.f32 %v3662_v1, %v3589_v50  ;;  %v3672_v9 = vpop.permute.xlu0 %1342 }
 0x220   : > { %v1054_v13 = vadd.f32 %v1046_v3, %v1044_v2  ;;  %v3674_v15 = vadd.f32 %v1047_v14, %v1045_v6  ;;  %v943_v14 = vmul.f32 %v3570_v41, %v3637_v4  ;;  %v944_v2 = vmul.f32 %v3570_v41, %v3640_v16 }
 0x221   : > { %v3676_v17 = vpop.permute.xlu1 %1033 }
 0x222   : > { %v1048_v27 = vmul.f32 %v3676_v17, %v3607_v61  ;;  %v3680_v18 = vpop.permute.xlu0 %1362 }
 0x224   : > { %v1055_v28 = vadd.f32 %v1054_v13, %v1048_v27 }
 0x225   : > { %v3682_v35 = vpop.permute.xlu1 %1037 }
 0x226   : > { %v1050_v36 = vmul.f32 %v3682_v35, %v3538_v0  ;;  %v3686_v37 = vpop.permute.xlu0 %1091 }
 0x228   : > { %v3688_v38 = vadd.f32 %v1055_v28, %v1050_v36 }
 0x229   : > { %v3690_v29 = vpop.permute.xlu1 %1079 }
 0x22a   : > { %v1098_v5 = vmul.f32 %v3690_v29, %v3584_v24  ;;  %v1099_v53 = vmul.f32 %v3690_v29, %v3589_v50 }
 0x22b   : > { %v3696_v45 = vpop.permute.xlu0 %912 }
 0x22c   : > { %v935_v33 = vmul.f32 %v3696_v45, %v3584_v24  ;;  %v936_v23 = vmul.f32 %v3696_v45, %v3589_v50 }
 0x22d   : > { %v3710_v54 = vpop.permute.xlu1 %1083 }
 0x22e   : > { %v945_v55 = vadd.f32 %v937_v43, %v935_v33  ;;  %v957_v57 = vadd.f32 %v938_v44, %v936_v23  ;;  %v1100_v63 = vmul.f32 %v3710_v54, %v3500_v58  ;;  %v1101_v3 = vmul.f32 %v3710_v54, %v3518_v10 }
 0x22f   : > { %v3720_v24 = vpop.permute.xlu0 %927  ;;  %v949_v33 = vsel %vm948_vm3, %v943_v14, 0.0  ;;  %v960_v23 = vsel %vm948_vm3, %v944_v2, 0.0 }
 0x230   : > { %4424 = vst [vmem:[#allocation41_spill] sm:$0xff] %v3720_v24  ;;  %v1108_v6 = vadd.f32 %v1100_v63, %v1098_v5  ;;  %v3722_v50 = vadd.f32 %v1101_v3, %v1099_v53  ;;  %v946_v13 = vadd.f32 %v945_v55, %v939_v39  ;;  %v958_v27 = vadd.f32 %v957_v57, %v940_v49 }
 0x231   : > { %v941_v28 = vmul.f32 %v3720_v24, %v3538_v0  ;;  %v942_v58 = vmul.f32 %v3720_v24, %v3630_v8  ;;  %v1351_v10 = vpop.permute.xlu1 %1350  ;;  %v1367_v39 = vsel %vm841_vm15, %v3680_v18, 0.0  ;;  %v1009_v55 = vrot.slane %v1008_v31, 1 }
 0x232   : > { %v1020_v57 = vrot.slane %v1019_v32, 1  ;;  %v1369_v40 = vsel %vm3503_vm9, %v1367_v39, 0.0 }
 0x233   : > { %v947_v36 = vadd.f32 %v946_v13, %v941_v28  ;;  %v959_v43 = vadd.f32 %v958_v27, %v942_v58  ;;  %v3728_v44 = vpop.permute.xlu0 %1382  ;;  %v1010_v2 = vadd.f32 %v1009_v55, %v1008_v31  ;;  %v1049_v28 = vmul.f32 %v3676_v17, %v3611_v62 }
 0x234   : > { %v1021_v13 = vadd.f32 %v1020_v57, %v1019_v32  ;;  %v1411_v58 = vrot.slane %v1369_v40, 4 }
 0x235   : > { %v950_v49 = vadd.f32 %v949_v33, %v947_v36  ;;  %v961_v5 = vadd.f32 %v960_v23, %v959_v43  ;;  %v1353_v53 = vpop.permute.xlu1 %1352  ;;  %v1104_v33 = vmul.f32 %v3686_v37, %v3538_v0  ;;  %v1066_v32 = vadd.f32 %v3674_v15, %v1049_v28 }
 0x236   : > { %v1051_v0 = vmul.f32 %v3682_v35, %v3630_v8 }
 0x237   : > { %v951_v63 = vrot.slane %v950_v49, 4  ;;  %v962_v3 = vrot.slane %v961_v5, 4  ;;  %v3736_v52 = vpop.permute.xlu0 %1372 }
 0x239   : > { %v952_v42 = vadd.f32 %v951_v63, %v950_v49  ;;  %v963_v22 = vadd.f32 %v962_v3, %v961_v5  ;;  %v3738_v14 = vpop.permute.xlu1 %1087  ;;  %v1022_v63 = vmax.f32 %v1010_v2, 0.0  ;;  %v1023_v3 = vmax.f32 %v1021_v13, 0.0 }
 0x23a   : > { %v1102_v27 = vmul.f32 %v3738_v14, %v3607_v61  ;;  %v1424_v61 = vsel %vm646_vm0, %v3458_v11, %v1411_v58  ;;  %v1354_v13 = vsel %vm830_vm5, %v1351_v10, %v1353_v53  ;;  %v1377_v11 = vsel %vm852_vm10, %v3736_v52, 0.0 }
 0x23b   : > { %v953_v36 = vrot.slane %v952_v42, 2  ;;  %v964_v43 = vrot.slane %v963_v22, 2  ;;  %v3751_v40 = vpop.permute.xlu0 %1389  ;;  %v1434_v28 = vmul.f32 %v1424_v61, %v3558_v20 }
 0x23c   : > { %v1109_v23 = vadd.f32 %v1108_v6, %v1102_v27  ;;  %v1105_v6 = vmul.f32 %v3686_v37, %v3630_v8  ;;  %v1394_v58 = vsel %vm4365_vm12, %v3751_v40, 0.0 }
 0x23d   : > { %v954_v39 = vadd.f32 %v953_v36, %v952_v42  ;;  %v965_v49 = vadd.f32 %v964_v43, %v963_v22  ;;  %v1334_v5 = vpop.permute.xlu1 %1333  ;;  %v1357_v42 = vsel %vm830_vm5, 0.0, %v1351_v10  ;;  %v1386_v22 = vsel %vm4364_vm11, %v3728_v44, 0.0 }
 0x23e   : > { %v3746_v31 = vadd.f32 %v1109_v23, %v1104_v33  ;;  %v1337_v8 = vsel %vm807_vm14, %v1334_v5, %v3656_v19  ;;  %v1358_v10 = vsel %vm3479_vm6, %v1357_v42, 0.0  ;;  %v1416_v53 = vrot.slane %v1386_v22, 4 }
 0x23f   : > { %v955_v55 = vrot.slane %v954_v39, 1  ;;  %v966_v57 = vrot.slane %v965_v49, 1  ;;  %v1359_v23 = vsel %vm3494_vm8, %v1354_v13, 0.0  ;;  %v1399_v42 = vrot.slane %v1337_v8, 4 }
 0x240   : > { %v1067_v13 = vadd.f32 %v1066_v32, %v1051_v0 }
 0x241   : > { %v956_v2 = vadd.f32 %v955_v55, %v954_v39  ;;  %v967_v15 = vadd.f32 %v966_v57, %v965_v49  ;;  %v1324_v27 = vpop.permute.xlu1 %1323  ;;  %v1379_v39 = vsel %vm3494_vm8, %v1377_v11, 0.0  ;;  %v1103_v49 = vmul.f32 %v3738_v14, %v3611_v62 }
 0x242   : > { %v1327_v36 = vsel %vm792_vm13, %v1324_v27, %v3659_v59  ;;  %v1396_v57 = vsel %vm3503_vm9, %v1394_v58, 0.0  ;;  %v1404_v62 = vrot.slane %v1358_v10, 4  ;;  %v1405_v11 = vrot.slane %v1359_v23, 4 }
 0x243   : > { %v968_v43 = vmax.f32 %v956_v2, 0.0  ;;  %v969_v33 = vmax.f32 %v967_v15, 0.0  ;;  %v1332_v19 = vsel %vm3494_vm8, %v1327_v36, 0.0  ;;  %v1468_v2 = vmul.f32 %v1424_v61, %v3617_v21 }
 0x244   : > { %v1502_v15 = vmul.f32 %v1424_v61, %v3676_v17  ;;  %v1426_v36 = vsel %vm646_vm0, %v1379_v39, %v1416_v53  ;;  %v3796_v58 = vmul.f32 %v1424_v61, %v3738_v14  ;;  %v3799_v8 = vsel %vm646_vm0, %v1396_v57, 1.0 }
 0x245   : > { %v3781_v59 = vsel %vm777_vm1, %v968_v43, %v1022_v63  ;;  %v3784_v55 = vsel %vm777_vm1, %v969_v33, %v1023_v3  ;;  %v1341_v22 = vpop.permute.xlu1 %1340  ;;  %v1420_v63 = vsel %vm646_vm0, %v1332_v19, %v1399_v42  ;;  %v1436_v43 = vmul.f32 %v1426_v36, %v3720_v24 }
 0x246   : > { %v1344_v3 = vsel %vm815_vm4, %v1341_v22, %v3672_v9  ;;  %v1120_v0 = vadd.f32 %v3722_v50, %v1103_v49  ;;  %v1339_v33 = vsel %vm807_vm14, 0.0, %v1334_v5  ;;  %v1330_v10 = vsel %vm792_vm13, 0.0, %v1324_v27 }
 0x247   : > { %v1349_v32 = vsel %vm3503_vm9, %v1344_v3, 0.0  ;;  %v1430_v23 = vmul.f32 %v1420_v63, %v3696_v45  ;;  %v1347_v61 = vsel %vm815_vm4, 0.0, %v1341_v22  ;;  %v1438_v57 = vmul.f32 %v3799_v8, %v3570_v41 }
 0x248   : > { %v1422_v53 = vsel %vm646_vm0, %v1349_v32, %v1405_v11  ;;  %v1464_v50 = vmul.f32 %v1420_v63, %v3581_v30  ;;  %v1498_v5 = vmul.f32 %v1420_v63, %v3662_v1  ;;  %v1470_v49 = vmul.f32 %v1426_v36, %v3615_v7 }
 0x249   : > { %v1361_v9 = vpop.permute.xlu1 %1360  ;;  %v1432_v39 = vmul.f32 %v1422_v53, %v3555_v34  ;;  %v1466_v19 = vmul.f32 %v1422_v53, %v3591_v51  ;;  %v1500_v27 = vmul.f32 %v1422_v53, %v3653_v46  ;;  %v1472_v42 = vmul.f32 %v3799_v8, %v3642_v25 }
 0x24a   : > { %v1331_v22 = vsel %vm3479_vm6, %v1330_v10, 0.0  ;;  %v1398_v3 = vrot.slane %v1339_v33, 4  ;;  %v1348_v32 = vsel %vm3483_vm7, %v1347_v61, 0.0  ;;  %v1504_v41 = vmul.f32 %v1426_v36, %v3682_v35 }
 0x24b   : > { %v1450_v11 = vadd.f32 %v1432_v39, %v1430_v23  ;;  %v1484_v26 = vadd.f32 %v1466_v19, %v1464_v50  ;;  %v1518_v60 = vadd.f32 %v1500_v27, %v1498_v5  ;;  %v3827_v24 = vmul.f32 %v1426_v36, %v3686_v37 }
 0x24c   : > { %v1121_v7 = vadd.f32 %v1120_v0, %v1105_v6  ;;  %v1453_v10 = vsel %vm948_vm3, %v1438_v57, 0.0  ;;  %v1419_v33 = vsel %vm646_vm0, %v1331_v22, %v1398_v3  ;;  %v1487_v39 = vsel %vm948_vm3, %v1472_v42, 0.0 }
 0x24d   : > { %v3823_v56 = vpop.permute.xlu1 %1041  ;;  %v1519_v61 = vadd.f32 %v1518_v60, %v1502_v15  ;;  %v1421_v19 = vsel %vm646_vm0, %v1348_v32, %v1404_v62  ;;  %v1451_v50 = vadd.f32 %v1450_v11, %v1434_v28  ;;  %v1485_v5 = vadd.f32 %v1484_v26, %v1468_v2 }
 0x24e   : > { %v1052_v25 = vmul.f32 %v3823_v56, %v3637_v4  ;;  %v1053_v23 = vmul.f32 %v3823_v56, %v3640_v16  ;;  %v1429_v57 = vmul.f32 %v1419_v33, %v3696_v45  ;;  %v1534_v22 = vmul.f32 %v1422_v53, %v3710_v54 }
 0x24f   : > { %v1520_v27 = vadd.f32 %v1519_v61, %v1504_v41  ;;  %v1364_v60 = vsel %vm841_vm15, %v1361_v9, %v3680_v18  ;;  %v1463_v28 = vmul.f32 %v1419_v33, %v3581_v30  ;;  %v3849_v26 = vmul.f32 %v1419_v33, %v3690_v29 }
 0x250   : > { %v1057_v36 = vsel %vm948_vm3, %v1052_v25, 0.0  ;;  %v1068_v0 = vsel %vm948_vm3, %v1053_v23, 0.0  ;;  %v1497_v25 = vmul.f32 %v1419_v33, %v3662_v1  ;;  %v1431_v41 = vmul.f32 %v1421_v19, %v3555_v34 }
 0x251   : > { %v1058_v6 = vadd.f32 %v1057_v36, %v3688_v38  ;;  %v1069_v15 = vadd.f32 %v1068_v0, %v1067_v13  ;;  %v1532_v38 = vmul.f32 %v1420_v63, %v3690_v29  ;;  %v1452_v45 = vadd.f32 %v1451_v50, %v1436_v43 }
 0x252   : > { %v3844_v42 = vpop.permute.xlu1 %1095  ;;  %v1486_v53 = vadd.f32 %v1485_v5, %v1470_v49  ;;  %v1368_v18 = vsel %vm3483_vm7, %v1364_v60, 0.0  ;;  %v1465_v1 = vmul.f32 %v1421_v19, %v3591_v51  ;;  %v1499_v34 = vmul.f32 %v1421_v19, %v3653_v46 }
 0x253   : > { %v1059_v2 = vrot.slane %v1058_v6, 4  ;;  %v1070_v62 = vrot.slane %v1069_v15, 4  ;;  %v1106_v13 = vmul.f32 %v3844_v42, %v3637_v4  ;;  %v1107_v30 = vmul.f32 %v3844_v42, %v3640_v16 }
 0x254   : > { %v1552_v9 = vadd.f32 %v1534_v22, %v1532_v38  ;;  %v1506_v63 = vmul.f32 %v3799_v8, %v3823_v56  ;;  %v1454_v32 = vadd.f32 %v1453_v10, %v1452_v45  ;;  %v1410_v4 = vrot.slane %v1368_v18, 4 }
 0x255   : > { %v1060_v11 = vadd.f32 %v1059_v2, %v1058_v6  ;;  %v1071_v29 = vadd.f32 %v1070_v62, %v1069_v15  ;;  %v1111_v43 = vsel %vm948_vm3, %v1106_v13, 0.0  ;;  %v1122_v49 = vsel %vm948_vm3, %v1107_v30, 0.0 }
 0x256   : > { %v1381_v3 = vpop.permute.xlu1 %1380  ;;  %v1488_v16 = vadd.f32 %v1487_v39, %v1486_v53  ;;  %v1112_v51 = vadd.f32 %v1111_v43, %v3746_v31  ;;  %v1123_v61 = vadd.f32 %v1122_v49, %v1121_v7  ;;  %v1540_v50 = vmul.f32 %v3799_v8, %v3844_v42 }
 0x257   : > { %v1061_v33 = vrot.slane %v1060_v11, 2  ;;  %v1072_v23 = vrot.slane %v1071_v29, 2  ;;  %v1533_v46 = vmul.f32 %v1421_v19, %v3710_v54  ;;  %v1553_v6 = vadd.f32 %v1552_v9, %v3796_v58 }
 0x258   : > { %v3870_v0 = vadd.f32 %v1431_v41, %v1429_v57  ;;  %v1521_v10 = vsel %vm948_vm3, %v1506_v63, 0.0  ;;  %v1113_v22 = vrot.slane %v1112_v51, 4  ;;  %v1124_v60 = vrot.slane %v1123_v61, 4 }
 0x259   : > { %v1062_v36 = vadd.f32 %v1061_v33, %v1060_v11  ;;  %v1073_v5 = vadd.f32 %v1072_v23, %v1071_v29  ;;  %v1455_v15 = vrot.slane %v1454_v32, 4  ;;  %v1423_v31 = vsel %vm646_vm0, %v3522_v12, %v1410_v4 }
 0x25a   : > { %v1489_v38 = vrot.slane %v1488_v16, 4  ;;  %v1114_v8 = vadd.f32 %v1113_v22, %v1112_v51  ;;  %v1125_v45 = vadd.f32 %v1124_v60, %v1123_v61  ;;  %v1555_v54 = vsel %vm948_vm3, %v1540_v50, 0.0  ;;  %v1371_v19 = vpop.permute.xlu1 %1370  ;;  %v4426_v22 = vld [vmem:[#allocation39_spill] sm:$0xff] }
 0x25b   : > { %v1063_v7 = vrot.slane %v1062_v36, 1  ;;  %v1074_v39 = vrot.slane %v1073_v5, 1  ;;  %v1522_v57 = vadd.f32 %v1521_v10, %v1520_v27  ;;  %v1554_v41 = vadd.f32 %v1553_v6, %v3827_v24 }
 0x25c   : > { %v1473_v62 = vadd.f32 %v1465_v1, %v1463_v28  ;;  %v1507_v53 = vadd.f32 %v1499_v34, %v1497_v25  ;;  %v1115_v18 = vrot.slane %v1114_v8, 2  ;;  %v1126_v13 = vrot.slane %v1125_v45, 2 }
 0x25d   : > { %v1064_v2 = vadd.f32 %v1063_v7, %v1062_v36  ;;  %v1075_v58 = vadd.f32 %v1074_v39, %v1073_v5  ;;  %v1501_v30 = vmul.f32 %v1423_v31, %v3676_v17  ;;  %v1556_v11 = vadd.f32 %v1555_v54, %v1554_v41 }
 0x25e   : > { %v1456_v29 = vadd.f32 %v1455_v15, %v1454_v32  ;;  %v1490_v63 = vadd.f32 %v1489_v38, %v1488_v16  ;;  %v1116_v43 = vadd.f32 %v1115_v18, %v1114_v8  ;;  %v1127_v49 = vadd.f32 %v1126_v13, %v1125_v45  ;;  %v1388_v32 = vpop.permute.xlu1 %1387 }
 0x25f   : > { %v1076_v12 = vmax.f32 %v1064_v2, 0.0  ;;  %v1077_v9 = vmax.f32 %v1075_v58, 0.0  ;;  %v1523_v24 = vrot.slane %v1522_v57, 4  ;;  %v1384_v28 = vsel %vm4364_vm11, %v1381_v3, %v3728_v44  ;;  %v4429_v2 = vld [vmem:[#allocation38_spill] sm:$0xff] }
 0x260   : > { %v1541_v25 = vadd.f32 %v1533_v46, %v3849_v26  ;;  %v1433_v17 = vmul.f32 %v1423_v31, %v3558_v20  ;;  %v1117_v1 = vrot.slane %v1116_v43, 1  ;;  %v1128_v34 = vrot.slane %v1127_v49, 1 }
 0x261   : > { %v1134_v4 = vsel %vm780_vm2, %v3781_v59, %v1076_v12  ;;  %v1135_v27 = vsel %vm780_vm2, %v3784_v55, %v1077_v9  ;;  %v1467_v33 = vmul.f32 %v1423_v31, %v3617_v21  ;;  %v1557_v23 = vrot.slane %v1556_v11, 4 }
 0x262   : > { %v1415_v16 = vrot.slane %v1384_v28, 4  ;;  %v1374_v59 = vsel %vm852_vm10, %v1371_v19, %v3736_v52  ;;  %v1457_v51 = vrot.slane %v1456_v29, 2  ;;  %v1491_v55 = vrot.slane %v1490_v63, 2  ;;  %v4425_v52 = vld [vmem:[#allocation41_spill] sm:$0xff] }
 0x263   : > { %v1118_v61 = vadd.f32 %v1117_v1, %v1116_v43  ;;  %v1129_v50 = vadd.f32 %v1128_v34, %v1127_v49  ;;  %v1524_v36 = vadd.f32 %v1523_v24, %v1522_v57  ;;  %v1378_v44 = vsel %vm3479_vm6, %v1374_v59, 0.0  ;;  %v4430_v57 = vld [vmem:[#allocation40_spill] sm:$0xff] }
 0x264   : > { %v1508_v26 = vadd.f32 %v1507_v53, %v1501_v30  ;;  %v1391_v20 = vsel %vm4365_vm12, %v1388_v32, %v3751_v40  ;;  %v1535_v3 = vmul.f32 %v1423_v31, %v3738_v14  ;;  %v1425_v5 = vsel %vm646_vm0, %v1378_v44, %v1415_v16  ;;  %v638_v16 = vld [vmem:[#allocation11] sm:$0xff] }
 0x265   : > { %v1130_v21 = vmax.f32 %v1118_v61, 0.0  ;;  %v1131_v46 = vmax.f32 %v1129_v50, 0.0  ;;  %v1558_v6 = vadd.f32 %v1557_v23, %v1556_v11  ;;  %v1435_v10 = vmul.f32 %v1425_v5, %v4425_v52 }
 0x266   : > { %v1469_v60 = vmul.f32 %v1425_v5, %v4426_v22  ;;  %v1503_v15 = vmul.f32 %v1425_v5, %v3682_v35  ;;  %v1537_v7 = vmul.f32 %v1425_v5, %v3686_v37  ;;  %v1395_v39 = vsel %vm3483_vm7, %v1391_v20, 0.0 }
 0x267   : > { %vm4427_vm11 = vcmask 1042432   ;;  %v1458_v31 = vadd.f32 %v1457_v51, %v1456_v29  ;;  %v1492_v38 = vadd.f32 %v1491_v55, %v1490_v63  ;;  %v1525_v8 = vrot.slane %v1524_v36, 2 }
 0x268   : > { %v3902_v40 = vsel %vm4427_vm11, %v1135_v27, %v1131_v46  ;;  %vm4428_vm12 = vmmov %vm4427_vm11  ;;  %v1509_v45 = vadd.f32 %v1508_v26, %v1503_v15  ;;  %v1440_v35 = vadd.f32 %v3870_v0, %v1433_v17  ;;  %v1474_v54 = vadd.f32 %v1473_v62, %v1467_v33 }
 0x269   : > { %v3905_v14 = vsel %vm4428_vm12, %v1134_v4, %v1130_v21  ;;  %1142 = vrot.lane.b32.xlu1 %v3902_v40, %s2895_s15  ;;  %v1542_v37 = vadd.f32 %v1541_v25, %v1535_v3  ;;  %v1427_v19 = vsel %vm646_vm0, %v1395_v39, 1.0  ;;  %v1559_v13 = vrot.slane %v1558_v6, 2  ;;  %vm4431_vm12 = vmmov %vm4427_vm11 }
 0x26a   : > { %1140 = vrot.lane.b32.xlu0 %v3905_v14, %s2895_s15  ;;  %v1437_v58 = vmul.f32 %v1427_v19, %v4429_v2  ;;  %v1471_v41 = vmul.f32 %v1427_v19, %v4430_v57  ;;  %v1505_v53 = vmul.f32 %v1427_v19, %v3823_v56  ;;  %v1539_v18 = vmul.f32 %v1427_v19, %v3844_v42 }
 0x26b   : > { %v1441_v30 = vadd.f32 %v1440_v35, %v1435_v10  ;;  %v1475_v12 = vadd.f32 %v1474_v54, %v1469_v60  ;;  %v1543_v9 = vadd.f32 %v1542_v37, %v1537_v7  ;;  %v1526_v42 = vadd.f32 %v1525_v8, %v1524_v36  ;;  %v640_v35 = vld [vmem:[#allocation11 + $0x10] sm:$0xff] }
 0x26c   : > { %v1442_v0 = vsel %vm948_vm3, %v1437_v58, 0.0  ;;  %v1476_v62 = vsel %vm948_vm3, %v1471_v41, 0.0  ;;  %v1510_v11 = vsel %vm948_vm3, %v1505_v53, 0.0  ;;  %v1544_v29 = vsel %vm948_vm3, %v1539_v18, 0.0 }
 0x26d   : > { %1152 = vrot.lane.b32.xlu1 %v3902_v40, %s2894_s23  ;;  %v1443_v63 = vadd.f32 %v1442_v0, %v1441_v30  ;;  %v1477_v43 = vadd.f32 %v1476_v62, %v1475_v12  ;;  %v1511_v56 = vadd.f32 %v1510_v11, %v1509_v45  ;;  %v1545_v49 = vadd.f32 %v1544_v29, %v1543_v9  ;;  %v641_v9 = vld [vmem:[#allocation11 + $0x18] sm:$0xff]  ;;  %v642_v0 = vld [vmem:[#allocation11 + $0x20] sm:$0x1f]  ;;  %v1753_v29 = vld [vmem:[#allocation13 + $0x8] sm:$0xff] }
 0x26e   : > { %1150 = vrot.lane.b32.xlu0 %v3905_v14, %s2894_s23  ;;  %v1459_v25 = vrot.slane %v1458_v31, 1  ;;  %v1493_v17 = vrot.slane %v1492_v38, 1  ;;  %v1560_v1 = vadd.f32 %v1559_v13, %v1558_v6  ;;  %v1527_v59 = vrot.slane %v1526_v42, 1  ;;  %v639_v6 = vld [vmem:[#allocation11 + $0x8] sm:$0xff] }
 0x26f   : > { %v1444_v4 = vrot.slane %v1443_v63, 4  ;;  %v1478_v27 = vrot.slane %v1477_v43, 4  ;;  %v1512_v24 = vrot.slane %v1511_v56, 4  ;;  %v1546_v28 = vrot.slane %v1545_v49, 4 }
 0x270   : > { %v1460_v36 = vadd.f32 %v1459_v25, %v1458_v31  ;;  %v1494_v44 = vadd.f32 %v1493_v17, %v1492_v38  ;;  %v1561_v26 = vrot.slane %v1560_v1, 1  ;;  %v1528_v5 = vadd.f32 %v1527_v59, %v1526_v42  ;;  %v1754_v25 = vld [vmem:[#allocation13 + $0x10] sm:$0x1] }
 0x271   : > { %1159 = vrot.lane.b32.xlu1 %v3902_v40, %s2896_s24  ;;  %v1445_v34 = vadd.f32 %v1444_v4, %v1443_v63  ;;  %v1479_v32 = vadd.f32 %v1478_v27, %v1477_v43  ;;  %v1513_v33 = vadd.f32 %v1512_v24, %v1511_v56  ;;  %v1547_v23 = vadd.f32 %v1546_v28, %v1545_v49  ;;  %v1752_v63 = vld [vmem:[#allocation13] sm:$0xff] }
 0x272   : > { %1157 = vrot.lane.b32.xlu0 %v3905_v14, %s2896_s24  ;;  %v1462_v15 = vmax.f32 %v1460_v36, 0.0  ;;  %v1496_v7 = vmax.f32 %v1494_v44, 0.0  ;;  %v1562_v39 = vadd.f32 %v1561_v26, %v1560_v1  ;;  %v1530_v54 = vmax.f32 %v1528_v5, 0.0 }
 0x273   : > { %v1446_v51 = vrot.slane %v1445_v34, 2  ;;  %v1480_v55 = vrot.slane %v1479_v32, 2  ;;  %v1514_v61 = vrot.slane %v1513_v33, 2  ;;  %v1548_v50 = vrot.slane %v1547_v23, 2 }
 0x274   : > { %v1566_v58 = vsel %vm777_vm1, %v1462_v15, %v1496_v7  ;;  %v1564_v57 = vmax.f32 %v1562_v39, 0.0  ;;  %v1755_v39 = vld [vmem:[#allocation14] sm:$0xf] }
 0x275   : > { %1248 = vperm.xlu1 %2437, %v638_v16   ;;  %v1447_v20 = vadd.f32 %v1446_v51, %v1445_v34  ;;  %v1481_v3 = vadd.f32 %v1480_v55, %v1479_v32  ;;  %v1515_v21 = vadd.f32 %v1514_v61, %v1513_v33  ;;  %v1549_v46 = vadd.f32 %v1548_v50, %v1547_v23 }
 0x276   : > { %1167 = vrot.lane.b32.xlu0 %v3905_v14, %s2897_s26  ;;  %v1568_v13 = vsel %vm780_vm2, %v1566_v58, %v1530_v54 }
 0x277   : > { %v1448_v52 = vrot.slane %v1447_v20, 1  ;;  %v1482_v10 = vrot.slane %v1481_v3, 1  ;;  %v1516_v22 = vrot.slane %v1515_v21, 1  ;;  %v1550_v60 = vrot.slane %v1549_v46, 1 }
 0x278   : > { %v3943_v12 = vsel %vm4431_vm12, %v1568_v13, %v1564_v57 }
 0x279   : > { %1169 = vrot.lane.b32.xlu1 %v3902_v40, %s2897_s26  ;;  %v1449_v31 = vadd.f32 %v1448_v52, %v1447_v20  ;;  %v1483_v38 = vadd.f32 %v1482_v10, %v1481_v3  ;;  %v1517_v8 = vadd.f32 %v1516_v22, %v1515_v21  ;;  %v1551_v45 = vadd.f32 %v1550_v60, %v1549_v46 }
 0x27a   : > { %1253 = vperm.xlu0 %2435, %v639_v6   ;;  %v4432_v6 = vlaneseq }
 0x27b   : > { %v1461_v37 = vmax.f32 %v1449_v31, 0.0  ;;  %v1495_v19 = vmax.f32 %v1483_v38, 0.0  ;;  %v1529_v2 = vmax.f32 %v1517_v8, 0.0  ;;  %v1563_v41 = vmax.f32 %v1551_v45, 0.0 }
 0x27c   : > { %v3996_v52 = vshrl.u32 %v4432_v6, 7 }
 0x27d   : > { %v1565_v53 = vsel %vm777_vm1, %v1461_v37, %v1495_v19  ;;  %vm1782_vm1 = vcmask 31744  }
 0x27e   : > { %1258 = vperm.xlu0 %2435, %v640_v35   ;;  %v1567_v18 = vsel %vm780_vm2, %v1565_v53, %v1529_v2  ;;  %vm1786_vm2 = vcmask 24576   ;;  %v1799_v60 = vsub.s32 0, %v3996_v52 }
 0x27f   : > { %v3938_v30 = vsel %vm4427_vm11, %v1567_v18, %v1563_v41  ;;  %v1787_v32 = vsel %vm1786_vm2, %v1754_v25, 0.0  ;;  %vm1802_vm11 = vcmask 35840  }
 0x280   : > { %1600 = vrot.lane.b32.xlu1 %v3938_v30, %s2897_s26 }
 0x282   : > { %1602 = vrot.lane.b32.xlu0 %v3943_v12, %s2897_s26 }
 0x284   : > { %1177 = vrot.lane.b32.xlu1 %v3905_v14, %s2898_s4 }
 0x285   : > { %v1828_v42 = vpop.permute.xlu0 %1827 }
 0x286   : > { %1179 = vrot.lane.b32.xlu0 %v3902_v40, %s2898_s4  ;;  %v1831_v24 = vmul.f32 %v1828_v42, %v1753_v29 }
 0x288   : > { %1263 = vperm.xlu1 %2437, %v641_v9   ;;  %v1833_v34 = vsel %vm1782_vm1, %v1831_v24, 0.0 }
 0x28a   : > { %1583 = vrot.lane.b32.xlu0 %v3938_v30, %s2894_s23 }
 0x28c   : > { %1585 = vrot.lane.b32.xlu1 %v3943_v12, %s2894_s23  ;;  %s4444_s23 = sld [smem:[#allocation47_spill]] }
 0x28e   : > { %1268 = vperm.xlu0 %2435, %v642_v0  }
 0x290   : > { %1573 = vrot.lane.b32.xlu1 %v3938_v30, %s2895_s15 }
 0x292   : > { %1575 = vrot.lane.b32.xlu0 %v3943_v12, %s2895_s15  ;;  %s583_s15 = scalar_lea.vmem [#allocation17], %s3287_s9 }
 0x293   : > { %s4165_s26 = sshll.u32 %s583_s15, 4  ;;  %s4202_s26 = int_to_ptr.vmem [resolvable:$true] %s4165_s26 }
 0x294   : > { %v1823_v62 = vpop.permute.xlu1 %1822  ;;  %1590 = vrot.lane.b32.xlu1 %v3938_v30, %s2896_s24 }
 0x295   : > { %v1830_v4 = vmul.f32 %v1823_v62, %v1752_v63 }
 0x296   : > { %1592 = vrot.lane.b32.xlu0 %v3943_v12, %s2896_s24  ;;  %s4445_s24 = sld [smem:[#allocation34_spill]] }
 0x297   : > { %v1832_v1 = vsel %vm1782_vm1, %v1830_v4, 0.0 }
 0x298   : > { %v1767_v11 = vpop.permute.xlu1 %1766  ;;  %1610 = vrot.lane.b32.xlu1 %v3938_v30, %s2898_s4  ;;  %v1834_v33 = vadd.f32 %v1833_v34, %v1832_v1 }
 0x299   : > { %v1779_v56 = vmul.f32 %v1767_v11, %v1752_v63 }
 0x29a   : > { %1612 = vrot.lane.b32.xlu0 %v3943_v12, %s2898_s4  ;;  %v1835_v16 = vadd.f32 %v1834_v33, %v1787_v32  ;;  %s590_s4 = scalar_lea.vmem [#allocation19], %s3287_s9 }
 0x29b   : > { %v1783_v28 = vsel %vm1782_vm1, %v1779_v56, 0.0 }
 0x29c   : > { %v1772_v43 = vpop.permute.xlu1 %1771  ;;  %1197 = vrot.lane.b32.xlu1 %v3905_v14, %s2900_s11  ;;  %v1836_v51 = vrot.slane %v1835_v16, 4  ;;  %p4446_p9 = scmp.ne.s32.totalorder %s4445_s24, 0 }
 0x29d   : > { %v1780_v49 = vmul.f32 %v1772_v43, %v1753_v29 }
 0x29e   : > { %1199 = vrot.lane.b32.xlu0 %v3902_v40, %s2900_s11  ;;  %v1837_v61 = vadd.f32 %v1836_v51, %v1835_v16  ;;  %p2704_p11 = pnand %p2703_p7, %p4446_p9 }
 0x29f   : > { %v1784_v27 = vsel %vm1782_vm1, %v1780_v49, 0.0 }
 0x2a0   : > { %1187 = vrot.lane.b32.xlu1 %v3905_v14, %s2899_s29  ;;  %v1785_v17 = vadd.f32 %v1784_v27, %v1783_v28  ;;  %v1838_v36 = vrot.slane %v1837_v61, 2  ;;  %p2705_p10 = pneg %p2704_p11 }
 0x2a2   : > { %1189 = vrot.lane.b32.xlu0 %v3902_v40, %s2899_s29  ;;  %v1788_v23 = vadd.f32 %v1787_v32, %v1785_v17  ;;  %v1839_v26 = vadd.f32 %v1838_v36, %v1837_v61 }
 0x2a4   : > { %1630 = vrot.lane.b32.xlu1 %v3938_v30, %s2900_s11  ;;  %v1789_v59 = vrot.slane %v1788_v23, 4  ;;  %v1840_v21 = vrot.slane %v1839_v26, 1 }
 0x2a6   : > { %1632 = vrot.lane.b32.xlu0 %v3943_v12, %s2900_s11  ;;  %v1790_v55 = vadd.f32 %v1789_v59, %v1788_v23  ;;  %v1841_v5 = vadd.f32 %v1840_v21, %v1839_v26  ;;  %s4366_s11 = scalar_lea.vmem [#allocation20], %s3287_s9 }
 0x2a8   : > { %1204 = vrot.lane.b32.xlu1 %v3905_v14, %s2901_s12  ;;  %v1791_v50 = vrot.slane %v1790_v55, 2  ;;  %v1842_v22 = vmax.f32 %v1841_v5, 0.0 }
 0x2aa   : > { %1206 = vrot.lane.b32.xlu0 %v3902_v40, %s2901_s12  ;;  %v1792_v44 = vadd.f32 %v1791_v50, %v1790_v55  ;;  %v1843_v7 = vsel %vm1782_vm1, %v1842_v22, 1.0 }
 0x2ab   : > { %v1847_v38 = vrot.slane %v1843_v7, %v1799_v60 }
 0x2ac   : > { %1620 = vrot.lane.b32.xlu1 %v3938_v30, %s2899_s29  ;;  %v1793_v20 = vrot.slane %v1792_v44, 1 }
 0x2ad   : > { %v1848_v45 = vmul.f32 %v1847_v38, %v1755_v39 }
 0x2ae   : > { %1622 = vrot.lane.b32.xlu0 %v3943_v12, %s2899_s29  ;;  %v1794_v3 = vadd.f32 %v1793_v20, %v1792_v44  ;;  %s4170_s29 = sshll.u32 %s590_s4, 4  ;;  %s4211_s29 = int_to_ptr.vmem [resolvable:$true] %s4170_s29 }
 0x2af   : > { %v1849_v35 = vsel %vm1802_vm11, %v1848_v45, 0.0 }
 0x2b0   : > { %1637 = vrot.lane.b32.xlu1 %v3938_v30, %s2901_s12  ;;  %v1795_v46 = vmax.f32 %v1794_v3, 0.0 }
 0x2b2   : > { %1639 = vrot.lane.b32.xlu0 %v3943_v12, %s2901_s12  ;;  %v1796_v10 = vsel %vm1782_vm1, %v1795_v46, 1.0  ;;  %s4177_s12 = sshll.u32 %s4366_s11, 4  ;;  %s4224_s12 = int_to_ptr.vmem [resolvable:$true] %s4177_s12 }
 0x2b3   : > { %v1800_v15 = vrot.slane %v1796_v10, %v1799_v60 }
 0x2b5   : > { %v1801_v31 = vmul.f32 %v1800_v15, %v1755_v39 }
 0x2b7   : > { %v1803_v8 = vsel %vm1802_vm11, %v1801_v31, 0.0 }
 0x2d1   : > { %1804 = vadd.xlane.f32.xlu0 %v1803_v8 }
 0x2d4   : > { %1850 = vadd.xlane.f32.xlu1 %v1849_v35 }
 0x2db   : > { %v1143_v37 = vpop.permute.xlu1 %1142 }
 0x2dc   : > { %v1141_v54 = vpop.permute.xlu0 %1140 }
 0x2dd   : > { %v1144_v36 = vsel %vm792_vm13, %v1141_v54, %v1143_v37  ;;  %v1147_v44 = vsel %vm792_vm13, 0.0, %v1141_v54 }
 0x2de   : > { %v1148_v15 = vsel %vm3479_vm6, %v1147_v44, 0.0  ;;  %v1149_v7 = vsel %vm3494_vm8, %v1144_v36, 0.0 }
 0x2df   : > { %v1153_v2 = vpop.permute.xlu1 %1152 }
 0x2e0   : > { %v1151_v19 = vpop.permute.xlu0 %1150 }
 0x2e1   : > { %v1154_v34 = vsel %vm807_vm14, %v1151_v19, %v1153_v2  ;;  %v1156_v32 = vsel %vm807_vm14, 0.0, %v1151_v19 }
 0x2e2   : > { %v1215_v26 = vrot.slane %v1156_v32, 4  ;;  %v1216_v20 = vrot.slane %v1154_v34, 4 }
 0x2e3   : > { %v1160_v57 = vpop.permute.xlu1 %1159 }
 0x2e4   : > { %v1158_v58 = vpop.permute.xlu0 %1157  ;;  %v1236_v31 = vsel %vm646_vm0, %v1148_v15, %v1215_v26  ;;  %v1237_v38 = vsel %vm646_vm0, %v1149_v7, %v1216_v20 }
 0x2e5   : > { %v1164_v23 = vsel %vm815_vm4, 0.0, %v1158_v58  ;;  %v1161_v21 = vsel %vm815_vm4, %v1158_v58, %v1160_v57 }
 0x2e6   : > { %v1165_v46 = vsel %vm3483_vm7, %v1164_v23, 0.0  ;;  %v1166_v8 = vsel %vm3503_vm9, %v1161_v21, 0.0 }
 0x2e8   : > { %v1168_v53 = vpop.permute.xlu0 %1167 }
 0x2e9   : > { %v1174_v42 = vsel %vm830_vm5, 0.0, %v1168_v53 }
 0x2ea   : > { %v1175_v24 = vsel %vm3479_vm6, %v1174_v42, 0.0 }
 0x2eb   : > { %v1221_v16 = vrot.slane %v1175_v24, 4 }
 0x2ed   : > { %v1238_v10 = vsel %vm646_vm0, %v1165_v46, %v1221_v16 }
 0x2f4   : > { %v4001_v41 = vpop.permute.xlu1 %1248 }
 0x2f5   : > { %v1271_v35 = vmul.f32 %v4001_v41, %v1236_v31  ;;  %v1272_v54 = vmul.f32 %v4001_v41, %v1237_v38 }
 0x2f8   : > { %v1170_v18 = vpop.permute.xlu1 %1169 }
 0x2f9   : > { %v4003_v13 = vpop.permute.xlu0 %1253  ;;  %v1171_v28 = vsel %vm830_vm5, %v1168_v53, %v1170_v18 }
 0x2fa   : > { %v1176_v51 = vsel %vm3494_vm8, %v1171_v28, 0.0  ;;  %v1273_v39 = vmul.f32 %v4003_v13, %v1238_v10 }
 0x2fb   : > { %v1222_v5 = vrot.slane %v1176_v51, 4 }
 0x2fc   : > { %v1601_v9 = vpop.permute.xlu1 %1600  ;;  %v1281_v18 = vadd.f32 %v1273_v39, %v1271_v35 }
 0x2fd   : > { %v4005_v0 = vpop.permute.xlu0 %1258  ;;  %v1239_v37 = vsel %vm646_vm0, %v1166_v8, %v1222_v5  ;;  %v1607_v2 = vsel %vm830_vm5, 0.0, %v1601_v9 }
 0x2fe   : > { %v1274_v24 = vmul.f32 %v4003_v13, %v1239_v37 }
 0x300   : > { %v1178_v11 = vpop.permute.xlu1 %1177  ;;  %v1292_v51 = vadd.f32 %v1274_v24, %v1272_v54 }
 0x301   : > { %v1603_v62 = vpop.permute.xlu0 %1602 }
 0x302   : > { %v1604_v58 = vsel %vm830_vm5, %v1601_v9, %v1603_v62 }
 0x305   : > { %v1180_v29 = vpop.permute.xlu0 %1179 }
 0x306   : > { %v1181_v25 = vsel %vm841_vm15, %v1178_v11, %v1180_v29  ;;  %v1184_v17 = vsel %vm841_vm15, %v1180_v29, 0.0 }
 0x307   : > { %v4007_v63 = vpop.permute.xlu1 %1263  ;;  %v1185_v55 = vsel %vm3483_vm7, %v1181_v25, 0.0  ;;  %v1186_v50 = vsel %vm3503_vm9, %v1184_v17, 0.0 }
 0x308   : > { %v1227_v22 = vrot.slane %v1185_v55, 4  ;;  %v1228_v60 = vrot.slane %v1186_v50, 4 }
 0x309   : > { %v1584_v43 = vpop.permute.xlu0 %1583 }
 0x30a   : > { %v1240_v57 = vsel %vm646_vm0, %v3905_v14, %v1227_v22  ;;  %v1241_v53 = vsel %vm646_vm0, %v3902_v40, %v1228_v60  ;;  %v1589_v11 = vsel %vm807_vm14, 0.0, %v1584_v43  ;;  %v1608_v14 = vsel %vm3479_vm6, %v1607_v2, 0.0 }
 0x30b   : > { %v1586_v56 = vpop.permute.xlu1 %1585  ;;  %v1609_v40 = vsel %vm3494_vm8, %v1604_v58, 0.0  ;;  %v1275_v17 = vmul.f32 %v4005_v0, %v1240_v57  ;;  %v1276_v34 = vmul.f32 %v4005_v0, %v1241_v53  ;;  %v1654_v55 = vrot.slane %v1608_v14, 4 }
 0x30c   : > { %v1587_v28 = vsel %vm807_vm14, %v1584_v43, %v1586_v56  ;;  %v1655_v50 = vrot.slane %v1609_v40, 4 }
 0x30d   : > { %v4009_v49 = vpop.permute.xlu0 %1268  ;;  %v1649_v32 = vrot.slane %v1587_v28, 4  ;;  %v1282_v15 = vadd.f32 %v1281_v18, %v1275_v17  ;;  %v1293_v7 = vadd.f32 %v1292_v51, %v1276_v34 }
 0x30f   : > { %v1574_v4 = vpop.permute.xlu1 %1573 }
 0x310   : > { %v1580_v29 = vsel %vm792_vm13, 0.0, %v1574_v4 }
 0x311   : > { %v1576_v27 = vpop.permute.xlu0 %1575  ;;  %v1581_v43 = vsel %vm3479_vm6, %v1580_v29, 0.0 }
 0x312   : > { %v1577_v42 = vsel %vm792_vm13, %v1574_v4, %v1576_v27  ;;  %v1648_v27 = vrot.slane %v1589_v11, 4  ;;  %vm4437_vm13 = vcmask 908288  }
 0x313   : > { %v1591_v1 = vpop.permute.xlu1 %1590  ;;  %v1582_v56 = vsel %vm3494_vm8, %v1577_v42, 0.0  ;;  %vm4438_vm14 = vmmov %vm4437_vm13 }
 0x314   : > { %v1597_v25 = vsel %vm815_vm4, 0.0, %v1591_v1  ;;  %v1669_v26 = vsel %vm646_vm0, %v1581_v43, %v1648_v27  ;;  %v1670_v20 = vsel %vm646_vm0, %v1582_v56, %v1649_v32 }
 0x315   : > { %v1593_v33 = vpop.permute.xlu0 %1592  ;;  %v1679_v31 = vmul.f32 %v1669_v26, %v4001_v41  ;;  %v1680_v38 = vmul.f32 %v1670_v20, %v4001_v41 }
 0x316   : > { %v1594_v9 = vsel %vm815_vm4, %v1591_v1, %v1593_v33  ;;  %v1598_v33 = vsel %vm3483_vm7, %v1597_v25, 0.0  ;;  %vm4435_vm4 = vcmask 916480  }
 0x317   : > { %v1611_v3 = vpop.permute.xlu1 %1610  ;;  %v1599_v23 = vsel %vm3503_vm9, %v1594_v9, 0.0  ;;  %v1671_v5 = vsel %vm646_vm0, %v1598_v33, %v1654_v55  ;;  %vm4436_vm5 = vmmov %vm4435_vm4 }
 0x318   : > { %v1681_v54 = vmul.f32 %v1671_v5, %v4003_v13  ;;  %vm4440_vm12 = vmmov %vm4435_vm4 }
 0x319   : > { %v1613_v6 = vpop.permute.xlu0 %1612 }
 0x31a   : > { %v1614_v1 = vsel %vm841_vm15, %v1611_v3, %v1613_v6  ;;  %v1617_v16 = vsel %vm841_vm15, %v1613_v6, 0.0  ;;  %v1672_v6 = vsel %vm646_vm0, %v1599_v23, %v1655_v50  ;;  %vm4439_vm15 = vmmov %vm4435_vm4  ;;  %v1689_v50 = vadd.f32 %v1681_v54, %v1679_v31 }
 0x31b   : > { %v1198_v45 = vpop.permute.xlu1 %1197  ;;  %v1618_v3 = vsel %vm3483_vm7, %v1614_v1, 0.0  ;;  %v1619_v10 = vsel %vm3503_vm9, %v1617_v16, 0.0  ;;  %v1682_v37 = vmul.f32 %v1672_v6, %v4003_v13 }
 0x31c   : > { %v1660_v8 = vrot.slane %v1618_v3, 4  ;;  %v1661_v2 = vrot.slane %v1619_v10, 4 }
 0x31d   : > { %v1200_v19 = vpop.permute.xlu0 %1199 }
 0x31e   : > { %v1201_v21 = vsel %vm4435_vm4, %v1198_v45, %v1200_v19  ;;  %v1203_v60 = vsel %vm4436_vm5, %v1200_v19, 0.0  ;;  %v1673_v24 = vsel %vm646_vm0, %v3938_v30, %v1660_v8  ;;  %v1674_v14 = vsel %vm646_vm0, %v3943_v12, %v1661_v2 }
 0x31f   : > { %v1188_v62 = vpop.permute.xlu1 %1187  ;;  %v1232_v45 = vrot.slane %v1201_v21, 4  ;;  %v1233_v57 = vrot.slane %v1203_v60, 4  ;;  %v1683_v1 = vmul.f32 %v1673_v24, %v4005_v0  ;;  %v1684_v23 = vmul.f32 %v1674_v14, %v4005_v0 }
 0x321   : > { %v1190_v4 = vpop.permute.xlu0 %1189 }
 0x322   : > { %v1191_v44 = vsel %vm852_vm10, %v1188_v62, %v1190_v4  ;;  %v1194_v22 = vsel %vm852_vm10, %v1190_v4, 0.0 }
 0x323   : > { %v1631_v36 = vpop.permute.xlu1 %1630  ;;  %v1195_v39 = vsel %vm3479_vm6, %v1191_v44, 0.0  ;;  %v1196_v19 = vsel %vm3494_vm8, %v1194_v22, 0.0  ;;  %v1690_v22 = vadd.f32 %v1689_v50, %v1683_v1 }
 0x324   : > { %v1242_v53 = vsel %vm646_vm0, %v1195_v39, %v1232_v45  ;;  %v1243_v28 = vsel %vm646_vm0, %v1196_v19, %v1233_v57 }
 0x325   : > { %v1633_v46 = vpop.permute.xlu0 %1632  ;;  %v1277_v40 = vmul.f32 %v4007_v63, %v1242_v53  ;;  %v1278_v32 = vmul.f32 %v4007_v63, %v1243_v28 }
 0x326   : > { %v1634_v41 = vsel %vm4439_vm15, %v1631_v36, %v1633_v46  ;;  %v1636_v29 = vsel %vm4440_vm12, %v1633_v46, 0.0  ;;  %v1700_v36 = vadd.f32 %v1682_v37, %v1680_v38 }
 0x327   : > { %v1205_v35 = vpop.permute.xlu1 %1204  ;;  %v1665_v27 = vrot.slane %v1634_v41, 4  ;;  %v1666_v43 = vrot.slane %v1636_v29, 4  ;;  %v1283_v44 = vadd.f32 %v1282_v15, %v1277_v40  ;;  %v1294_v46 = vadd.f32 %v1293_v7, %v1278_v32 }
 0x328   : > { %v1701_v60 = vadd.f32 %v1700_v36, %v1684_v23 }
 0x329   : > { %v1207_v58 = vpop.permute.xlu0 %1206 }
 0x32a   : > { %v1208_v18 = vsel %vm4437_vm13, %v1205_v35, %v1207_v58  ;;  %v1211_v11 = vsel %vm4438_vm14, %v1207_v58, 0.0 }
 0x32b   : > { %v1212_v42 = vsel %vm3483_vm7, %v1208_v18, 0.0  ;;  %v1213_v13 = vsel %vm3503_vm9, %v1211_v11, 0.0  ;;  %v1621_v25 = vpop.permute.xlu1 %1620 }
 0x32c   : > { %v1244_v9 = vsel %vm646_vm0, %v1212_v42, 1.0  ;;  %v1245_v62 = vsel %vm646_vm0, %v1213_v13, 1.0 }
 0x32d   : > { %v1279_v17 = vmul.f32 %v4009_v49, %v1244_v9  ;;  %v1280_v34 = vmul.f32 %v4009_v49, %v1245_v62  ;;  %v1623_v4 = vpop.permute.xlu0 %1622 }
 0x32e   : > { %v1624_v30 = vsel %vm852_vm10, %v1621_v25, %v1623_v4  ;;  %v1627_v56 = vsel %vm852_vm10, %v1623_v4, 0.0 }
 0x32f   : > { %v1628_v12 = vsel %vm3479_vm6, %v1624_v30, 0.0  ;;  %v1629_v33 = vsel %vm3494_vm8, %v1627_v56, 0.0  ;;  %v1284_v16 = vsel %vm948_vm3, %v1279_v17, 0.0  ;;  %v1295_v26 = vsel %vm948_vm3, %v1280_v34, 0.0  ;;  %v1638_v20 = vpop.permute.xlu1 %1637  ;;  %vm4441_vm6 = vmmov %vm4437_vm13 }
 0x330   : > { %v1675_v51 = vsel %vm646_vm0, %v1628_v12, %v1665_v27  ;;  %v1676_v55 = vsel %vm646_vm0, %v1629_v33, %v1666_v43  ;;  %vm4442_vm8 = vmmov %vm4441_vm6  ;;  %v1285_v5 = vadd.f32 %v1284_v16, %v1283_v44  ;;  %v1296_v31 = vadd.f32 %v1295_v26, %v1294_v46 }
 0x331   : > { %v1640_v3 = vpop.permute.xlu0 %1639  ;;  %v1685_v47 = vmul.f32 %v1675_v51, %v4007_v63  ;;  %v1686_v59 = vmul.f32 %v1676_v55, %v4007_v63 }
 0x332   : > { %v1641_v21 = vsel %vm4441_vm6, %v1638_v20, %v1640_v3  ;;  %v1644_v0 = vsel %vm4442_vm8, %v1640_v3, 0.0  ;;  %v1286_v45 = vrot.slane %v1285_v5, 4  ;;  %v1297_v37 = vrot.slane %v1296_v31, 4 }
 0x333   : > { %v1645_v6 = vsel %vm3483_vm7, %v1641_v21, 0.0  ;;  %v1646_v10 = vsel %vm3503_vm9, %v1644_v0, 0.0  ;;  %v1691_v8 = vadd.f32 %v1690_v22, %v1685_v47  ;;  %v1702_v7 = vadd.f32 %v1701_v60, %v1686_v59 }
 0x334   : > { %v1677_v15 = vsel %vm646_vm0, %v1645_v6, 1.0  ;;  %v1678_v39 = vsel %vm646_vm0, %v1646_v10, 1.0  ;;  %v1287_v19 = vadd.f32 %v1286_v45, %v1285_v5  ;;  %v1298_v57 = vadd.f32 %v1297_v37, %v1296_v31 }
 0x335   : > { %v1687_v63 = vmul.f32 %v1677_v15, %v4009_v49  ;;  %v1688_v38 = vmul.f32 %v1678_v39, %v4009_v49  ;;  %v2904_v47 = vmov 839922192  }
 0x336   : > { %v1288_v18 = vrot.slane %v1287_v19, 2  ;;  %v1299_v41 = vrot.slane %v1298_v57, 2  ;;  %v1865_v59 = vunpack.c.l.s4 %v2904_v47 }
 0x337   : > { %v1692_v48 = vsel %vm948_vm3, %v1687_v63, 0.0  ;;  %v1703_v35 = vsel %vm948_vm3, %v1688_v38, 0.0  ;;  %v2466_v63 = vld [vmem:[%s486_s1] sm:$0xff] }
 0x338   : > { %v1693_v61 = vadd.f32 %v1692_v48, %v1691_v8  ;;  %v1704_v54 = vadd.f32 %v1703_v35, %v1702_v7  ;;  %v1289_v49 = vadd.f32 %v1288_v18, %v1287_v19  ;;  %v1300_v13 = vadd.f32 %v1299_v41, %v1298_v57  ;;  %v2467_v7 = vld [vmem:[%s504_s10] sm:$0xff]  ;;  %s4160_s10 = scalar_lea.hbm %s4444_s23, %s4141_s22 }
 0x339   : > { %v1866_v10 = vunpack.c.0.s8 %v1865_v59 }
 0x33a   : > { %v1694_v2 = vrot.slane %v1693_v61, 4  ;;  %v1705_v58 = vrot.slane %v1704_v54, 4  ;;  %v1290_v28 = vrot.slane %v1289_v49, 1  ;;  %v1301_v9 = vrot.slane %v1300_v13, 1 }
 0x33b   : > { %v1869_v60 = vsub.s32 %v1866_v10, %v3996_v52 }
 0x33c   : > { %v1695_v53 = vadd.f32 %v1694_v2, %v1693_v61  ;;  %v1706_v11 = vadd.f32 %v1705_v58, %v1704_v54  ;;  %v1291_v14 = vadd.f32 %v1290_v28, %v1289_v49  ;;  %v1302_v17 = vadd.f32 %v1301_v9, %v1300_v13  ;;  %v2468_v61 = vld [vmem:[%s495_s16] sm:$0xff]  ;;  %s2905_s16 = smov [#allocation16]  }
 0x33d   : > { %v2469_v2 = vld [vmem:[%s513_s8] sm:$0xff] }
 0x33e   : > { %v1696_v29 = vrot.slane %v1695_v53, 2  ;;  %v1707_v42 = vrot.slane %v1706_v11, 2  ;;  %v2267_v4 = vmul.f32 -1.442695, %v1291_v14  ;;  %v2268_v43 = vmul.f32 -1.442695, %v1302_v17 }
 0x340   : > { %v1697_v24 = vadd.f32 %v1696_v29, %v1695_v53  ;;  %v1708_v25 = vadd.f32 %v1707_v42, %v1706_v11  ;;  %2442 = vpow2.f32 %v2267_v4 }
 0x341   : > { %2444 = vpow2.f32 %v2268_v43 }
 0x342   : > { %v1698_v62 = vrot.slane %v1697_v24, 1  ;;  %v1709_v40 = vrot.slane %v1708_v25, 1 }
 0x344   : > { %v1699_v34 = vadd.f32 %v1698_v62, %v1697_v24  ;;  %v1710_v27 = vadd.f32 %v1709_v40, %v1708_v25 }
 0x346   : > { %v2269_v30 = vmul.f32 -1.442695, %v1699_v34  ;;  %v2270_v56 = vmul.f32 -1.442695, %v1710_v27 }
 0x348   : > { %2446 = vpow2.f32 %v2269_v30 }
 0x349   : > { %2448 = vpow2.f32 %v2270_v56 }
 0x34a   : > { %v2443_v1 = vpop.eup %2442 }
 0x34b   : > { %v2445_v12 = vpop.eup %2444  ;;  %v1309_v16 = vadd.f32 1.0, %v2443_v1 }
 0x34c   : > { %v1310_v55 = vadd.f32 1.0, %v2445_v12 }
 0x352   : > { %v2447_v23 = vpop.eup %2446 }
 0x353   : > { %v2449_v51 = vpop.eup %2448  ;;  %v1717_v36 = vadd.f32 1.0, %v2447_v23 }
 0x354   : > { %v1718_v26 = vadd.f32 1.0, %v2449_v51 }
 0x35e   : > { %v1805_v32 = vpop.xlane.xlu0 %1804 }
 0x35f   : > { %v2271_v33 = vmul.f32 -1.442695, %v1805_v32 }
 0x361   : > { %2450 = vpow2.f32 %v2271_v33  ;;  %v1851_v50 = vpop.xlane.xlu1 %1850 }
 0x362   : > { %v2272_v44 = vmul.f32 -1.442695, %v1851_v50  ;;  %2452 = vrcp.f32 %v1309_v16 }
 0x364   : > { %2454 = vpow2.f32 %v2272_v44 }
 0x365   : > { %2456 = vrcp.f32 %v1310_v55 }
 0x366   : > { %2458 = vrcp.f32 %v1717_v36 }
 0x367   : > { %2460 = vrcp.f32 %v1718_v26 }
 0x36b   : > { %v2451_v20 = vpop.eup %2450 }
 0x36c   : > { %v1809_v3 = vadd.f32 1.0, %v2451_v20  ;;  %v2453_v21 = vpop.eup %2452 }
 0x36e   : > { %2462 = vrcp.f32 %v1809_v3  ;;  %v2455_v0 = vpop.eup %2454 }
 0x36f   : > { %v2457_v46 = vpop.eup %2456  ;;  %v1855_v5 = vadd.f32 1.0, %v2455_v0 }
 0x370   : > { %v2459_v6 = vpop.eup %2458  ;;  %v1860_v15 = vcombine.low %v2453_v21, %v2457_v46 }
 0x371   : > { %v2461_v22 = vpop.eup %2460  ;;  %2464 = vrcp.f32 %v1855_v5 }
 0x372   : > { %v1888_v39 = vcombine.low %v2459_v6, %v2461_v22  ;;  %v1862_v38 = vmul.f32 %v2466_v63, %v1860_v15  ;;  %v1874_v54 = vmul.f32 %v2468_v61, %v1860_v15 }
 0x374   : > { %v1890_v52 = vmul.f32 %v2467_v7, %v1888_v39  ;;  %v1893_v19 = vmul.f32 %v2469_v2, %v1888_v39 }
 0x378   : > { %v2463_v31 = vpop.eup %2462 }
 0x379   : > { %v1870_v8 = vrot.slane %v2463_v31, %v1869_v60 }
 0x37b   : > { %v1872_v45 = vmul.f32 %v1870_v8, %v1862_v38  ;;  %v1891_v48 = vmul.f32 %v1890_v52, %v1870_v8  ;;  %v2465_v35 = vpop.eup %2464 }
 0x37c   : > { %v1882_v37 = vrot.slane %v2465_v35, %v1869_v60 }
 0x37d   : > { %1873 = vst [vmem:[%s576_s30] sm:$0xff] %v1872_v45  ;;  %1892 = vst [vmem:[%s590_s4] sm:$0xff] %v1891_v48  ;;  %s2706_s30 = sshll.u32 %s2905_s16, 4  ;;  %s2707_s30 = int_to_ptr.vmem [resolvable:$false] %s2706_s30 }
 0x37e   : > { %s2708_s1 = scalar_lea.vmem %s2707_s30, 256  ;;  %p2709_p3 = scmp.lt.s32.totalorder %s4154_s14, %s2707_s30 }
 0x37f   : > { %p2710_p6 = scmp.lt.s32.totalorder %s2708_s1, %s2702_s28 }
 0x381   : > { %p2711_p1 = por %p2710_p6, %p2709_p3 }
 0x383   : > { %p2712_p8 = pnand %p2711_p1, %p2705_p10 }
 0x385   : > { %2715 = shalt.err (!%p2712_p8)
}
 0x386   : > { %s2716_s8 = scalar_lea.hbm %s4152_s21, 128  ;;  %s2720_s16 = scalar_lea.hbm %s4443_s27, 256 }
 0x387   : > { %p2717_p12 = scmp.ne.s32.totalorder %s4152_s21, %s2716_s8  ;;  %p2721_p4 = scmp.lt.u32.totalorder %s4152_s21, %s4443_s27 }
 0x388   : > { %p2722_p0 = scmp.lt.u32.totalorder %s2720_s16, %s2716_s8  ;;  %p2724_p7 = scmp.lt.u32.totalorder %s2716_s8, %s4152_s21 }
 0x389   : > { %p2718_p5 = pnand %p2717_p12, %p4446_p9 }
 0x38a   : > { %p2723_p13 = por %p2722_p0, %p2721_p4 }
 0x38b   : > { %p2719_p2 = pneg %p2718_p5 }
 0x38c   : > { %p2725_p11 = por %p2724_p7, %p2723_p13 }
 0x38e   : > { %p2726_p10 = pnand %p2725_p11, %p2719_p2 }
 0x390   : > { %2729 = shalt.err (!%p2726_p10)
}
 0x391   : > { %2319 = dma.vmem_to_hbm [thread:$0]  (%p4446_p9), %s4154_s14, 128, %s4152_s21, %s1897_s17   ;;  %v1884_v58 = vmul.f32 %v1882_v37, %v1874_v54  ;;  %v1894_v57 = vmul.f32 %v1893_v19, %v1882_v37 }
 0x392   : > { %s4447_s1 = sld [smem:[#allocation48_spill]]  ;;  %s4448_s13 = scalar_lea.vmem [#allocation20], %s3287_s9 }
 0x393   : > { %1885 = vst [vmem:[%s583_s15] sm:$0xff] %v1884_v58  ;;  %1895 = vst [vmem:[%s4448_s13] sm:$0xff] %v1894_v57  ;;  %s4449_s21 = sld [smem:[#allocation49_spill]]  ;;  %s1902_s16 = scalar_lea.sflag [#allocation18], %s3296_s25 }
 0x394   : > { %s2730_s30 = scalar_lea.vmem %s4202_s26, 128  ;;  %s2906_s11 = smov [#allocation17]  }
 0x395   : > { %p2731_p3 = scmp.ne.s32.totalorder %s4202_s26, %s2730_s30  ;;  %s2734_s28 = sshll.u32 %s2906_s11, 4  ;;  %s2735_s28 = int_to_ptr.vmem [resolvable:$false] %s2734_s28 }
 0x396   : > { %s2736_s0 = scalar_lea.vmem %s2735_s28, 256  ;;  %p2737_p8 = scmp.lt.s32.totalorder %s4202_s26, %s2735_s28 }
 0x397   : > { %p2732_p6 = pnand %p2731_p3, %p4446_p9  ;;  %p2738_p12 = scmp.lt.s32.totalorder %s2736_s0, %s2730_s30 }
 0x398   : > { %s4208_s8 = scalar_lea.hbm %s4447_s1, %s4141_s22 }
 0x399   : > { %s4221_s17 = scalar_lea.hbm %s4449_s21, %s4141_s22  ;;  %p2733_p1 = pneg %p2732_p6 }
 0x39a   : > { %p2739_p5 = por %p2738_p12, %p2737_p8 }
 0x39c   : > { %p2740_p2 = pnand %p2739_p5, %p2733_p1 }
 0x39e   : > { %2743 = shalt.err (!%p2740_p2)
}
 0x39f   : > { %s2744_s9 = scalar_lea.hbm %s4160_s10, 128  ;;  %s2748_s13 = scalar_lea.hbm %s4444_s23, 256 }
 0x3a0   : > { %p2745_p4 = scmp.ne.s32.totalorder %s4160_s10, %s2744_s9  ;;  %p2749_p7 = scmp.lt.u32.totalorder %s4160_s10, %s4444_s23 }
 0x3a1   : > { %p2750_p11 = scmp.lt.u32.totalorder %s2748_s13, %s2744_s9  ;;  %p2752_p3 = scmp.lt.u32.totalorder %s2744_s9, %s4160_s10 }
 0x3a2   : > { %p2746_p0 = pnand %p2745_p4, %p4446_p9 }
 0x3a3   : > { %p2751_p10 = por %p2750_p11, %p2749_p7 }
 0x3a4   : > { %p2747_p13 = pneg %p2746_p0 }
 0x3a5   : > { %p2753_p6 = por %p2752_p3, %p2751_p10 }
 0x3a7   : > { %p2754_p1 = pnand %p2753_p6, %p2747_p13 }
 0x3a9   : > { %2757 = shalt.err (!%p2754_p1)
}
 0x3aa   : > { %2320 = dma.vmem_to_hbm [thread:$0]  (%p4446_p9), %s4202_s26, 128, %s4160_s10, %s1902_s16  }
 0x3ab   : > { %s2758_s0 = scalar_lea.vmem %s4211_s29, 128  ;;  %s2907_s30 = smov [#allocation19]  }
 0x3ac   : > { %p2759_p8 = scmp.ne.s32.totalorder %s4211_s29, %s2758_s0  ;;  %s2762_s11 = sshll.u32 %s2907_s30, 4  ;;  %s2763_s11 = int_to_ptr.vmem [resolvable:$false] %s2762_s11 }
 0x3ad   : > { %s2764_s28 = scalar_lea.vmem %s2763_s11, 256  ;;  %p2765_p2 = scmp.lt.s32.totalorder %s4211_s29, %s2763_s11 }
 0x3ae   : > { %p2760_p12 = pnand %p2759_p8, %p4446_p9  ;;  %p2766_p4 = scmp.lt.s32.totalorder %s2764_s28, %s2758_s0 }
 0x3b0   : > { %p2761_p5 = pneg %p2760_p12  ;;  %p2767_p0 = por %p2766_p4, %p2765_p2 }
 0x3b2   : > { %p2768_p13 = pnand %p2767_p0, %p2761_p5 }
 0x3b4   : > { %2771 = shalt.err (!%p2768_p13)
}
 0x3b5   : > { %s2772_s10 = scalar_lea.hbm %s4208_s8, 128  ;;  %s2776_s22 = scalar_lea.hbm %s4447_s1, 256 }
 0x3b6   : > { %p2773_p7 = scmp.ne.s32.totalorder %s4208_s8, %s2772_s10  ;;  %p2777_p3 = scmp.lt.u32.totalorder %s4208_s8, %s4447_s1 }
 0x3b7   : > { %p2778_p6 = scmp.lt.u32.totalorder %s2776_s22, %s2772_s10  ;;  %p2780_p8 = scmp.lt.u32.totalorder %s2772_s10, %s4208_s8 }
 0x3b8   : > { %p2774_p11 = pnand %p2773_p7, %p4446_p9 }
 0x3b9   : > { %p2779_p1 = por %p2778_p6, %p2777_p3 }
 0x3ba   : > { %p2775_p10 = pneg %p2774_p11 }
 0x3bb   : > { %p2781_p12 = por %p2780_p8, %p2779_p1 }
 0x3bd   : > { %p2782_p5 = pnand %p2781_p12, %p2775_p10 }
 0x3bf   : > { %2785 = shalt.err (!%p2782_p5)
}
 0x3c0   : > { %2321 = dma.vmem_to_hbm [thread:$0]  (%p4446_p9), %s4211_s29, 128, %s4208_s8, %s1902_s16  }
 0x3c1   : > { %s1912_s4 = scalar_lea.sflag [#allocation21], %s3284_s5  ;;  %s2786_s14 = scalar_lea.vmem %s4224_s12, 128 }
 0x3c2   : > { %p2787_p2 = scmp.ne.s32.totalorder %s4224_s12, %s2786_s14  ;;  %s2908_s0 = smov [#allocation20]  }
 0x3c3   : > { %s2790_s30 = sshll.u32 %s2908_s0, 4  ;;  %s2791_s30 = int_to_ptr.vmem [resolvable:$false] %s2790_s30 }
 0x3c4   : > { %p2788_p4 = pnand %p2787_p2, %p4446_p9  ;;  %s2792_s11 = scalar_lea.vmem %s2791_s30, 256 }
 0x3c5   : > { %p2793_p13 = scmp.lt.s32.totalorder %s4224_s12, %s2791_s30  ;;  %p2794_p7 = scmp.lt.s32.totalorder %s2792_s11, %s2786_s14 }
 0x3c6   : > { %p2789_p0 = pneg %p2788_p4 }
 0x3c7   : > { %p2795_p11 = por %p2794_p7, %p2793_p13 }
 0x3c9   : > { %p2796_p10 = pnand %p2795_p11, %p2789_p0 }
 0x3cb   : > { %2799 = shalt.err (!%p2796_p10)
}
 0x3cc   : > { %s2800_s5 = scalar_lea.hbm %s4221_s17, 128  ;;  %s2804_s8 = scalar_lea.hbm %s4449_s21, 256 }
 0x3cd   : > { %p2801_p3 = scmp.ne.s32.totalorder %s4221_s17, %s2800_s5  ;;  %p2805_p8 = scmp.lt.u32.totalorder %s4221_s17, %s4449_s21 }
 0x3ce   : > { %p2806_p12 = scmp.lt.u32.totalorder %s2804_s8, %s2800_s5  ;;  %p2808_p2 = scmp.lt.u32.totalorder %s2800_s5, %s4221_s17 }
 0x3cf   : > { %p2802_p6 = pnand %p2801_p3, %p4446_p9 }
 0x3d0   : > { %p2807_p5 = por %p2806_p12, %p2805_p8 }
 0x3d1   : > { %p2803_p1 = pneg %p2802_p6 }
 0x3d2   : > { %p2809_p4 = por %p2808_p2, %p2807_p5 }
 0x3d4   : > { %p2810_p0 = pnand %p2809_p4, %p2803_p1 }
 0x3d6   : > { %2813 = shalt.err (!%p2810_p0)
}
 0x3d7   : > { %2322 = dma.vmem_to_hbm [thread:$0]  (%p4446_p9), %s4224_s12, 128, %s4221_s17, %s1912_s4  }
 0x3d8 PF: > { %s4450_s10 = sld [smem:[#allocation31_spill]]  ;;  %s4451_s26 = sld [smem:[#allocation32_spill]] }
 0x3d9   : > { %p4453_p7 = scmp.ge.s32.totalorder %s2880_s20, 2 }
 0x3de   : > { %s1980_s9 = sand.u32 1, %s4450_s10   ;;  %p4452_p13 = scmp.ne.s32.totalorder %s4451_s26, 0 }
 0x3df   : > { %s1981_s22 = scalar_lea.sflag [#allocation4], %s1980_s9 }
 0x3e0   : > { %p2354_p11 = pnand %p4453_p7, %p4452_p13 }
 0x3e2   : > { %2855 = dma.done.wait (!%p2354_p11), %s1981_s22, 128  }
 0x3e3   : > { %2857 = vsyncadd (!%p2354_p11), %s1981_s22, 4294967168  ;;  %s4454_s15 = sadd.s32 4294967294, %s2880_s20  }
 0x3e4   : > { %s1989_s13 = sand.u32 1, %s4454_s15  }
 0x3e5   : > { %s1990_s14 = scalar_lea.sflag [#allocation18], %s1989_s13 }
 0x3e6   : > { %2859 = dma.done.wait (!%p2354_p11), %s1990_s14, 256  }
 0x3e7   : > { %2861 = vsyncadd (!%p2354_p11), %s1990_s14, 4294967040  ;;  %s2008_s24 = scalar_lea.sflag [#allocation21], %s1980_s9 }
 0x3e8   : > { %2863 = dma.done.wait (!%p2354_p11), %s2008_s24, 128  }
 0x3e9   : > { %2865 = vsyncadd (!%p2354_p11), %s2008_s24, 4294967168  ;;  %s4455_s20 = sld [smem:[#allocation33_spill]]  ;;  %s4456_s12 = sld [smem:[#allocation35_spill]] }
 0x3ea   : > { %s4457_s17 = smov %s2872_s18  ;;  %s4458_s18 = smov %s2876_s19 }
 0x3ef   : > { %p39_p9 = scmp.ge.s32.totalorder %s4455_s20, 4   ;;  %s4459_s19 = smov %s4456_s12 }
 0x3f1   :  { %41 = sbr.rel (!%p39_p9) target bundleno = 24 (0x18), region = 199 }
 0x3f8   :  { %2013 = vsyncpa [#allocation3], 1 }
 0x3f9   :  { %2015 = vsyncpa [#allocation3 + $0x1], 1 }
 0x3fa   :  { %2016 = vsyncpa [#allocation6], 1 }
 0x3fb   :  { %2018 = vsyncpa [#allocation6 + $0x1], 1 }
 0x3fc   :  { %2019 = vsyncpa [#allocation9], 1 }
 0x3fd   :  { %2021 = vsyncpa [#allocation9 + $0x1], 1 }
 0x3fe   :  { %2022 = vsyncpa [#allocation12], 1 }
 0x3ff   :  { %2023 = vsyncpa [#allocation15], 1 }
 0x400   :  { %2024 = vsyncpa [#allocation4], 1 }
 0x401   :  { %2026 = vsyncpa [#allocation4 + $0x1], 1 }
 0x402   :  { %2027 = vsyncpa [#allocation18], 1 }
 0x403   :  { %2029 = vsyncpa [#allocation18 + $0x1], 1 }
 0x404   :  { %2030 = vsyncpa [#allocation21], 1 }
 0x405   :  { %2032 = vsyncpa [#allocation21 + $0x1], 1 }

</bundles_post_ra>
